<compile_context>
chip_gen: v5e
topology: v5e:2x2
jax: 0.10.0
libtpu: 0.0.40
codegen_flags: <defaults>
</compile_context>

<pallas_src>
import jax
import jax.numpy as jnp
from jax import lax
from jax.experimental import pallas as pl
from jax.experimental.pallas import tpu as pltpu

# ----------------- config (stand-in for configs/vit_config.yaml) -----------------
N_LAYERS = 2
EMB_DIM = 32
N_HEADS = 4
HEAD_DIM = EMB_DIM // N_HEADS
MLP_DIM = 4 * EMB_DIM
NUM_CLASSES = 10
DROP_RATE = 0.0  # inference-mode dropout == identity
IMG_SIZE = 16
IN_CHANNELS = 3
PATCH_SIZE = 4
NUM_PATCHES = (IMG_SIZE // PATCH_SIZE) ** 2          # 16
SEQ_LEN = NUM_PATCHES + 1                            # 17 (CLS + patches)
S_PAD = 24                                           # seq padded to a multiple of 8
PATCH_DIM = IN_CHANNELS * PATCH_SIZE * PATCH_SIZE    # 48
HEAD_OUT_PAD = 128                                   # lane-dense logits (padded)
EPS = 1e-5
MAX_B_TILE = 128                                     # fits default scoped VMEM on v5e/v6e/v7x
# TODO(synk): training-mode dropout (drop_rate > 0) not implemented (eval semantics only).


# ------------------------------- kernel helpers -----------------------------------
def _layernorm(x, g, b):
    mu = jnp.mean(x, axis=-1, keepdims=True)
    xc = x - mu
    var = jnp.mean(xc * xc, axis=-1, keepdims=True)
    return xc * lax.rsqrt(var + EPS) * g + b


# --------------------------------- fused kernel -----------------------------------
def vit_fused_kernel(patch_ref, pw_ref, tokb_ref,
                     ln1g_ref, ln1b_ref, wqkv_ref, bqkv_ref, wo_ref, bo_ref,
                     ln2g_ref, ln2b_ref, w1_ref, b1_ref, w2_ref, b2_ref,
                     hg_ref, hb_ref, hw_ref, hbias_ref,
                     out_ref):
    # patch_ref: (B_TILE * S_PAD, PATCH_DIM) with CLS/padding rows zeroed.
    b_tile = patch_ref.shape[0] // S_PAD

    # ----- patch embedding + CLS token + positional embedding (one aligned matmul) -----
    # tokb already folds cls + pos (row 0), patch_b + pos (rows 1..16), zeros (padding).
    x = jnp.dot(patch_ref[...], pw_ref[...],
                preferred_element_type=jnp.float32) + tokb_ref[...]        # (M, D)

    # Key mask for padded sequence positions (columns >= SEQ_LEN); hoisted out of loops.
    col = lax.broadcasted_iota(jnp.int32, (1, S_PAD), 1)
    kmask = jnp.where(col < SEQ_LEN, jnp.float32(0.0), jnp.float32(-1e30))  # (1, S_PAD)

    for l in range(N_LAYERS):                               # static unroll over layers
        # ------------- multi-head self-attention (pre-LN), fused QKV ---------------
        h = _layernorm(x, ln1g_ref[l], ln1b_ref[l])
        # attention scale folded into wq/bq at pack time.
        qkv = jnp.dot(h, wqkv_ref[l],
                      preferred_element_type=jnp.float32) + bqkv_ref[l]    # (M, 3D)
        wo_l = wo_ref[l]
        proj = None
        for hh in range(N_HEADS):                           # static unroll over heads
            lo = hh * HEAD_DIM
            qh = qkv[:, lo:lo + HEAD_DIM].reshape(b_tile, S_PAD, HEAD_DIM)
            kh = qkv[:, EMB_DIM + lo:EMB_DIM + lo + HEAD_DIM].reshape(
                b_tile, S_PAD, HEAD_DIM)
            vh = qkv[:, 2 * EMB_DIM + lo:2 * EMB_DIM + lo + HEAD_DIM].reshape(
                b_tile, S_PAD, HEAD_DIM)
            # per-image q @ k^T, batched over the B_TILE images (no explicit transpose).
            s = lax.dot_general(qh, kh, (((2,), (2,)), ((0,), (0,))),
                                preferred_element_type=jnp.float32)        # (B, S, S)
            s = s + kmask                                                  # mask pad keys
            s = s - jnp.max(s, axis=-1, keepdims=True)
            p = jnp.exp(s)
            p = p * pl.reciprocal(jnp.sum(p, axis=-1, keepdims=True), approx=True)
            oh = lax.dot_general(p, vh, (((2,), (1,)), ((0,), (0,))),
                                 preferred_element_type=jnp.float32)       # (B, S, Hd)
            # concat(heads) @ Wo == sum_h head_h @ Wo[h_slice, :]  (flattened M dim)
            c = jnp.dot(oh.reshape(b_tile * S_PAD, HEAD_DIM),
                        wo_l[lo:lo + HEAD_DIM, :],
                        preferred_element_type=jnp.float32)
            proj = c if proj is None else proj + c
        x = x + proj + bo_ref[l]                            # residual 1

        # ------------------------------ MLP (pre-LN) -------------------------------
        h2 = _layernorm(x, ln2g_ref[l], ln2b_ref[l])
        m = jnp.dot(h2, w1_ref[l], preferred_element_type=jnp.float32) + b1_ref[l]
        # TODO(synk): jax.nn.gelu defaults to the tanh approximation; PyTorch nn.GELU
        # defaults to the exact erf form (tiny numerical difference at inference).
        m = jax.nn.gelu(m)
        m = jnp.dot(m, w2_ref[l], preferred_element_type=jnp.float32) + b2_ref[l]
        x = x + m                                           # residual 2

    # ----------------- classification head: LayerNorm + Linear on CLS --------------
    x3 = x.reshape(b_tile, S_PAD, EMB_DIM)
    cls_tok = x3[:, 0, :]                                   # (B_TILE, D)
    hcls = _layernorm(cls_tok, hg_ref[...], hb_ref[...])
    # lane-dense (B_TILE, 128) output block; padded class columns are sliced off outside.
    out_ref[...] = jnp.dot(hcls, hw_ref[...],
                           preferred_element_type=jnp.float32) + hbias_ref[...]


# ------------------------------ pallas_call wrapper --------------------------------
def _resident_spec(arr):
    nd = arr.ndim
    return pl.BlockSpec(arr.shape, lambda b, _nd=nd: (0,) * _nd)


def _pick_b_tile(B):
    if B <= 1:
        return 1
    # Keep >= 2 grid steps so both v7x TensorCores get work; cap tile for VMEM.
    return min(MAX_B_TILE, max(1, B // 2))


def vit_pallas_forward(patches, params, b_tile=None):
    B = patches.shape[0]
    blocks = params["blocks"]
    if b_tile is None:
        b_tile = _pick_b_tile(B)
    nt = pl.cdiv(B, b_tile)
    b_pad = nt * b_tile

    def stack(name):
        return jnp.stack([blk[name] for blk in blocks], axis=0)

    # Pad batch (if needed) and sequence: row 0 = CLS slot (zeros), rows 1..16 = patches,
    # rows 17..23 = padding.  Flattened so the kernel's matmul M dim is B_TILE * S_PAD.
    pp = jnp.zeros((b_pad, S_PAD, PATCH_DIM), jnp.float32)
    pp = pp.at[:B, 1:1 + NUM_PATCHES, :].set(patches)
    pp_flat = pp.reshape(b_pad * S_PAD, PATCH_DIM)

    # Fold cls + pos + patch_b into one additive (S_PAD, D) token bias, tiled per image.
    tok_bias = jnp.zeros((S_PAD, EMB_DIM), jnp.float32)
    tok_bias = tok_bias.at[0:1, :].set(params["cls"] + params["pos"][0:1])
    tok_bias = tok_bias.at[1:SEQ_LEN, :].set(params["patch_b"] + params["pos"][1:SEQ_LEN])
    tok_bias_tiled = jnp.tile(tok_bias, (b_tile, 1))        # (B_TILE*S_PAD, D)

    # Pack Q|K|V into one (D, 3D) projection per layer, with the 1/sqrt(head_dim)
    # attention scale folded into the Q weights/bias.
    scale = HEAD_DIM ** -0.5
    wqkv = jnp.stack([jnp.concatenate([blk["wq"] * scale, blk["wk"], blk["wv"]], axis=1)
                      for blk in blocks], axis=0)
    bqkv = jnp.stack([jnp.concatenate([blk["bq"] * scale, blk["bk"], blk["bv"]], axis=1)
                      for blk in blocks], axis=0)

    # Lane-dense classifier: pad the 10-wide head to 128 output lanes.
    hw_pad = jnp.zeros((EMB_DIM, HEAD_OUT_PAD), jnp.float32)
    hw_pad = hw_pad.at[:, :NUM_CLASSES].set(params["head_w"])
    hb_pad = jnp.zeros((1, HEAD_OUT_PAD), jnp.float32)
    hb_pad = hb_pad.at[:, :NUM_CLASSES].set(params["head_b"])

    args = [pp_flat,
            params["patch_w"], tok_bias_tiled,
            stack("ln1_g"), stack("ln1_b"), wqkv, bqkv,
            stack("wo"), stack("bo"),
            stack("ln2_g"), stack("ln2_b"),
            stack("w1"), stack("b1"), stack("w2"), stack("b2"),
            params["head_ln_g"], params["head_ln_b"],
            hw_pad, hb_pad]

    in_specs = [pl.BlockSpec((b_tile * S_PAD, PATCH_DIM), lambda b: (b, 0))]
    # Weight blocks use constant index maps -> fetched once, resident across the grid.
    in_specs += [_resident_spec(a) for a in args[1:]]

    out = pl.pallas_call(
        vit_fused_kernel,
        out_shape=jax.ShapeDtypeStruct((nt, b_tile, HEAD_OUT_PAD), jnp.float32),
        grid=(nt,),
        in_specs=in_specs,
        out_specs=pl.BlockSpec((None, b_tile, HEAD_OUT_PAD), lambda b: (b, 0, 0)),
        compiler_params=pltpu.CompilerParams(
            dimension_semantics=("parallel",)),   # batch tiles split across TCs on v7x
    )(*args)
    return out.reshape(nt * b_tile, HEAD_OUT_PAD)[:B, :NUM_CLASSES]


# ----------------------------------- glue -----------------------------------------
def extract_patches(x):
    # NCHW -> (B, num_patches, C*ph*pw), flattening order (C, ph, pw) matches Conv2d.
    B, C, H, W = x.shape
    gh, gw = H // PATCH_SIZE, W // PATCH_SIZE
    x = x.reshape(B, C, gh, PATCH_SIZE, gw, PATCH_SIZE)
    x = x.transpose(0, 2, 4, 1, 3, 5)                  # (B, gh, gw, C, ph, pw)
    return x.reshape(B, gh * gw, C * PATCH_SIZE * PATCH_SIZE)


def init_params(key):
    def nrm(k, shape, scale=0.02):
        return scale * jax.random.normal(k, shape, dtype=jnp.float32)

    keys = iter(jax.random.split(key, 8 + 8 * N_LAYERS))
    params = {
        "patch_w": nrm(next(keys), (PATCH_DIM, EMB_DIM)),
        "patch_b": jnp.zeros((1, EMB_DIM), jnp.float32),
        "cls": nrm(next(keys), (1, EMB_DIM)),
        "pos": nrm(next(keys), (SEQ_LEN, EMB_DIM)),
        "head_ln_g": jnp.ones((1, EMB_DIM), jnp.float32),
        "head_ln_b": jnp.zeros((1, EMB_DIM), jnp.float32),
        "head_w": nrm(next(keys), (EMB_DIM, NUM_CLASSES)),
        "head_b": jnp.zeros((1, NUM_CLASSES), jnp.float32),
        "blocks": [],
    }
    for _ in range(N_LAYERS):
        blk = {
            "ln1_g": jnp.ones((1, EMB_DIM), jnp.float32),
            "ln1_b": jnp.zeros((1, EMB_DIM), jnp.float32),
            "wq": nrm(next(keys), (EMB_DIM, EMB_DIM)),
            "bq": jnp.zeros((1, EMB_DIM), jnp.float32),
            "wk": nrm(next(keys), (EMB_DIM, EMB_DIM)),
            "bk": jnp.zeros((1, EMB_DIM), jnp.float32),
            "wv": nrm(next(keys), (EMB_DIM, EMB_DIM)),
            "bv": jnp.zeros((1, EMB_DIM), jnp.float32),
            "wo": nrm(next(keys), (EMB_DIM, EMB_DIM)),
            "bo": jnp.zeros((1, EMB_DIM), jnp.float32),
            "ln2_g": jnp.ones((1, EMB_DIM), jnp.float32),
            "ln2_b": jnp.zeros((1, EMB_DIM), jnp.float32),
            "w1": nrm(next(keys), (EMB_DIM, MLP_DIM)),
            "b1": jnp.zeros((1, MLP_DIM), jnp.float32),
            "w2": nrm(next(keys), (MLP_DIM, EMB_DIM)),
            "b2": jnp.zeros((1, EMB_DIM), jnp.float32),
        }
        params["blocks"].append(blk)
    return params


@jax.jit
def vit_forward(x, params):
    patches = extract_patches(x)                       # pure reshape/transpose glue
    return vit_pallas_forward(patches, params)         # single fused Pallas kernel


if __name__ == "__main__":
    key = jax.random.PRNGKey(0)
    pkey, xkey = jax.random.split(key)
    params = init_params(pkey)
    x = jax.random.normal(xkey, (2, IN_CHANNELS, IMG_SIZE, IMG_SIZE), dtype=jnp.float32)
    logits = vit_forward(x, params)
    jax.block_until_ready(logits)
    assert logits.shape == (2, NUM_CLASSES)
    assert bool(jnp.all(jnp.isfinite(logits)))
    print("KERNEL_OK")
</pallas_src>

<mosaic_0001>
module attributes {stable_mosaic.version = 11 : i64} {
  func.func @vit_fused_kernel(%arg0: i32, %arg1: memref<24x48xf32, #tpu.memory_space<vmem>>, %arg2: memref<48x32xf32, #tpu.memory_space<vmem>>, %arg3: memref<24x32xf32, #tpu.memory_space<vmem>>, %arg4: memref<2x1x32xf32, #tpu.memory_space<vmem>>, %arg5: memref<2x1x32xf32, #tpu.memory_space<vmem>>, %arg6: memref<2x32x96xf32, #tpu.memory_space<vmem>>, %arg7: memref<2x1x96xf32, #tpu.memory_space<vmem>>, %arg8: memref<2x32x32xf32, #tpu.memory_space<vmem>>, %arg9: memref<2x1x32xf32, #tpu.memory_space<vmem>>, %arg10: memref<2x1x32xf32, #tpu.memory_space<vmem>>, %arg11: memref<2x1x32xf32, #tpu.memory_space<vmem>>, %arg12: memref<2x32x128xf32, #tpu.memory_space<vmem>>, %arg13: memref<2x1x128xf32, #tpu.memory_space<vmem>>, %arg14: memref<2x128x32xf32, #tpu.memory_space<vmem>>, %arg15: memref<2x1x32xf32, #tpu.memory_space<vmem>>, %arg16: memref<1x32xf32, #tpu.memory_space<vmem>>, %arg17: memref<1x32xf32, #tpu.memory_space<vmem>>, %arg18: memref<32x128xf32, #tpu.memory_space<vmem>>, %arg19: memref<1x128xf32, #tpu.memory_space<vmem>>, %arg20: memref<1x1x128xf32, #tpu.memory_space<vmem>>) attributes {dimension_semantics = [#tpu.dimension_semantics<parallel>], iteration_bounds = array<i64: 2>, scalar_prefetch = 0 : i64, scratch_operands = 0 : i64, tpu.core_type = #tpu.core_type<tc>, window_params = [{transform_indices = @transform_0, window_bounds = array<i64: 24, 48>}, {pipeline_mode = #tpu.pipeline_mode<synchronous>, transform_indices = @transform_1, window_bounds = array<i64: 48, 32>}, {pipeline_mode = #tpu.pipeline_mode<synchronous>, transform_indices = @transform_2, window_bounds = array<i64: 24, 32>}, {pipeline_mode = #tpu.pipeline_mode<synchronous>, transform_indices = @transform_3, window_bounds = array<i64: 2, 1, 32>}, {pipeline_mode = #tpu.pipeline_mode<synchronous>, transform_indices = @transform_4, window_bounds = array<i64: 2, 1, 32>}, {pipeline_mode = #tpu.pipeline_mode<synchronous>, transform_indices = @transform_5, window_bounds = array<i64: 2, 32, 96>}, {pipeline_mode = #tpu.pipeline_mode<synchronous>, transform_indices = @transform_6, window_bounds = array<i64: 2, 1, 96>}, {pipeline_mode = #tpu.pipeline_mode<synchronous>, transform_indices = @transform_7, window_bounds = array<i64: 2, 32, 32>}, {pipeline_mode = #tpu.pipeline_mode<synchronous>, transform_indices = @transform_8, window_bounds = array<i64: 2, 1, 32>}, {pipeline_mode = #tpu.pipeline_mode<synchronous>, transform_indices = @transform_9, window_bounds = array<i64: 2, 1, 32>}, {pipeline_mode = #tpu.pipeline_mode<synchronous>, transform_indices = @transform_10, window_bounds = array<i64: 2, 1, 32>}, {pipeline_mode = #tpu.pipeline_mode<synchronous>, transform_indices = @transform_11, window_bounds = array<i64: 2, 32, 128>}, {pipeline_mode = #tpu.pipeline_mode<synchronous>, transform_indices = @transform_12, window_bounds = array<i64: 2, 1, 128>}, {pipeline_mode = #tpu.pipeline_mode<synchronous>, transform_indices = @transform_13, window_bounds = array<i64: 2, 128, 32>}, {pipeline_mode = #tpu.pipeline_mode<synchronous>, transform_indices = @transform_14, window_bounds = array<i64: 2, 1, 32>}, {pipeline_mode = #tpu.pipeline_mode<synchronous>, transform_indices = @transform_15, window_bounds = array<i64: 1, 32>}, {pipeline_mode = #tpu.pipeline_mode<synchronous>, transform_indices = @transform_16, window_bounds = array<i64: 1, 32>}, {pipeline_mode = #tpu.pipeline_mode<synchronous>, transform_indices = @transform_17, window_bounds = array<i64: 32, 128>}, {pipeline_mode = #tpu.pipeline_mode<synchronous>, transform_indices = @transform_18, window_bounds = array<i64: 1, 128>}, {transform_indices = @transform_19, window_bounds = array<i64: 1, 1, 128>}]} {
    %c0 = arith.constant 0 : index
    %c0_0 = arith.constant 0 : index
    %0 = vector.load %arg1[%c0, %c0_0] : memref<24x48xf32, #tpu.memory_space<vmem>>, vector<24x48xf32>
    %c0_1 = arith.constant 0 : index
    %c0_2 = arith.constant 0 : index
    %1 = vector.load %arg2[%c0_1, %c0_2] : memref<48x32xf32, #tpu.memory_space<vmem>>, vector<48x32xf32>
    %cst = arith.constant dense<0.000000e+00> : vector<24x32xf32>
    %2 = tpu.matmul %0, %1, %cst {dimension_numbers = #tpu.dot_dimension_numbers<[1], [0], [0], [1], [0, 0, 1, 1], [], []>} : vector<24x48xf32>, vector<48x32xf32>, vector<24x32xf32> -> vector<24x32xf32>
    %c0_3 = arith.constant 0 : index
    %c0_4 = arith.constant 0 : index
    %3 = vector.load %arg3[%c0_3, %c0_4] : memref<24x32xf32, #tpu.memory_space<vmem>>, vector<24x32xf32>
    %4 = arith.addf %2, %3 : vector<24x32xf32>
    %5 = tpu.iota {dimensions = array<i32: 1>} : vector<1x24xi32>
    %c17_i32 = arith.constant 17 : i32
    %6 = vector.broadcast %c17_i32 : i32 to vector<1x24xi32>
    %7 = arith.cmpi slt, %5, %6 : vector<1x24xi32>
    %cst_5 = arith.constant 0.000000e+00 : f32
    %cst_6 = arith.constant -1.000000e+30 : f32
    %8 = vector.broadcast %cst_5 : f32 to vector<1x24xf32>
    %9 = vector.broadcast %cst_6 : f32 to vector<1x24xf32>
    %10 = arith.select %7, %8, %9 : vector<1x24xi1>, vector<1x24xf32>
    %c0_7 = arith.constant 0 : index
    %c0_8 = arith.constant 0 : index
    %c0_9 = arith.constant 0 : index
    %11 = vector.load %arg4[%c0_7, %c0_8, %c0_9] : memref<2x1x32xf32, #tpu.memory_space<vmem>>, vector<1x1x32xf32>
    %12 = vector.shape_cast %11 : vector<1x1x32xf32> to vector<1x32xf32>
    %c0_10 = arith.constant 0 : index
    %c0_11 = arith.constant 0 : index
    %c0_12 = arith.constant 0 : index
    %13 = vector.load %arg5[%c0_10, %c0_11, %c0_12] : memref<2x1x32xf32, #tpu.memory_space<vmem>>, vector<1x1x32xf32>
    %14 = vector.shape_cast %13 : vector<1x1x32xf32> to vector<1x32xf32>
    %cst_13 = arith.constant dense<0.000000e+00> : vector<24xf32>
    %15 = vector.multi_reduction <add>, %4, %cst_13 [1] : vector<24x32xf32> to vector<24xf32>
    %16 = vector.shape_cast %15 : vector<24xf32> to vector<24x1xf32>
    %cst_14 = arith.constant 3.200000e+01 : f32
    %17 = vector.broadcast %cst_14 : f32 to vector<24x1xf32>
    %18 = arith.divf %16, %17 : vector<24x1xf32>
    %19 = vector.broadcast %18 : vector<24x1xf32> to vector<24x32xf32>
    %20 = arith.subf %4, %19 : vector<24x32xf32>
    %21 = arith.mulf %20, %20 : vector<24x32xf32>
    %cst_15 = arith.constant dense<0.000000e+00> : vector<24xf32>
    %22 = vector.multi_reduction <add>, %21, %cst_15 [1] : vector<24x32xf32> to vector<24xf32>
    %23 = vector.shape_cast %22 : vector<24xf32> to vector<24x1xf32>
    %cst_16 = arith.constant 3.200000e+01 : f32
    %24 = vector.broadcast %cst_16 : f32 to vector<24x1xf32>
    %25 = arith.divf %23, %24 : vector<24x1xf32>
    %cst_17 = arith.constant 9.99999974E-6 : f32
    %26 = vector.broadcast %cst_17 : f32 to vector<24x1xf32>
    %27 = arith.addf %25, %26 : vector<24x1xf32>
    %28 = math.rsqrt %27 : vector<24x1xf32>
    %29 = vector.broadcast %28 : vector<24x1xf32> to vector<24x32xf32>
    %30 = arith.mulf %20, %29 : vector<24x32xf32>
    %31 = vector.broadcast %12 : vector<1x32xf32> to vector<24x32xf32>
    %32 = arith.mulf %30, %31 : vector<24x32xf32>
    %33 = vector.broadcast %14 : vector<1x32xf32> to vector<24x32xf32>
    %34 = arith.addf %32, %33 : vector<24x32xf32>
    %c0_18 = arith.constant 0 : index
    %c0_19 = arith.constant 0 : index
    %c0_20 = arith.constant 0 : index
    %35 = vector.load %arg6[%c0_18, %c0_19, %c0_20] : memref<2x32x96xf32, #tpu.memory_space<vmem>>, vector<1x32x96xf32>
    %36 = vector.shape_cast %35 : vector<1x32x96xf32> to vector<32x96xf32>
    %cst_21 = arith.constant dense<0.000000e+00> : vector<24x96xf32>
    %37 = tpu.matmul %34, %36, %cst_21 {dimension_numbers = #tpu.dot_dimension_numbers<[1], [0], [0], [1], [0, 0, 1, 1], [], []>} : vector<24x32xf32>, vector<32x96xf32>, vector<24x96xf32> -> vector<24x96xf32>
    %c0_22 = arith.constant 0 : index
    %c0_23 = arith.constant 0 : index
    %c0_24 = arith.constant 0 : index
    %38 = vector.load %arg7[%c0_22, %c0_23, %c0_24] : memref<2x1x96xf32, #tpu.memory_space<vmem>>, vector<1x1x96xf32>
    %39 = vector.shape_cast %38 : vector<1x1x96xf32> to vector<1x96xf32>
    %40 = vector.broadcast %39 : vector<1x96xf32> to vector<24x96xf32>
    %41 = arith.addf %37, %40 : vector<24x96xf32>
    %c0_25 = arith.constant 0 : index
    %c0_26 = arith.constant 0 : index
    %c0_27 = arith.constant 0 : index
    %42 = vector.load %arg8[%c0_25, %c0_26, %c0_27] : memref<2x32x32xf32, #tpu.memory_space<vmem>>, vector<1x32x32xf32>
    %43 = vector.shape_cast %42 : vector<1x32x32xf32> to vector<32x32xf32>
    %44 = vector.extract_strided_slice %41 {offsets = [0, 0], sizes = [24, 8], strides = [1, 1]} : vector<24x96xf32> to vector<24x8xf32>
    %45 = vector.shape_cast %44 : vector<24x8xf32> to vector<1x24x8xf32>
    %46 = vector.extract_strided_slice %41 {offsets = [0, 32], sizes = [24, 8], strides = [1, 1]} : vector<24x96xf32> to vector<24x8xf32>
    %47 = vector.shape_cast %46 : vector<24x8xf32> to vector<1x24x8xf32>
    %48 = vector.extract_strided_slice %41 {offsets = [0, 64], sizes = [24, 8], strides = [1, 1]} : vector<24x96xf32> to vector<24x8xf32>
    %49 = vector.shape_cast %48 : vector<24x8xf32> to vector<1x24x8xf32>
    %cst_28 = arith.constant dense<0.000000e+00> : vector<1x24x24xf32>
    %50 = tpu.matmul %45, %47, %cst_28 {dimension_numbers = #tpu.dot_dimension_numbers<[2], [2], [1], [1], [0, 0, 0, 1, 1, 1], [0], [0]>} : vector<1x24x8xf32>, vector<1x24x8xf32>, vector<1x24x24xf32> -> vector<1x24x24xf32>
    %51 = vector.shape_cast %10 : vector<1x24xf32> to vector<1x1x24xf32>
    %52 = vector.broadcast %51 : vector<1x1x24xf32> to vector<1x24x24xf32>
    %53 = arith.addf %50, %52 : vector<1x24x24xf32>
    %cst_29 = arith.constant dense<0xFF800000> : vector<1x24xf32>
    %54 = vector.multi_reduction <maximumf>, %53, %cst_29 [2] : vector<1x24x24xf32> to vector<1x24xf32>
    %55 = vector.shape_cast %54 : vector<1x24xf32> to vector<1x24x1xf32>
    %56 = vector.broadcast %55 : vector<1x24x1xf32> to vector<1x24x24xf32>
    %57 = arith.subf %53, %56 : vector<1x24x24xf32>
    %58 = math.exp %57 : vector<1x24x24xf32>
    %cst_30 = arith.constant dense<0.000000e+00> : vector<1x24xf32>
    %59 = vector.multi_reduction <add>, %58, %cst_30 [2] : vector<1x24x24xf32> to vector<1x24xf32>
    %60 = vector.shape_cast %59 : vector<1x24xf32> to vector<1x24x1xf32>
    %61 = tpu.reciprocal %60 {approx = true} : vector<1x24x1xf32> -> vector<1x24x1xf32>
    %62 = vector.broadcast %61 : vector<1x24x1xf32> to vector<1x24x24xf32>
    %63 = arith.mulf %58, %62 : vector<1x24x24xf32>
    %cst_31 = arith.constant dense<0.000000e+00> : vector<1x24x8xf32>
    %64 = tpu.matmul %63, %49, %cst_31 {dimension_numbers = #tpu.dot_dimension_numbers<[2], [1], [1], [2], [0, 0, 0, 1, 1, 2], [0], [0]>} : vector<1x24x24xf32>, vector<1x24x8xf32>, vector<1x24x8xf32> -> vector<1x24x8xf32>
    %65 = vector.shape_cast %64 : vector<1x24x8xf32> to vector<24x8xf32>
    %66 = vector.extract_strided_slice %43 {offsets = [0, 0], sizes = [8, 32], strides = [1, 1]} : vector<32x32xf32> to vector<8x32xf32>
    %cst_32 = arith.constant dense<0.000000e+00> : vector<24x32xf32>
    %67 = tpu.matmul %65, %66, %cst_32 {dimension_numbers = #tpu.dot_dimension_numbers<[1], [0], [0], [1], [0, 0, 1, 1], [], []>} : vector<24x8xf32>, vector<8x32xf32>, vector<24x32xf32> -> vector<24x32xf32>
    %68 = vector.extract_strided_slice %41 {offsets = [0, 8], sizes = [24, 8], strides = [1, 1]} : vector<24x96xf32> to vector<24x8xf32>
    %69 = vector.shape_cast %68 : vector<24x8xf32> to vector<1x24x8xf32>
    %70 = vector.extract_strided_slice %41 {offsets = [0, 40], sizes = [24, 8], strides = [1, 1]} : vector<24x96xf32> to vector<24x8xf32>
    %71 = vector.shape_cast %70 : vector<24x8xf32> to vector<1x24x8xf32>
    %72 = vector.extract_strided_slice %41 {offsets = [0, 72], sizes = [24, 8], strides = [1, 1]} : vector<24x96xf32> to vector<24x8xf32>
    %73 = vector.shape_cast %72 : vector<24x8xf32> to vector<1x24x8xf32>
    %cst_33 = arith.constant dense<0.000000e+00> : vector<1x24x24xf32>
    %74 = tpu.matmul %69, %71, %cst_33 {dimension_numbers = #tpu.dot_dimension_numbers<[2], [2], [1], [1], [0, 0, 0, 1, 1, 1], [0], [0]>} : vector<1x24x8xf32>, vector<1x24x8xf32>, vector<1x24x24xf32> -> vector<1x24x24xf32>
    %75 = vector.shape_cast %10 : vector<1x24xf32> to vector<1x1x24xf32>
    %76 = vector.broadcast %75 : vector<1x1x24xf32> to vector<1x24x24xf32>
    %77 = arith.addf %74, %76 : vector<1x24x24xf32>
    %cst_34 = arith.constant dense<0xFF800000> : vector<1x24xf32>
    %78 = vector.multi_reduction <maximumf>, %77, %cst_34 [2] : vector<1x24x24xf32> to vector<1x24xf32>
    %79 = vector.shape_cast %78 : vector<1x24xf32> to vector<1x24x1xf32>
    %80 = vector.broadcast %79 : vector<1x24x1xf32> to vector<1x24x24xf32>
    %81 = arith.subf %77, %80 : vector<1x24x24xf32>
    %82 = math.exp %81 : vector<1x24x24xf32>
    %cst_35 = arith.constant dense<0.000000e+00> : vector<1x24xf32>
    %83 = vector.multi_reduction <add>, %82, %cst_35 [2] : vector<1x24x24xf32> to vector<1x24xf32>
    %84 = vector.shape_cast %83 : vector<1x24xf32> to vector<1x24x1xf32>
    %85 = tpu.reciprocal %84 {approx = true} : vector<1x24x1xf32> -> vector<1x24x1xf32>
    %86 = vector.broadcast %85 : vector<1x24x1xf32> to vector<1x24x24xf32>
    %87 = arith.mulf %82, %86 : vector<1x24x24xf32>
    %cst_36 = arith.constant dense<0.000000e+00> : vector<1x24x8xf32>
    %88 = tpu.matmul %87, %73, %cst_36 {dimension_numbers = #tpu.dot_dimension_numbers<[2], [1], [1], [2], [0, 0, 0, 1, 1, 2], [0], [0]>} : vector<1x24x24xf32>, vector<1x24x8xf32>, vector<1x24x8xf32> -> vector<1x24x8xf32>
    %89 = vector.shape_cast %88 : vector<1x24x8xf32> to vector<24x8xf32>
    %90 = vector.extract_strided_slice %43 {offsets = [8, 0], sizes = [8, 32], strides = [1, 1]} : vector<32x32xf32> to vector<8x32xf32>
    %cst_37 = arith.constant dense<0.000000e+00> : vector<24x32xf32>
    %91 = tpu.matmul %89, %90, %cst_37 {dimension_numbers = #tpu.dot_dimension_numbers<[1], [0], [0], [1], [0, 0, 1, 1], [], []>} : vector<24x8xf32>, vector<8x32xf32>, vector<24x32xf32> -> vector<24x32xf32>
    %92 = arith.addf %67, %91 : vector<24x32xf32>
    %93 = vector.extract_strided_slice %41 {offsets = [0, 16], sizes = [24, 8], strides = [1, 1]} : vector<24x96xf32> to vector<24x8xf32>
    %94 = vector.shape_cast %93 : vector<24x8xf32> to vector<1x24x8xf32>
    %95 = vector.extract_strided_slice %41 {offsets = [0, 48], sizes = [24, 8], strides = [1, 1]} : vector<24x96xf32> to vector<24x8xf32>
    %96 = vector.shape_cast %95 : vector<24x8xf32> to vector<1x24x8xf32>
    %97 = vector.extract_strided_slice %41 {offsets = [0, 80], sizes = [24, 8], strides = [1, 1]} : vector<24x96xf32> to vector<24x8xf32>
    %98 = vector.shape_cast %97 : vector<24x8xf32> to vector<1x24x8xf32>
    %cst_38 = arith.constant dense<0.000000e+00> : vector<1x24x24xf32>
    %99 = tpu.matmul %94, %96, %cst_38 {dimension_numbers = #tpu.dot_dimension_numbers<[2], [2], [1], [1], [0, 0, 0, 1, 1, 1], [0], [0]>} : vector<1x24x8xf32>, vector<1x24x8xf32>, vector<1x24x24xf32> -> vector<1x24x24xf32>
    %100 = vector.shape_cast %10 : vector<1x24xf32> to vector<1x1x24xf32>
    %101 = vector.broadcast %100 : vector<1x1x24xf32> to vector<1x24x24xf32>
    %102 = arith.addf %99, %101 : vector<1x24x24xf32>
    %cst_39 = arith.constant dense<0xFF800000> : vector<1x24xf32>
    %103 = vector.multi_reduction <maximumf>, %102, %cst_39 [2] : vector<1x24x24xf32> to vector<1x24xf32>
    %104 = vector.shape_cast %103 : vector<1x24xf32> to vector<1x24x1xf32>
    %105 = vector.broadcast %104 : vector<1x24x1xf32> to vector<1x24x24xf32>
    %106 = arith.subf %102, %105 : vector<1x24x24xf32>
    %107 = math.exp %106 : vector<1x24x24xf32>
    %cst_40 = arith.constant dense<0.000000e+00> : vector<1x24xf32>
    %108 = vector.multi_reduction <add>, %107, %cst_40 [2] : vector<1x24x24xf32> to vector<1x24xf32>
    %109 = vector.shape_cast %108 : vector<1x24xf32> to vector<1x24x1xf32>
    %110 = tpu.reciprocal %109 {approx = true} : vector<1x24x1xf32> -> vector<1x24x1xf32>
    %111 = vector.broadcast %110 : vector<1x24x1xf32> to vector<1x24x24xf32>
    %112 = arith.mulf %107, %111 : vector<1x24x24xf32>
    %cst_41 = arith.constant dense<0.000000e+00> : vector<1x24x8xf32>
    %113 = tpu.matmul %112, %98, %cst_41 {dimension_numbers = #tpu.dot_dimension_numbers<[2], [1], [1], [2], [0, 0, 0, 1, 1, 2], [0], [0]>} : vector<1x24x24xf32>, vector<1x24x8xf32>, vector<1x24x8xf32> -> vector<1x24x8xf32>
    %114 = vector.shape_cast %113 : vector<1x24x8xf32> to vector<24x8xf32>
    %115 = vector.extract_strided_slice %43 {offsets = [16, 0], sizes = [8, 32], strides = [1, 1]} : vector<32x32xf32> to vector<8x32xf32>
    %cst_42 = arith.constant dense<0.000000e+00> : vector<24x32xf32>
    %116 = tpu.matmul %114, %115, %cst_42 {dimension_numbers = #tpu.dot_dimension_numbers<[1], [0], [0], [1], [0, 0, 1, 1], [], []>} : vector<24x8xf32>, vector<8x32xf32>, vector<24x32xf32> -> vector<24x32xf32>
    %117 = arith.addf %92, %116 : vector<24x32xf32>
    %118 = vector.extract_strided_slice %41 {offsets = [0, 24], sizes = [24, 8], strides = [1, 1]} : vector<24x96xf32> to vector<24x8xf32>
    %119 = vector.shape_cast %118 : vector<24x8xf32> to vector<1x24x8xf32>
    %120 = vector.extract_strided_slice %41 {offsets = [0, 56], sizes = [24, 8], strides = [1, 1]} : vector<24x96xf32> to vector<24x8xf32>
    %121 = vector.shape_cast %120 : vector<24x8xf32> to vector<1x24x8xf32>
    %122 = vector.extract_strided_slice %41 {offsets = [0, 88], sizes = [24, 8], strides = [1, 1]} : vector<24x96xf32> to vector<24x8xf32>
    %123 = vector.shape_cast %122 : vector<24x8xf32> to vector<1x24x8xf32>
    %cst_43 = arith.constant dense<0.000000e+00> : vector<1x24x24xf32>
    %124 = tpu.matmul %119, %121, %cst_43 {dimension_numbers = #tpu.dot_dimension_numbers<[2], [2], [1], [1], [0, 0, 0, 1, 1, 1], [0], [0]>} : vector<1x24x8xf32>, vector<1x24x8xf32>, vector<1x24x24xf32> -> vector<1x24x24xf32>
    %125 = vector.shape_cast %10 : vector<1x24xf32> to vector<1x1x24xf32>
    %126 = vector.broadcast %125 : vector<1x1x24xf32> to vector<1x24x24xf32>
    %127 = arith.addf %124, %126 : vector<1x24x24xf32>
    %cst_44 = arith.constant dense<0xFF800000> : vector<1x24xf32>
    %128 = vector.multi_reduction <maximumf>, %127, %cst_44 [2] : vector<1x24x24xf32> to vector<1x24xf32>
    %129 = vector.shape_cast %128 : vector<1x24xf32> to vector<1x24x1xf32>
    %130 = vector.broadcast %129 : vector<1x24x1xf32> to vector<1x24x24xf32>
    %131 = arith.subf %127, %130 : vector<1x24x24xf32>
    %132 = math.exp %131 : vector<1x24x24xf32>
    %cst_45 = arith.constant dense<0.000000e+00> : vector<1x24xf32>
    %133 = vector.multi_reduction <add>, %132, %cst_45 [2] : vector<1x24x24xf32> to vector<1x24xf32>
    %134 = vector.shape_cast %133 : vector<1x24xf32> to vector<1x24x1xf32>
    %135 = tpu.reciprocal %134 {approx = true} : vector<1x24x1xf32> -> vector<1x24x1xf32>
    %136 = vector.broadcast %135 : vector<1x24x1xf32> to vector<1x24x24xf32>
    %137 = arith.mulf %132, %136 : vector<1x24x24xf32>
    %cst_46 = arith.constant dense<0.000000e+00> : vector<1x24x8xf32>
    %138 = tpu.matmul %137, %123, %cst_46 {dimension_numbers = #tpu.dot_dimension_numbers<[2], [1], [1], [2], [0, 0, 0, 1, 1, 2], [0], [0]>} : vector<1x24x24xf32>, vector<1x24x8xf32>, vector<1x24x8xf32> -> vector<1x24x8xf32>
    %139 = vector.shape_cast %138 : vector<1x24x8xf32> to vector<24x8xf32>
    %140 = vector.extract_strided_slice %43 {offsets = [24, 0], sizes = [8, 32], strides = [1, 1]} : vector<32x32xf32> to vector<8x32xf32>
    %cst_47 = arith.constant dense<0.000000e+00> : vector<24x32xf32>
    %141 = tpu.matmul %139, %140, %cst_47 {dimension_numbers = #tpu.dot_dimension_numbers<[1], [0], [0], [1], [0, 0, 1, 1], [], []>} : vector<24x8xf32>, vector<8x32xf32>, vector<24x32xf32> -> vector<24x32xf32>
    %142 = arith.addf %117, %141 : vector<24x32xf32>
    %143 = arith.addf %4, %142 : vector<24x32xf32>
    %c0_48 = arith.constant 0 : index
    %c0_49 = arith.constant 0 : index
    %c0_50 = arith.constant 0 : index
    %144 = vector.load %arg9[%c0_48, %c0_49, %c0_50] : memref<2x1x32xf32, #tpu.memory_space<vmem>>, vector<1x1x32xf32>
    %145 = vector.shape_cast %144 : vector<1x1x32xf32> to vector<1x32xf32>
    %146 = vector.broadcast %145 : vector<1x32xf32> to vector<24x32xf32>
    %147 = arith.addf %143, %146 : vector<24x32xf32>
    %c0_51 = arith.constant 0 : index
    %c0_52 = arith.constant 0 : index
    %c0_53 = arith.constant 0 : index
    %148 = vector.load %arg10[%c0_51, %c0_52, %c0_53] : memref<2x1x32xf32, #tpu.memory_space<vmem>>, vector<1x1x32xf32>
    %149 = vector.shape_cast %148 : vector<1x1x32xf32> to vector<1x32xf32>
    %c0_54 = arith.constant 0 : index
    %c0_55 = arith.constant 0 : index
    %c0_56 = arith.constant 0 : index
    %150 = vector.load %arg11[%c0_54, %c0_55, %c0_56] : memref<2x1x32xf32, #tpu.memory_space<vmem>>, vector<1x1x32xf32>
    %151 = vector.shape_cast %150 : vector<1x1x32xf32> to vector<1x32xf32>
    %cst_57 = arith.constant dense<0.000000e+00> : vector<24xf32>
    %152 = vector.multi_reduction <add>, %147, %cst_57 [1] : vector<24x32xf32> to vector<24xf32>
    %153 = vector.shape_cast %152 : vector<24xf32> to vector<24x1xf32>
    %cst_58 = arith.constant 3.200000e+01 : f32
    %154 = vector.broadcast %cst_58 : f32 to vector<24x1xf32>
    %155 = arith.divf %153, %154 : vector<24x1xf32>
    %156 = vector.broadcast %155 : vector<24x1xf32> to vector<24x32xf32>
    %157 = arith.subf %147, %156 : vector<24x32xf32>
    %158 = arith.mulf %157, %157 : vector<24x32xf32>
    %cst_59 = arith.constant dense<0.000000e+00> : vector<24xf32>
    %159 = vector.multi_reduction <add>, %158, %cst_59 [1] : vector<24x32xf32> to vector<24xf32>
    %160 = vector.shape_cast %159 : vector<24xf32> to vector<24x1xf32>
    %cst_60 = arith.constant 3.200000e+01 : f32
    %161 = vector.broadcast %cst_60 : f32 to vector<24x1xf32>
    %162 = arith.divf %160, %161 : vector<24x1xf32>
    %cst_61 = arith.constant 9.99999974E-6 : f32
    %163 = vector.broadcast %cst_61 : f32 to vector<24x1xf32>
    %164 = arith.addf %162, %163 : vector<24x1xf32>
    %165 = math.rsqrt %164 : vector<24x1xf32>
    %166 = vector.broadcast %165 : vector<24x1xf32> to vector<24x32xf32>
    %167 = arith.mulf %157, %166 : vector<24x32xf32>
    %168 = vector.broadcast %149 : vector<1x32xf32> to vector<24x32xf32>
    %169 = arith.mulf %167, %168 : vector<24x32xf32>
    %170 = vector.broadcast %151 : vector<1x32xf32> to vector<24x32xf32>
    %171 = arith.addf %169, %170 : vector<24x32xf32>
    %c0_62 = arith.constant 0 : index
    %c0_63 = arith.constant 0 : index
    %c0_64 = arith.constant 0 : index
    %172 = vector.load %arg12[%c0_62, %c0_63, %c0_64] : memref<2x32x128xf32, #tpu.memory_space<vmem>>, vector<1x32x128xf32>
    %173 = vector.shape_cast %172 : vector<1x32x128xf32> to vector<32x128xf32>
    %cst_65 = arith.constant dense<0.000000e+00> : vector<24x128xf32>
    %174 = tpu.matmul %171, %173, %cst_65 {dimension_numbers = #tpu.dot_dimension_numbers<[1], [0], [0], [1], [0, 0, 1, 1], [], []>} : vector<24x32xf32>, vector<32x128xf32>, vector<24x128xf32> -> vector<24x128xf32>
    %c0_66 = arith.constant 0 : index
    %c0_67 = arith.constant 0 : index
    %c0_68 = arith.constant 0 : index
    %175 = vector.load %arg13[%c0_66, %c0_67, %c0_68] : memref<2x1x128xf32, #tpu.memory_space<vmem>>, vector<1x1x128xf32>
    %176 = vector.shape_cast %175 : vector<1x1x128xf32> to vector<1x128xf32>
    %177 = vector.broadcast %176 : vector<1x128xf32> to vector<24x128xf32>
    %178 = arith.addf %174, %177 : vector<24x128xf32>
    %179 = arith.mulf %178, %178 : vector<24x128xf32>
    %180 = arith.mulf %178, %179 : vector<24x128xf32>
    %cst_69 = arith.constant 4.471500e-02 : f32
    %181 = vector.broadcast %cst_69 : f32 to vector<24x128xf32>
    %182 = arith.mulf %181, %180 : vector<24x128xf32>
    %183 = arith.addf %178, %182 : vector<24x128xf32>
    %cst_70 = arith.constant 0.797884583 : f32
    %184 = vector.broadcast %cst_70 : f32 to vector<24x128xf32>
    %185 = arith.mulf %184, %183 : vector<24x128xf32>
    %186 = math.tanh %185 : vector<24x128xf32>
    %cst_71 = arith.constant 1.000000e+00 : f32
    %187 = vector.broadcast %cst_71 : f32 to vector<24x128xf32>
    %188 = arith.addf %187, %186 : vector<24x128xf32>
    %cst_72 = arith.constant 5.000000e-01 : f32
    %189 = vector.broadcast %cst_72 : f32 to vector<24x128xf32>
    %190 = arith.mulf %189, %188 : vector<24x128xf32>
    %191 = arith.mulf %178, %190 : vector<24x128xf32>
    %c0_73 = arith.constant 0 : index
    %c0_74 = arith.constant 0 : index
    %c0_75 = arith.constant 0 : index
    %192 = vector.load %arg14[%c0_73, %c0_74, %c0_75] : memref<2x128x32xf32, #tpu.memory_space<vmem>>, vector<1x128x32xf32>
    %193 = vector.shape_cast %192 : vector<1x128x32xf32> to vector<128x32xf32>
    %cst_76 = arith.constant dense<0.000000e+00> : vector<24x32xf32>
    %194 = tpu.matmul %191, %193, %cst_76 {dimension_numbers = #tpu.dot_dimension_numbers<[1], [0], [0], [1], [0, 0, 1, 1], [], []>} : vector<24x128xf32>, vector<128x32xf32>, vector<24x32xf32> -> vector<24x32xf32>
    %c0_77 = arith.constant 0 : index
    %c0_78 = arith.constant 0 : index
    %c0_79 = arith.constant 0 : index
    %195 = vector.load %arg15[%c0_77, %c0_78, %c0_79] : memref<2x1x32xf32, #tpu.memory_space<vmem>>, vector<1x1x32xf32>
    %196 = vector.shape_cast %195 : vector<1x1x32xf32> to vector<1x32xf32>
    %197 = vector.broadcast %196 : vector<1x32xf32> to vector<24x32xf32>
    %198 = arith.addf %194, %197 : vector<24x32xf32>
    %199 = arith.addf %147, %198 : vector<24x32xf32>
    %c1 = arith.constant 1 : index
    %c0_80 = arith.constant 0 : index
    %c0_81 = arith.constant 0 : index
    %200 = vector.load %arg4[%c1, %c0_80, %c0_81] : memref<2x1x32xf32, #tpu.memory_space<vmem>>, vector<1x1x32xf32>
    %201 = vector.shape_cast %200 : vector<1x1x32xf32> to vector<1x32xf32>
    %c1_82 = arith.constant 1 : index
    %c0_83 = arith.constant 0 : index
    %c0_84 = arith.constant 0 : index
    %202 = vector.load %arg5[%c1_82, %c0_83, %c0_84] : memref<2x1x32xf32, #tpu.memory_space<vmem>>, vector<1x1x32xf32>
    %203 = vector.shape_cast %202 : vector<1x1x32xf32> to vector<1x32xf32>
    %cst_85 = arith.constant dense<0.000000e+00> : vector<24xf32>
    %204 = vector.multi_reduction <add>, %199, %cst_85 [1] : vector<24x32xf32> to vector<24xf32>
    %205 = vector.shape_cast %204 : vector<24xf32> to vector<24x1xf32>
    %cst_86 = arith.constant 3.200000e+01 : f32
    %206 = vector.broadcast %cst_86 : f32 to vector<24x1xf32>
    %207 = arith.divf %205, %206 : vector<24x1xf32>
    %208 = vector.broadcast %207 : vector<24x1xf32> to vector<24x32xf32>
    %209 = arith.subf %199, %208 : vector<24x32xf32>
    %210 = arith.mulf %209, %209 : vector<24x32xf32>
    %cst_87 = arith.constant dense<0.000000e+00> : vector<24xf32>
    %211 = vector.multi_reduction <add>, %210, %cst_87 [1] : vector<24x32xf32> to vector<24xf32>
    %212 = vector.shape_cast %211 : vector<24xf32> to vector<24x1xf32>
    %cst_88 = arith.constant 3.200000e+01 : f32
    %213 = vector.broadcast %cst_88 : f32 to vector<24x1xf32>
    %214 = arith.divf %212, %213 : vector<24x1xf32>
    %cst_89 = arith.constant 9.99999974E-6 : f32
    %215 = vector.broadcast %cst_89 : f32 to vector<24x1xf32>
    %216 = arith.addf %214, %215 : vector<24x1xf32>
    %217 = math.rsqrt %216 : vector<24x1xf32>
    %218 = vector.broadcast %217 : vector<24x1xf32> to vector<24x32xf32>
    %219 = arith.mulf %209, %218 : vector<24x32xf32>
    %220 = vector.broadcast %201 : vector<1x32xf32> to vector<24x32xf32>
    %221 = arith.mulf %219, %220 : vector<24x32xf32>
    %222 = vector.broadcast %203 : vector<1x32xf32> to vector<24x32xf32>
    %223 = arith.addf %221, %222 : vector<24x32xf32>
    %c1_90 = arith.constant 1 : index
    %c0_91 = arith.constant 0 : index
    %c0_92 = arith.constant 0 : index
    %224 = vector.load %arg6[%c1_90, %c0_91, %c0_92] : memref<2x32x96xf32, #tpu.memory_space<vmem>>, vector<1x32x96xf32>
    %225 = vector.shape_cast %224 : vector<1x32x96xf32> to vector<32x96xf32>
    %cst_93 = arith.constant dense<0.000000e+00> : vector<24x96xf32>
    %226 = tpu.matmul %223, %225, %cst_93 {dimension_numbers = #tpu.dot_dimension_numbers<[1], [0], [0], [1], [0, 0, 1, 1], [], []>} : vector<24x32xf32>, vector<32x96xf32>, vector<24x96xf32> -> vector<24x96xf32>
    %c1_94 = arith.constant 1 : index
    %c0_95 = arith.constant 0 : index
    %c0_96 = arith.constant 0 : index
    %227 = vector.load %arg7[%c1_94, %c0_95, %c0_96] : memref<2x1x96xf32, #tpu.memory_space<vmem>>, vector<1x1x96xf32>
    %228 = vector.shape_cast %227 : vector<1x1x96xf32> to vector<1x96xf32>
    %229 = vector.broadcast %228 : vector<1x96xf32> to vector<24x96xf32>
    %230 = arith.addf %226, %229 : vector<24x96xf32>
    %c1_97 = arith.constant 1 : index
    %c0_98 = arith.constant 0 : index
    %c0_99 = arith.constant 0 : index
    %231 = vector.load %arg8[%c1_97, %c0_98, %c0_99] : memref<2x32x32xf32, #tpu.memory_space<vmem>>, vector<1x32x32xf32>
    %232 = vector.shape_cast %231 : vector<1x32x32xf32> to vector<32x32xf32>
    %233 = vector.extract_strided_slice %230 {offsets = [0, 0], sizes = [24, 8], strides = [1, 1]} : vector<24x96xf32> to vector<24x8xf32>
    %234 = vector.shape_cast %233 : vector<24x8xf32> to vector<1x24x8xf32>
    %235 = vector.extract_strided_slice %230 {offsets = [0, 32], sizes = [24, 8], strides = [1, 1]} : vector<24x96xf32> to vector<24x8xf32>
    %236 = vector.shape_cast %235 : vector<24x8xf32> to vector<1x24x8xf32>
    %237 = vector.extract_strided_slice %230 {offsets = [0, 64], sizes = [24, 8], strides = [1, 1]} : vector<24x96xf32> to vector<24x8xf32>
    %238 = vector.shape_cast %237 : vector<24x8xf32> to vector<1x24x8xf32>
    %cst_100 = arith.constant dense<0.000000e+00> : vector<1x24x24xf32>
    %239 = tpu.matmul %234, %236, %cst_100 {dimension_numbers = #tpu.dot_dimension_numbers<[2], [2], [1], [1], [0, 0, 0, 1, 1, 1], [0], [0]>} : vector<1x24x8xf32>, vector<1x24x8xf32>, vector<1x24x24xf32> -> vector<1x24x24xf32>
    %240 = vector.shape_cast %10 : vector<1x24xf32> to vector<1x1x24xf32>
    %241 = vector.broadcast %240 : vector<1x1x24xf32> to vector<1x24x24xf32>
    %242 = arith.addf %239, %241 : vector<1x24x24xf32>
    %cst_101 = arith.constant dense<0xFF800000> : vector<1x24xf32>
    %243 = vector.multi_reduction <maximumf>, %242, %cst_101 [2] : vector<1x24x24xf32> to vector<1x24xf32>
    %244 = vector.shape_cast %243 : vector<1x24xf32> to vector<1x24x1xf32>
    %245 = vector.broadcast %244 : vector<1x24x1xf32> to vector<1x24x24xf32>
    %246 = arith.subf %242, %245 : vector<1x24x24xf32>
    %247 = math.exp %246 : vector<1x24x24xf32>
    %cst_102 = arith.constant dense<0.000000e+00> : vector<1x24xf32>
    %248 = vector.multi_reduction <add>, %247, %cst_102 [2] : vector<1x24x24xf32> to vector<1x24xf32>
    %249 = vector.shape_cast %248 : vector<1x24xf32> to vector<1x24x1xf32>
    %250 = tpu.reciprocal %249 {approx = true} : vector<1x24x1xf32> -> vector<1x24x1xf32>
    %251 = vector.broadcast %250 : vector<1x24x1xf32> to vector<1x24x24xf32>
    %252 = arith.mulf %247, %251 : vector<1x24x24xf32>
    %cst_103 = arith.constant dense<0.000000e+00> : vector<1x24x8xf32>
    %253 = tpu.matmul %252, %238, %cst_103 {dimension_numbers = #tpu.dot_dimension_numbers<[2], [1], [1], [2], [0, 0, 0, 1, 1, 2], [0], [0]>} : vector<1x24x24xf32>, vector<1x24x8xf32>, vector<1x24x8xf32> -> vector<1x24x8xf32>
    %254 = vector.shape_cast %253 : vector<1x24x8xf32> to vector<24x8xf32>
    %255 = vector.extract_strided_slice %232 {offsets = [0, 0], sizes = [8, 32], strides = [1, 1]} : vector<32x32xf32> to vector<8x32xf32>
    %cst_104 = arith.constant dense<0.000000e+00> : vector<24x32xf32>
    %256 = tpu.matmul %254, %255, %cst_104 {dimension_numbers = #tpu.dot_dimension_numbers<[1], [0], [0], [1], [0, 0, 1, 1], [], []>} : vector<24x8xf32>, vector<8x32xf32>, vector<24x32xf32> -> vector<24x32xf32>
    %257 = vector.extract_strided_slice %230 {offsets = [0, 8], sizes = [24, 8], strides = [1, 1]} : vector<24x96xf32> to vector<24x8xf32>
    %258 = vector.shape_cast %257 : vector<24x8xf32> to vector<1x24x8xf32>
    %259 = vector.extract_strided_slice %230 {offsets = [0, 40], sizes = [24, 8], strides = [1, 1]} : vector<24x96xf32> to vector<24x8xf32>
    %260 = vector.shape_cast %259 : vector<24x8xf32> to vector<1x24x8xf32>
    %261 = vector.extract_strided_slice %230 {offsets = [0, 72], sizes = [24, 8], strides = [1, 1]} : vector<24x96xf32> to vector<24x8xf32>
    %262 = vector.shape_cast %261 : vector<24x8xf32> to vector<1x24x8xf32>
    %cst_105 = arith.constant dense<0.000000e+00> : vector<1x24x24xf32>
    %263 = tpu.matmul %258, %260, %cst_105 {dimension_numbers = #tpu.dot_dimension_numbers<[2], [2], [1], [1], [0, 0, 0, 1, 1, 1], [0], [0]>} : vector<1x24x8xf32>, vector<1x24x8xf32>, vector<1x24x24xf32> -> vector<1x24x24xf32>
    %264 = vector.shape_cast %10 : vector<1x24xf32> to vector<1x1x24xf32>
    %265 = vector.broadcast %264 : vector<1x1x24xf32> to vector<1x24x24xf32>
    %266 = arith.addf %263, %265 : vector<1x24x24xf32>
    %cst_106 = arith.constant dense<0xFF800000> : vector<1x24xf32>
    %267 = vector.multi_reduction <maximumf>, %266, %cst_106 [2] : vector<1x24x24xf32> to vector<1x24xf32>
    %268 = vector.shape_cast %267 : vector<1x24xf32> to vector<1x24x1xf32>
    %269 = vector.broadcast %268 : vector<1x24x1xf32> to vector<1x24x24xf32>
    %270 = arith.subf %266, %269 : vector<1x24x24xf32>
    %271 = math.exp %270 : vector<1x24x24xf32>
    %cst_107 = arith.constant dense<0.000000e+00> : vector<1x24xf32>
    %272 = vector.multi_reduction <add>, %271, %cst_107 [2] : vector<1x24x24xf32> to vector<1x24xf32>
    %273 = vector.shape_cast %272 : vector<1x24xf32> to vector<1x24x1xf32>
    %274 = tpu.reciprocal %273 {approx = true} : vector<1x24x1xf32> -> vector<1x24x1xf32>
    %275 = vector.broadcast %274 : vector<1x24x1xf32> to vector<1x24x24xf32>
    %276 = arith.mulf %271, %275 : vector<1x24x24xf32>
    %cst_108 = arith.constant dense<0.000000e+00> : vector<1x24x8xf32>
    %277 = tpu.matmul %276, %262, %cst_108 {dimension_numbers = #tpu.dot_dimension_numbers<[2], [1], [1], [2], [0, 0, 0, 1, 1, 2], [0], [0]>} : vector<1x24x24xf32>, vector<1x24x8xf32>, vector<1x24x8xf32> -> vector<1x24x8xf32>
    %278 = vector.shape_cast %277 : vector<1x24x8xf32> to vector<24x8xf32>
    %279 = vector.extract_strided_slice %232 {offsets = [8, 0], sizes = [8, 32], strides = [1, 1]} : vector<32x32xf32> to vector<8x32xf32>
    %cst_109 = arith.constant dense<0.000000e+00> : vector<24x32xf32>
    %280 = tpu.matmul %278, %279, %cst_109 {dimension_numbers = #tpu.dot_dimension_numbers<[1], [0], [0], [1], [0, 0, 1, 1], [], []>} : vector<24x8xf32>, vector<8x32xf32>, vector<24x32xf32> -> vector<24x32xf32>
    %281 = arith.addf %256, %280 : vector<24x32xf32>
    %282 = vector.extract_strided_slice %230 {offsets = [0, 16], sizes = [24, 8], strides = [1, 1]} : vector<24x96xf32> to vector<24x8xf32>
    %283 = vector.shape_cast %282 : vector<24x8xf32> to vector<1x24x8xf32>
    %284 = vector.extract_strided_slice %230 {offsets = [0, 48], sizes = [24, 8], strides = [1, 1]} : vector<24x96xf32> to vector<24x8xf32>
    %285 = vector.shape_cast %284 : vector<24x8xf32> to vector<1x24x8xf32>
    %286 = vector.extract_strided_slice %230 {offsets = [0, 80], sizes = [24, 8], strides = [1, 1]} : vector<24x96xf32> to vector<24x8xf32>
    %287 = vector.shape_cast %286 : vector<24x8xf32> to vector<1x24x8xf32>
    %cst_110 = arith.constant dense<0.000000e+00> : vector<1x24x24xf32>
    %288 = tpu.matmul %283, %285, %cst_110 {dimension_numbers = #tpu.dot_dimension_numbers<[2], [2], [1], [1], [0, 0, 0, 1, 1, 1], [0], [0]>} : vector<1x24x8xf32>, vector<1x24x8xf32>, vector<1x24x24xf32> -> vector<1x24x24xf32>
    %289 = vector.shape_cast %10 : vector<1x24xf32> to vector<1x1x24xf32>
    %290 = vector.broadcast %289 : vector<1x1x24xf32> to vector<1x24x24xf32>
    %291 = arith.addf %288, %290 : vector<1x24x24xf32>
    %cst_111 = arith.constant dense<0xFF800000> : vector<1x24xf32>
    %292 = vector.multi_reduction <maximumf>, %291, %cst_111 [2] : vector<1x24x24xf32> to vector<1x24xf32>
    %293 = vector.shape_cast %292 : vector<1x24xf32> to vector<1x24x1xf32>
    %294 = vector.broadcast %293 : vector<1x24x1xf32> to vector<1x24x24xf32>
    %295 = arith.subf %291, %294 : vector<1x24x24xf32>
    %296 = math.exp %295 : vector<1x24x24xf32>
    %cst_112 = arith.constant dense<0.000000e+00> : vector<1x24xf32>
    %297 = vector.multi_reduction <add>, %296, %cst_112 [2] : vector<1x24x24xf32> to vector<1x24xf32>
    %298 = vector.shape_cast %297 : vector<1x24xf32> to vector<1x24x1xf32>
    %299 = tpu.reciprocal %298 {approx = true} : vector<1x24x1xf32> -> vector<1x24x1xf32>
    %300 = vector.broadcast %299 : vector<1x24x1xf32> to vector<1x24x24xf32>
    %301 = arith.mulf %296, %300 : vector<1x24x24xf32>
    %cst_113 = arith.constant dense<0.000000e+00> : vector<1x24x8xf32>
    %302 = tpu.matmul %301, %287, %cst_113 {dimension_numbers = #tpu.dot_dimension_numbers<[2], [1], [1], [2], [0, 0, 0, 1, 1, 2], [0], [0]>} : vector<1x24x24xf32>, vector<1x24x8xf32>, vector<1x24x8xf32> -> vector<1x24x8xf32>
    %303 = vector.shape_cast %302 : vector<1x24x8xf32> to vector<24x8xf32>
    %304 = vector.extract_strided_slice %232 {offsets = [16, 0], sizes = [8, 32], strides = [1, 1]} : vector<32x32xf32> to vector<8x32xf32>
    %cst_114 = arith.constant dense<0.000000e+00> : vector<24x32xf32>
    %305 = tpu.matmul %303, %304, %cst_114 {dimension_numbers = #tpu.dot_dimension_numbers<[1], [0], [0], [1], [0, 0, 1, 1], [], []>} : vector<24x8xf32>, vector<8x32xf32>, vector<24x32xf32> -> vector<24x32xf32>
    %306 = arith.addf %281, %305 : vector<24x32xf32>
    %307 = vector.extract_strided_slice %230 {offsets = [0, 24], sizes = [24, 8], strides = [1, 1]} : vector<24x96xf32> to vector<24x8xf32>
    %308 = vector.shape_cast %307 : vector<24x8xf32> to vector<1x24x8xf32>
    %309 = vector.extract_strided_slice %230 {offsets = [0, 56], sizes = [24, 8], strides = [1, 1]} : vector<24x96xf32> to vector<24x8xf32>
    %310 = vector.shape_cast %309 : vector<24x8xf32> to vector<1x24x8xf32>
    %311 = vector.extract_strided_slice %230 {offsets = [0, 88], sizes = [24, 8], strides = [1, 1]} : vector<24x96xf32> to vector<24x8xf32>
    %312 = vector.shape_cast %311 : vector<24x8xf32> to vector<1x24x8xf32>
    %cst_115 = arith.constant dense<0.000000e+00> : vector<1x24x24xf32>
    %313 = tpu.matmul %308, %310, %cst_115 {dimension_numbers = #tpu.dot_dimension_numbers<[2], [2], [1], [1], [0, 0, 0, 1, 1, 1], [0], [0]>} : vector<1x24x8xf32>, vector<1x24x8xf32>, vector<1x24x24xf32> -> vector<1x24x24xf32>
    %314 = vector.shape_cast %10 : vector<1x24xf32> to vector<1x1x24xf32>
    %315 = vector.broadcast %314 : vector<1x1x24xf32> to vector<1x24x24xf32>
    %316 = arith.addf %313, %315 : vector<1x24x24xf32>
    %cst_116 = arith.constant dense<0xFF800000> : vector<1x24xf32>
    %317 = vector.multi_reduction <maximumf>, %316, %cst_116 [2] : vector<1x24x24xf32> to vector<1x24xf32>
    %318 = vector.shape_cast %317 : vector<1x24xf32> to vector<1x24x1xf32>
    %319 = vector.broadcast %318 : vector<1x24x1xf32> to vector<1x24x24xf32>
    %320 = arith.subf %316, %319 : vector<1x24x24xf32>
    %321 = math.exp %320 : vector<1x24x24xf32>
    %cst_117 = arith.constant dense<0.000000e+00> : vector<1x24xf32>
    %322 = vector.multi_reduction <add>, %321, %cst_117 [2] : vector<1x24x24xf32> to vector<1x24xf32>
    %323 = vector.shape_cast %322 : vector<1x24xf32> to vector<1x24x1xf32>
    %324 = tpu.reciprocal %323 {approx = true} : vector<1x24x1xf32> -> vector<1x24x1xf32>
    %325 = vector.broadcast %324 : vector<1x24x1xf32> to vector<1x24x24xf32>
    %326 = arith.mulf %321, %325 : vector<1x24x24xf32>
    %cst_118 = arith.constant dense<0.000000e+00> : vector<1x24x8xf32>
    %327 = tpu.matmul %326, %312, %cst_118 {dimension_numbers = #tpu.dot_dimension_numbers<[2], [1], [1], [2], [0, 0, 0, 1, 1, 2], [0], [0]>} : vector<1x24x24xf32>, vector<1x24x8xf32>, vector<1x24x8xf32> -> vector<1x24x8xf32>
    %328 = vector.shape_cast %327 : vector<1x24x8xf32> to vector<24x8xf32>
    %329 = vector.extract_strided_slice %232 {offsets = [24, 0], sizes = [8, 32], strides = [1, 1]} : vector<32x32xf32> to vector<8x32xf32>
    %cst_119 = arith.constant dense<0.000000e+00> : vector<24x32xf32>
    %330 = tpu.matmul %328, %329, %cst_119 {dimension_numbers = #tpu.dot_dimension_numbers<[1], [0], [0], [1], [0, 0, 1, 1], [], []>} : vector<24x8xf32>, vector<8x32xf32>, vector<24x32xf32> -> vector<24x32xf32>
    %331 = arith.addf %306, %330 : vector<24x32xf32>
    %332 = arith.addf %199, %331 : vector<24x32xf32>
    %c1_120 = arith.constant 1 : index
    %c0_121 = arith.constant 0 : index
    %c0_122 = arith.constant 0 : index
    %333 = vector.load %arg9[%c1_120, %c0_121, %c0_122] : memref<2x1x32xf32, #tpu.memory_space<vmem>>, vector<1x1x32xf32>
    %334 = vector.shape_cast %333 : vector<1x1x32xf32> to vector<1x32xf32>
    %335 = vector.broadcast %334 : vector<1x32xf32> to vector<24x32xf32>
    %336 = arith.addf %332, %335 : vector<24x32xf32>
    %c1_123 = arith.constant 1 : index
    %c0_124 = arith.constant 0 : index
    %c0_125 = arith.constant 0 : index
    %337 = vector.load %arg10[%c1_123, %c0_124, %c0_125] : memref<2x1x32xf32, #tpu.memory_space<vmem>>, vector<1x1x32xf32>
    %338 = vector.shape_cast %337 : vector<1x1x32xf32> to vector<1x32xf32>
    %c1_126 = arith.constant 1 : index
    %c0_127 = arith.constant 0 : index
    %c0_128 = arith.constant 0 : index
    %339 = vector.load %arg11[%c1_126, %c0_127, %c0_128] : memref<2x1x32xf32, #tpu.memory_space<vmem>>, vector<1x1x32xf32>
    %340 = vector.shape_cast %339 : vector<1x1x32xf32> to vector<1x32xf32>
    %cst_129 = arith.constant dense<0.000000e+00> : vector<24xf32>
    %341 = vector.multi_reduction <add>, %336, %cst_129 [1] : vector<24x32xf32> to vector<24xf32>
    %342 = vector.shape_cast %341 : vector<24xf32> to vector<24x1xf32>
    %cst_130 = arith.constant 3.200000e+01 : f32
    %343 = vector.broadcast %cst_130 : f32 to vector<24x1xf32>
    %344 = arith.divf %342, %343 : vector<24x1xf32>
    %345 = vector.broadcast %344 : vector<24x1xf32> to vector<24x32xf32>
    %346 = arith.subf %336, %345 : vector<24x32xf32>
    %347 = arith.mulf %346, %346 : vector<24x32xf32>
    %cst_131 = arith.constant dense<0.000000e+00> : vector<24xf32>
    %348 = vector.multi_reduction <add>, %347, %cst_131 [1] : vector<24x32xf32> to vector<24xf32>
    %349 = vector.shape_cast %348 : vector<24xf32> to vector<24x1xf32>
    %cst_132 = arith.constant 3.200000e+01 : f32
    %350 = vector.broadcast %cst_132 : f32 to vector<24x1xf32>
    %351 = arith.divf %349, %350 : vector<24x1xf32>
    %cst_133 = arith.constant 9.99999974E-6 : f32
    %352 = vector.broadcast %cst_133 : f32 to vector<24x1xf32>
    %353 = arith.addf %351, %352 : vector<24x1xf32>
    %354 = math.rsqrt %353 : vector<24x1xf32>
    %355 = vector.broadcast %354 : vector<24x1xf32> to vector<24x32xf32>
    %356 = arith.mulf %346, %355 : vector<24x32xf32>
    %357 = vector.broadcast %338 : vector<1x32xf32> to vector<24x32xf32>
    %358 = arith.mulf %356, %357 : vector<24x32xf32>
    %359 = vector.broadcast %340 : vector<1x32xf32> to vector<24x32xf32>
    %360 = arith.addf %358, %359 : vector<24x32xf32>
    %c1_134 = arith.constant 1 : index
    %c0_135 = arith.constant 0 : index
    %c0_136 = arith.constant 0 : index
    %361 = vector.load %arg12[%c1_134, %c0_135, %c0_136] : memref<2x32x128xf32, #tpu.memory_space<vmem>>, vector<1x32x128xf32>
    %362 = vector.shape_cast %361 : vector<1x32x128xf32> to vector<32x128xf32>
    %cst_137 = arith.constant dense<0.000000e+00> : vector<24x128xf32>
    %363 = tpu.matmul %360, %362, %cst_137 {dimension_numbers = #tpu.dot_dimension_numbers<[1], [0], [0], [1], [0, 0, 1, 1], [], []>} : vector<24x32xf32>, vector<32x128xf32>, vector<24x128xf32> -> vector<24x128xf32>
    %c1_138 = arith.constant 1 : index
    %c0_139 = arith.constant 0 : index
    %c0_140 = arith.constant 0 : index
    %364 = vector.load %arg13[%c1_138, %c0_139, %c0_140] : memref<2x1x128xf32, #tpu.memory_space<vmem>>, vector<1x1x128xf32>
    %365 = vector.shape_cast %364 : vector<1x1x128xf32> to vector<1x128xf32>
    %366 = vector.broadcast %365 : vector<1x128xf32> to vector<24x128xf32>
    %367 = arith.addf %363, %366 : vector<24x128xf32>
    %368 = arith.mulf %367, %367 : vector<24x128xf32>
    %369 = arith.mulf %367, %368 : vector<24x128xf32>
    %cst_141 = arith.constant 4.471500e-02 : f32
    %370 = vector.broadcast %cst_141 : f32 to vector<24x128xf32>
    %371 = arith.mulf %370, %369 : vector<24x128xf32>
    %372 = arith.addf %367, %371 : vector<24x128xf32>
    %cst_142 = arith.constant 0.797884583 : f32
    %373 = vector.broadcast %cst_142 : f32 to vector<24x128xf32>
    %374 = arith.mulf %373, %372 : vector<24x128xf32>
    %375 = math.tanh %374 : vector<24x128xf32>
    %cst_143 = arith.constant 1.000000e+00 : f32
    %376 = vector.broadcast %cst_143 : f32 to vector<24x128xf32>
    %377 = arith.addf %376, %375 : vector<24x128xf32>
    %cst_144 = arith.constant 5.000000e-01 : f32
    %378 = vector.broadcast %cst_144 : f32 to vector<24x128xf32>
    %379 = arith.mulf %378, %377 : vector<24x128xf32>
    %380 = arith.mulf %367, %379 : vector<24x128xf32>
    %c1_145 = arith.constant 1 : index
    %c0_146 = arith.constant 0 : index
    %c0_147 = arith.constant 0 : index
    %381 = vector.load %arg14[%c1_145, %c0_146, %c0_147] : memref<2x128x32xf32, #tpu.memory_space<vmem>>, vector<1x128x32xf32>
    %382 = vector.shape_cast %381 : vector<1x128x32xf32> to vector<128x32xf32>
    %cst_148 = arith.constant dense<0.000000e+00> : vector<24x32xf32>
    %383 = tpu.matmul %380, %382, %cst_148 {dimension_numbers = #tpu.dot_dimension_numbers<[1], [0], [0], [1], [0, 0, 1, 1], [], []>} : vector<24x128xf32>, vector<128x32xf32>, vector<24x32xf32> -> vector<24x32xf32>
    %c1_149 = arith.constant 1 : index
    %c0_150 = arith.constant 0 : index
    %c0_151 = arith.constant 0 : index
    %384 = vector.load %arg15[%c1_149, %c0_150, %c0_151] : memref<2x1x32xf32, #tpu.memory_space<vmem>>, vector<1x1x32xf32>
    %385 = vector.shape_cast %384 : vector<1x1x32xf32> to vector<1x32xf32>
    %386 = vector.broadcast %385 : vector<1x32xf32> to vector<24x32xf32>
    %387 = arith.addf %383, %386 : vector<24x32xf32>
    %388 = arith.addf %336, %387 : vector<24x32xf32>
    %389 = vector.shape_cast %388 : vector<24x32xf32> to vector<1x24x32xf32>
    %390 = vector.extract_strided_slice %389 {offsets = [0, 0, 0], sizes = [1, 1, 32], strides = [1, 1, 1]} : vector<1x24x32xf32> to vector<1x1x32xf32>
    %391 = vector.shape_cast %390 : vector<1x1x32xf32> to vector<1x32xf32>
    %c0_152 = arith.constant 0 : index
    %c0_153 = arith.constant 0 : index
    %392 = vector.load %arg16[%c0_152, %c0_153] : memref<1x32xf32, #tpu.memory_space<vmem>>, vector<1x32xf32>
    %c0_154 = arith.constant 0 : index
    %c0_155 = arith.constant 0 : index
    %393 = vector.load %arg17[%c0_154, %c0_155] : memref<1x32xf32, #tpu.memory_space<vmem>>, vector<1x32xf32>
    %cst_156 = arith.constant dense<0.000000e+00> : vector<1xf32>
    %394 = vector.multi_reduction <add>, %391, %cst_156 [1] : vector<1x32xf32> to vector<1xf32>
    %395 = vector.shape_cast %394 : vector<1xf32> to vector<1x1xf32>
    %cst_157 = arith.constant 3.200000e+01 : f32
    %396 = vector.broadcast %cst_157 : f32 to vector<1x1xf32>
    %397 = arith.divf %395, %396 : vector<1x1xf32>
    %398 = vector.broadcast %397 : vector<1x1xf32> to vector<1x32xf32>
    %399 = arith.subf %391, %398 : vector<1x32xf32>
    %400 = arith.mulf %399, %399 : vector<1x32xf32>
    %cst_158 = arith.constant dense<0.000000e+00> : vector<1xf32>
    %401 = vector.multi_reduction <add>, %400, %cst_158 [1] : vector<1x32xf32> to vector<1xf32>
    %402 = vector.shape_cast %401 : vector<1xf32> to vector<1x1xf32>
    %cst_159 = arith.constant 3.200000e+01 : f32
    %403 = vector.broadcast %cst_159 : f32 to vector<1x1xf32>
    %404 = arith.divf %402, %403 : vector<1x1xf32>
    %cst_160 = arith.constant 9.99999974E-6 : f32
    %405 = vector.broadcast %cst_160 : f32 to vector<1x1xf32>
    %406 = arith.addf %404, %405 : vector<1x1xf32>
    %407 = math.rsqrt %406 : vector<1x1xf32>
    %408 = vector.broadcast %407 : vector<1x1xf32> to vector<1x32xf32>
    %409 = arith.mulf %399, %408 : vector<1x32xf32>
    %410 = arith.mulf %409, %392 : vector<1x32xf32>
    %411 = arith.addf %410, %393 : vector<1x32xf32>
    %c0_161 = arith.constant 0 : index
    %c0_162 = arith.constant 0 : index
    %412 = vector.load %arg18[%c0_161, %c0_162] : memref<32x128xf32, #tpu.memory_space<vmem>>, vector<32x128xf32>
    %cst_163 = arith.constant dense<0.000000e+00> : vector<1x128xf32>
    %413 = tpu.matmul %411, %412, %cst_163 {dimension_numbers = #tpu.dot_dimension_numbers<[1], [0], [0], [1], [0, 0, 1, 1], [], []>} : vector<1x32xf32>, vector<32x128xf32>, vector<1x128xf32> -> vector<1x128xf32>
    %c0_164 = arith.constant 0 : index
    %c0_165 = arith.constant 0 : index
    %414 = vector.load %arg19[%c0_164, %c0_165] : memref<1x128xf32, #tpu.memory_space<vmem>>, vector<1x128xf32>
    %415 = arith.addf %413, %414 : vector<1x128xf32>
    %c0_166 = arith.constant 0 : index
    %c0_167 = arith.constant 0 : index
    %c0_168 = arith.constant 0 : index
    %416 = vector.load %arg20[%c0_166, %c0_167, %c0_168] : memref<1x1x128xf32, #tpu.memory_space<vmem>>, vector<1x1x128xf32>
    %417 = vector.shape_cast %416 : vector<1x1x128xf32> to vector<1x128xf32>
    %418 = vector.shape_cast %415 : vector<1x128xf32> to vector<1x1x128xf32>
    tpu.vector_store %arg20[%c0_166, %c0_167, %c0_168], %418 {strides = array<i32>} : memref<1x1x128xf32, #tpu.memory_space<vmem>>, vector<1x1x128xf32>,
    return
  }
  func.func @transform_0(%arg0: i32) -> (i32, i32) {
    %c0_i32 = arith.constant 0 : i32
    %c0_i32_0 = arith.constant 0 : i32
    return %arg0, %c0_i32 : i32, i32
  }
  func.func @transform_1(%arg0: i32) -> (i32, i32) {
    %c0_i32 = arith.constant 0 : i32
    %c0_i32_0 = arith.constant 0 : i32
    %c0_i32_1 = arith.constant 0 : i32
    return %c0_i32, %c0_i32_0 : i32, i32
  }
  func.func @transform_2(%arg0: i32) -> (i32, i32) {
    %c0_i32 = arith.constant 0 : i32
    %c0_i32_0 = arith.constant 0 : i32
    %c0_i32_1 = arith.constant 0 : i32
    return %c0_i32, %c0_i32_0 : i32, i32
  }
  func.func @transform_3(%arg0: i32) -> (i32, i32, i32) {
    %c0_i32 = arith.constant 0 : i32
    %c0_i32_0 = arith.constant 0 : i32
    %c0_i32_1 = arith.constant 0 : i32
    %c0_i32_2 = arith.constant 0 : i32
    return %c0_i32, %c0_i32_0, %c0_i32_1 : i32, i32, i32
  }
  func.func @transform_4(%arg0: i32) -> (i32, i32, i32) {
    %c0_i32 = arith.constant 0 : i32
    %c0_i32_0 = arith.constant 0 : i32
    %c0_i32_1 = arith.constant 0 : i32
    %c0_i32_2 = arith.constant 0 : i32
    return %c0_i32, %c0_i32_0, %c0_i32_1 : i32, i32, i32
  }
  func.func @transform_5(%arg0: i32) -> (i32, i32, i32) {
    %c0_i32 = arith.constant 0 : i32
    %c0_i32_0 = arith.constant 0 : i32
    %c0_i32_1 = arith.constant 0 : i32
    %c0_i32_2 = arith.constant 0 : i32
    return %c0_i32, %c0_i32_0, %c0_i32_1 : i32, i32, i32
  }
  func.func @transform_6(%arg0: i32) -> (i32, i32, i32) {
    %c0_i32 = arith.constant 0 : i32
    %c0_i32_0 = arith.constant 0 : i32
    %c0_i32_1 = arith.constant 0 : i32
    %c0_i32_2 = arith.constant 0 : i32
    return %c0_i32, %c0_i32_0, %c0_i32_1 : i32, i32, i32
  }
  func.func @transform_7(%arg0: i32) -> (i32, i32, i32) {
    %c0_i32 = arith.constant 0 : i32
    %c0_i32_0 = arith.constant 0 : i32
    %c0_i32_1 = arith.constant 0 : i32
    %c0_i32_2 = arith.constant 0 : i32
    return %c0_i32, %c0_i32_0, %c0_i32_1 : i32, i32, i32
  }
  func.func @transform_8(%arg0: i32) -> (i32, i32, i32) {
    %c0_i32 = arith.constant 0 : i32
    %c0_i32_0 = arith.constant 0 : i32
    %c0_i32_1 = arith.constant 0 : i32
    %c0_i32_2 = arith.constant 0 : i32
    return %c0_i32, %c0_i32_0, %c0_i32_1 : i32, i32, i32
  }
  func.func @transform_9(%arg0: i32) -> (i32, i32, i32) {
    %c0_i32 = arith.constant 0 : i32
    %c0_i32_0 = arith.constant 0 : i32
    %c0_i32_1 = arith.constant 0 : i32
    %c0_i32_2 = arith.constant 0 : i32
    return %c0_i32, %c0_i32_0, %c0_i32_1 : i32, i32, i32
  }
  func.func @transform_10(%arg0: i32) -> (i32, i32, i32) {
    %c0_i32 = arith.constant 0 : i32
    %c0_i32_0 = arith.constant 0 : i32
    %c0_i32_1 = arith.constant 0 : i32
    %c0_i32_2 = arith.constant 0 : i32
    return %c0_i32, %c0_i32_0, %c0_i32_1 : i32, i32, i32
  }
  func.func @transform_11(%arg0: i32) -> (i32, i32, i32) {
    %c0_i32 = arith.constant 0 : i32
    %c0_i32_0 = arith.constant 0 : i32
    %c0_i32_1 = arith.constant 0 : i32
    %c0_i32_2 = arith.constant 0 : i32
    return %c0_i32, %c0_i32_0, %c0_i32_1 : i32, i32, i32
  }
  func.func @transform_12(%arg0: i32) -> (i32, i32, i32) {
    %c0_i32 = arith.constant 0 : i32
    %c0_i32_0 = arith.constant 0 : i32
    %c0_i32_1 = arith.constant 0 : i32
    %c0_i32_2 = arith.constant 0 : i32
    return %c0_i32, %c0_i32_0, %c0_i32_1 : i32, i32, i32
  }
  func.func @transform_13(%arg0: i32) -> (i32, i32, i32) {
    %c0_i32 = arith.constant 0 : i32
    %c0_i32_0 = arith.constant 0 : i32
    %c0_i32_1 = arith.constant 0 : i32
    %c0_i32_2 = arith.constant 0 : i32
    return %c0_i32, %c0_i32_0, %c0_i32_1 : i32, i32, i32
  }
  func.func @transform_14(%arg0: i32) -> (i32, i32, i32) {
    %c0_i32 = arith.constant 0 : i32
    %c0_i32_0 = arith.constant 0 : i32
    %c0_i32_1 = arith.constant 0 : i32
    %c0_i32_2 = arith.constant 0 : i32
    return %c0_i32, %c0_i32_0, %c0_i32_1 : i32, i32, i32
  }
  func.func @transform_15(%arg0: i32) -> (i32, i32) {
    %c0_i32 = arith.constant 0 : i32
    %c0_i32_0 = arith.constant 0 : i32
    %c0_i32_1 = arith.constant 0 : i32
    return %c0_i32, %c0_i32_0 : i32, i32
  }
  func.func @transform_16(%arg0: i32) -> (i32, i32) {
    %c0_i32 = arith.constant 0 : i32
    %c0_i32_0 = arith.constant 0 : i32
    %c0_i32_1 = arith.constant 0 : i32
    return %c0_i32, %c0_i32_0 : i32, i32
  }
  func.func @transform_17(%arg0: i32) -> (i32, i32) {
    %c0_i32 = arith.constant 0 : i32
    %c0_i32_0 = arith.constant 0 : i32
    %c0_i32_1 = arith.constant 0 : i32
    return %c0_i32, %c0_i32_0 : i32, i32
  }
  func.func @transform_18(%arg0: i32) -> (i32, i32) {
    %c0_i32 = arith.constant 0 : i32
    %c0_i32_0 = arith.constant 0 : i32
    %c0_i32_1 = arith.constant 0 : i32
    return %c0_i32, %c0_i32_0 : i32, i32
  }
  func.func @transform_19(%arg0: i32) -> (i32, i32, i32) {
    %c0_i32 = arith.constant 0 : i32
    %c0_i32_0 = arith.constant 0 : i32
    %c0_i32_1 = arith.constant 0 : i32
    return %arg0, %c0_i32, %c0_i32_0 : i32, i32, i32
  }
}

</mosaic_0001>

<bundles_post_ra>
// kernel: vit_forward.1
= control target key start
LH: loop header
LB: loop body
LE: loop exit
PB: predicated region body
PF: predicated region fallthrough
CT: control target
= control target key end

     0   :  { %s4193_s0 = inlined_call_operand.vmem [shape: f32[48,48], index: 0, kind: input, shape index: {}]   ;;  %s4194_s1 = inlined_call_operand.vmem [shape: f32[48,32], index: 1, kind: input, shape index: {}]   ;;  %s4195_s2 = inlined_call_operand.vmem [shape: f32[24,32], index: 2, kind: input, shape index: {}]   ;;  %s4196_s3 = inlined_call_operand.vmem [shape: f32[2,1,32], index: 3, kind: input, shape index: {}]   ;;  %s4197_s4 = inlined_call_operand.vmem [shape: f32[2,1,32], index: 4, kind: input, shape index: {}]   ;;  %s4198_s5 = inlined_call_operand.vmem [shape: f32[2,32,96], index: 5, kind: input, shape index: {}]   ;;  %s4199_s6 = inlined_call_operand.vmem [shape: f32[2,1,96], index: 6, kind: input, shape index: {}]   ;;  %s4200_s7 = inlined_call_operand.vmem [shape: f32[2,32,32], index: 7, kind: input, shape index: {}]   ;;  %s4201_s8 = inlined_call_operand.vmem [shape: f32[2,1,32], index: 8, kind: input, shape index: {}]   ;;  %s4202_s9 = inlined_call_operand.vmem [shape: f32[2,1,32], index: 9, kind: input, shape index: {}]   ;;  %s4203_s10 = inlined_call_operand.vmem [shape: f32[2,1,32], index: 10, kind: input, shape index: {}]   ;;  %s4204_s11 = inlined_call_operand.vmem [shape: f32[2,32,128], index: 11, kind: input, shape index: {}]   ;;  %s4205_s12 = inlined_call_operand.vmem [shape: f32[2,1,128], index: 12, kind: input, shape index: {}]   ;;  %s4206_s13 = inlined_call_operand.vmem [shape: f32[2,128,32], index: 13, kind: input, shape index: {}]   ;;  %s4207_s14 = inlined_call_operand.vmem [shape: f32[2,1,32], index: 14, kind: input, shape index: {}]   ;;  %s4208_s15 = inlined_call_operand.vmem [shape: f32[1,32], index: 15, kind: input, shape index: {}]   ;;  %s4209_s16 = inlined_call_operand.vmem [shape: f32[1,32], index: 16, kind: input, shape index: {}]   ;;  %s4210_s17 = inlined_call_operand.vmem [shape: f32[32,128], index: 17, kind: input, shape index: {}]   ;;  %s4211_s18 = inlined_call_operand.vmem [shape: f32[1,128], index: 18, kind: input, shape index: {}]   ;;  %s4212_s19 = inlined_call_operand.hbm [shape: f32[2,1,128], index: 19, kind: output, shape index: {}]  }
   0x1   :  { %4244 = sst [smem:[#allocation11_spill]] %s4193_s0 }
   0x2   :  { %4245 = sst [smem:[#allocation12_spill]] %s4194_s1 }
   0x3   :  { %4246 = sst [smem:[#allocation13_spill]] %s4195_s2 }
   0x4   :  { %4247 = sst [smem:[#allocation14_spill]] %s4196_s3 }
   0x5   :  { %4248 = sst [smem:[#allocation15_spill]] %s4197_s4 }
   0x6   :  { %4249 = sst [smem:[#allocation16_spill]] %s4198_s5 }
   0x7   :  { %4250 = sst [smem:[#allocation17_spill]] %s4199_s6 }
   0x8   :  { %4251 = sst [smem:[#allocation18_spill]] %s4211_s18 }
   0x9   :  { %24 = vsyncpa [#allocation3], 0 }
   0xa   :  { %26 = vsyncpa [#allocation3 + $0x1], 0  ;;  %s3347_s0 = smov 0   ;;  %s3349_s30 = smov 0  }
   0xb   :  { %s3351_s20 = smov 0   ;;  %s3353_s21 = smov 0  }
   0xc LB: > { %4252 = sst [smem:[#allocation5_spill]] %s3220_s0  ;;  %s3368_s1 = sadd.s32 4294967295, %s3232_s21   ;;  %s3232_s21 = sphi %s3353_s21, %s4282_s21   ;;  %s3228_s20 = sphi %s3351_s20, %s4284_s20   ;;  %s3224_s30 = sphi %s3349_s30, %s4286_s30   ;;  %s3220_s0 = sphi %s3347_s0, %s4285_s0  }
   0xd   : > { %4253 = sst [smem:[#allocation6_spill]] %s3228_s20  ;;  %s2770_s22 = sadd.s32 4294967294, %s3232_s21  }
   0xe   : > { %4254 = sst [smem:[#allocation7_spill]] %s3232_s21  ;;  %s3372_s2 = sadd.s32 1, %s3232_s21  }
   0xf   : > { %4255 = sst [smem:[#allocation8_spill]] %s3372_s2  ;;  %s443_s23 = sadd.s32 1, %s3228_s20 }
  0x10   : > { %s440_s24 = ssub.s32 %s3232_s21, %s3372_s2  ;;  %p453_p0 = scmp.ne.s32.totalorder %s3228_s20, %s3224_s30 }
  0x11   : > { %p441_p1 = scmp.eq.s32.totalorder %s440_s24, 0  ;;  %p454_p2 = scmp.eq.s32.totalorder %s3368_s1, 1 }
  0x12   : > { %p459_p3 = scmp.ne.s32.totalorder %s3224_s30, %s3220_s0  ;;  %p460_p4 = scmp.eq.s32.totalorder %s2770_s22, 1 }
  0x13   : > { %s3383_s25 = scalar_select %p441_p1, %s3228_s20, %s443_s23  }
  0x14   : > { %p3385_p5 = por %p454_p2, %p453_p0  ;;  %p3389_p6 = por %p460_p4, %p459_p3 }
  0x15   : > { %4256 = sst [smem:[#allocation9_spill]] %s3383_s25  ;;  %p2773_p7 = scmp.ge.s32.totalorder %s3232_s21, 1 }
  0x16   : > { %s4258_s26 = scalar_select %p3389_p6, 1, 0 }
  0x17   : > { %p541_p8 = scmp.lt.s32.totalorder %s3232_s21, 3 }
  0x18   : > { %4259 = sst [smem:[#allocation10_spill]] %s4258_s26 }
  0x19   : > { %p542_p9 = pnand %p2773_p7, %p541_p8 }
  0x1a   : > { %s4260_s29 = sld [smem:[#allocation12_spill]] (!%p542_p9)  ;;  %s596_s24 = smul.u32 (!%p542_p9), 3, %s3368_s1 }
  0x1b   : > { %545 = sbr.rel (%p542_p9) target bundleno = 5678 (0x162e), region = 96  ;;  %s4261_s21 = sld [smem:[#allocation11_spill]] (!%p542_p9) }
  0x1c   : > { %p597_p10 = scmp.lt.s32.totalorder (!%p542_p9), %s596_s24, 5  ;;  %s4263_s5 = sld [smem:[#allocation16_spill]] (!%p542_p9) }
  0x1d   : > { %s4264_s27 = sld [smem:[#allocation14_spill]] (!%p542_p9)  ;;  %s4242_s25 = smov (!%p542_p9), 96  }
  0x1e   : > { %s4265_s4 = sld [smem:[#allocation15_spill]] (!%p542_p9)  ;;  %s4240_s2 = smov (!%p542_p9), 64  }
  0x1f   : > { %s4266_s6 = sld [smem:[#allocation17_spill]] (!%p542_p9)  ;;  %s4238_s26 = smov (!%p542_p9), 88  }
  0x20   : > { %v610_v0 = vld [vmem:[%s4260_s29 + $0x28] sm:$0xff]  ;;  %v609_v1 = vld [vmem:[%s4260_s29 + $0x20] sm:$0xff]  ;;  %v608_v2 = vld [vmem:[%s4260_s29 + $0x18] sm:$0xff]  ;;  %s4288_s24 = smov (!%p597_p10, %s596_s24), 5  ;;  %vm614_vm0 = vcmask 392192   ;;  %vm656_vm1 = vcmask 261120  }
  0x21   : > { %634 = vmatpush.msra.mxu0 %v610_v0  ;;  %v607_v3 = vld [vmem:[%s4260_s29 + $0x10] sm:$0xff]  ;;  %v606_v4 = vld [vmem:[%s4260_s29 + $0x8] sm:$0xff]  ;;  %s2774_s22 = sshll.u32 %s4288_s24, 3  ;;  %v605_v5 = vld [vmem:[%s4260_s29] sm:$0xff]  ;;  %s4262_s24 = sld [smem:[#allocation13_spill]]  ;;  %v3234_v21 = vmov 32.0  }
  0x22   : > { %s600_s18 = scalar_lea.vmem %s4261_s21, %s2774_s22  ;;  %3034 = vrcp.f32 %v3234_v21  ;;  %v745_v43 = vld [vmem:[%s4263_s5 + $0x18] sm:$0xff]  ;;  %v744_v44 = vld [vmem:[%s4263_s5 + $0x10] sm:$0xff]  ;;  %v743_v45 = vld [vmem:[%s4263_s5 + $0x8] sm:$0xff]  ;;  %vm798_vm12 = vcmask 64512   ;;  %vm837_vm14 = vcmask 195584   ;;  %s4236_s0 = smov 120  }
  0x23   : > { %635 = vmatpush.msra.mxu0 %v609_v1  ;;  %v602_v6 = vld [vmem:[%s600_s18] sm:$0xff]  ;;  %v603_v7 = vld [vmem:[%s600_s18 + $0x8] sm:$0xff]  ;;  %v604_v8 = vld [vmem:[%s600_s18 + $0x10] sm:$0xff]  ;;  %771 = vmatpush.msra.mxu1 %v745_v43  ;;  %s4222_s21 = smov 56   ;;  %s4232_s18 = smov 80  }
  0x24   : > { %v742_v46 = vld [vmem:[%s4263_s5] sm:$0xff]  ;;  %s4224_s28 = smov 104   ;;  %s4226_s22 = smov 112  }
  0x25   : > { %636 = vmatpush.msra.mxu0 %v608_v2  ;;  %772 = vmatpush.msra.mxu1 %v744_v44  ;;  %v3018_v0 = vld [vmem:[%s4264_s27] ss:$0 sm:$0xff]  ;;  %s4234_s23 = smov 72  }
  0x27   : > { %637 = vmatpush.msra.mxu0 %v607_v3  ;;  %v611_v9 = vld [vmem:[%s4262_s24] sm:$0xff]  ;;  %v612_v13 = vld [vmem:[%s4262_s24 + $0x8] sm:$0xff]  ;;  %v613_v17 = vld [vmem:[%s4262_s24 + $0x10] sm:$0xff]  ;;  %773 = vmatpush.msra.mxu1 %v743_v45 }
  0x28   : > { %v3035_v22 = vpop.eup %3034 }
  0x29   : > { %638 = vmatpush.msra.mxu0 %v606_v4  ;;  %v667_v23 = vmul.f32 32.0, %v3035_v22  ;;  %vm671_vm2 = vweird.f32 %v3035_v22  ;;  %774 = vmatpush.msra.mxu1 %v742_v46  ;;  %v3019_v4 = vld [vmem:[%s4265_s4] ss:$0 sm:$0xff] }
  0x2b   : > { %639 = vmatpush.msra.mxu0 %v605_v5  ;;  %v668_v24 = vsub.f32 1.0, %v667_v23 }
  0x2c   : > { %2775 = vmatmul.msk.f32.vlgmr.msra.gmra.mxu0 %vm614_vm0, %v602_v6 }
  0x2d   : > { %v669_v25 = vmul.f32 %v3035_v22, %v668_v24 }
  0x2f   : > { %v670_v26 = vadd.f32 %v3035_v22, %v669_v25 }
  0x31   : > { %v3438_v27 = vsel %vm671_vm2, %v3035_v22, %v670_v26 }
  0x34   : > { %2776 = vmatmul.msk.f32.gmra.mxu0 %vm614_vm0, %v603_v7 }
  0x3c   : > { %2777 = vmatmul.msk.f32.gmra.mxu0 %vm614_vm0, %v604_v8 }
  0xa9   : > { %v641_v10 = vpop.f32.mrf.mxu0 }
  0xaa   : > { %v3420_v11 = vadd.f32 %v641_v10, %v611_v9 }
  0xac   : > { %v657_v12 = vsel %vm656_vm1, %v3420_v11, 0.0 }
  0xad   : > { %658 = vadd.xlane.f32.xlu0 %v657_v12 }
  0xb1   : > { %v644_v14 = vpop.f32.mrf.mxu0 }
  0xb2   : > { %v3427_v15 = vadd.f32 %v644_v14, %v612_v13 }
  0xb4   : > { %v660_v16 = vsel %vm656_vm1, %v3427_v15, 0.0 }
  0xb5   : > { %661 = vadd.xlane.f32.xlu0 %v660_v16 }
  0xb9   : > { %v647_v18 = vpop.f32.mrf.mxu0 }
  0xba   : > { %v3434_v19 = vadd.f32 %v647_v18, %v613_v17 }
  0xbc   : > { %v663_v20 = vsel %vm656_vm1, %v3434_v19, 0.0 }
  0xbd   : > { %664 = vadd.xlane.f32.xlu1 %v663_v20 }
 0x120   : > { %v659_v28 = vpop.xlane.xlu0 %658 }
 0x121   : > { %v673_v29 = vmul.f32 %v3438_v27, %v659_v28  ;;  %v3020_v28 = vld [vmem:[%s4266_s6] ss:$0 sm:$0xff] }
 0x123   : > { %v676_v30 = vsub.f32 %v3420_v11, %v673_v29 }
 0x125   : > { %v679_v31 = vmul.f32 %v676_v30, %v676_v30 }
 0x127   : > { %v682_v32 = vsel %vm656_vm1, %v679_v31, 0.0 }
 0x128   : > { %683 = vadd.xlane.f32.xlu1 %v682_v32  ;;  %v662_v33 = vpop.xlane.xlu0 %661 }
 0x129   : > { %v674_v34 = vmul.f32 %v3438_v27, %v662_v33 }
 0x12b   : > { %v677_v35 = vsub.f32 %v3427_v15, %v674_v34 }
 0x12d   : > { %v680_v36 = vmul.f32 %v677_v35, %v677_v35 }
 0x12f   : > { %v685_v37 = vsel %vm656_vm1, %v680_v36, 0.0 }
 0x130   : > { %v665_v38 = vpop.xlane.xlu1 %664  ;;  %686 = vadd.xlane.f32.xlu2 %v685_v37 }
 0x131   : > { %v675_v39 = vmul.f32 %v3438_v27, %v665_v38  ;;  %v650_v38 = vlaneseq }
 0x133   : > { %v3448_v40 = vsub.f32 %v3434_v19, %v675_v39  ;;  %v651_v39 = vand.u32 127, %v650_v38 }
 0x135   : > { %v681_v41 = vmul.f32 %v3448_v40, %v3448_v40  ;;  %vm652_vm13 = vcmp.lt.s32.totalorder %v651_v39, 17 }
 0x137   : > { %v688_v42 = vsel %vm656_vm1, %v681_v41, 0.0 }
 0x138   : > { %689 = vadd.xlane.f32.xlu2 %v688_v42 }
 0x19b   : > { %v684_v47 = vpop.xlane.xlu1 %683 }
 0x19c   : > { %v691_v48 = vmul.f32 %v684_v47, %v3438_v27 }
 0x19e   : > { %v694_v49 = vadd.f32 1e-05, %v691_v48 }
 0x1a0   : > { %3036 = vrsqrt.f32 %v694_v49  ;;  %vm703_vm4 = vweird.f32 %v694_v49 }
 0x1a3   : > { %v687_v50 = vpop.xlane.xlu2 %686 }
 0x1a4   : > { %v692_v51 = vmul.f32 %v687_v50, %v3438_v27 }
 0x1a6   : > { %v3037_v52 = vpop.eup %3036  ;;  %v695_v53 = vadd.f32 1e-05, %v692_v51 }
 0x1a7   : > { %v698_v54 = vmul.f32 %v3037_v52, %v694_v49  ;;  %vm704_vm3 = vweird.f32 %v3037_v52 }
 0x1a8   : > { %3038 = vrsqrt.f32 %v695_v53  ;;  %vm705_vm5 = vmor %vm703_vm4, %vm704_vm3  ;;  %vm713_vm7 = vweird.f32 %v695_v53 }
 0x1a9   : > { %v699_v55 = vmul.f32 %v3037_v52, %v698_v54 }
 0x1ab   : > { %v700_v56 = vmul.f32 0.5, %v699_v55  ;;  %v690_v57 = vpop.xlane.xlu2 %689 }
 0x1ac   : > { %v693_v58 = vmul.f32 %v690_v57, %v3438_v27 }
 0x1ad   : > { %v701_v59 = vsub.f32 1.5, %v700_v56 }
 0x1ae   : > { %v3039_v60 = vpop.eup %3038  ;;  %v696_v61 = vadd.f32 1e-05, %v693_v58 }
 0x1af   : > { %v702_v62 = vmul.f32 %v3037_v52, %v701_v59  ;;  %v708_v63 = vmul.f32 %v3039_v60, %v695_v53  ;;  %vm714_vm6 = vweird.f32 %v3039_v60 }
 0x1b0   : > { %3040 = vrsqrt.f32 %v696_v61  ;;  %vm715_vm8 = vmor %vm713_vm7, %vm714_vm6  ;;  %vm723_vm10 = vweird.f32 %v696_v61 }
 0x1b1   : > { %v706_v1 = vsel %vm705_vm5, %v3037_v52, %v702_v62  ;;  %v709_v2 = vmul.f32 %v3039_v60, %v708_v63 }
 0x1b2   : > { %v727_v3 = vmul.f32 %v706_v1, %v676_v30 }
 0x1b3   : > { %v710_v5 = vmul.f32 0.5, %v709_v2 }
 0x1b4   : > { %v733_v6 = vmul.f32 %v3018_v0, %v727_v3 }
 0x1b5   : > { %v711_v7 = vsub.f32 1.5, %v710_v5 }
 0x1b6   : > { %v3041_v8 = vpop.eup %3040  ;;  %v739_v9 = vadd.f32 %v3019_v4, %v733_v6 }
 0x1b7   : > { %v712_v10 = vmul.f32 %v3039_v60, %v711_v7  ;;  %v718_v12 = vmul.f32 %v3041_v8, %v696_v61  ;;  %vm724_vm9 = vweird.f32 %v3041_v8 }
 0x1b8   : > { %2778 = vmatmul.msk.f32.vlgmr.msra.gmra.mxu1 %vm656_vm1, %v739_v9  ;;  %vm725_vm11 = vmor %vm723_vm10, %vm724_vm9 }
 0x1b9   : > { %v716_v13 = vsel %vm715_vm8, %v3039_v60, %v712_v10  ;;  %v719_v14 = vmul.f32 %v3041_v8, %v718_v12 }
 0x1ba   : > { %v728_v16 = vmul.f32 %v716_v13, %v677_v35 }
 0x1bb   : > { %v720_v17 = vmul.f32 0.5, %v719_v14 }
 0x1bc   : > { %v734_v18 = vmul.f32 %v3018_v0, %v728_v16 }
 0x1bd   : > { %v721_v20 = vsub.f32 1.5, %v720_v17 }
 0x1be   : > { %v740_v21 = vadd.f32 %v3019_v4, %v734_v18 }
 0x1bf   : > { %v722_v22 = vmul.f32 %v3041_v8, %v721_v20 }
 0x1c0   : > { %2779 = vmatmul.msk.f32.gmra.mxu1 %vm656_vm1, %v740_v21 }
 0x1c1   : > { %v726_v23 = vsel %vm725_vm11, %v3041_v8, %v722_v22 }
 0x1c2   : > { %v729_v24 = vmul.f32 %v726_v23, %v3448_v40  ;;  %v3236_v40 = vmov -1e+30  }
 0x1c3   : > { %v3502_v41 = vsel %vm652_vm13, 0.0, %v3236_v40 }
 0x1c4   : > { %v735_v25 = vmul.f32 %v3018_v0, %v729_v24 }
 0x1c6   : > { %v741_v26 = vadd.f32 %v3019_v4, %v735_v25 }
 0x1c8   : > { %2780 = vmatmul.msk.f32.gmra.mxu1 %vm656_vm1, %v741_v26 }
 0x235   : > { %v776_v29 = vpop.f32.mrf.mxu1 }
 0x236   : > { %v3481_v30 = vadd.f32 %v3020_v28, %v776_v29 }
 0x238   : > { %792 = vrot.lane.b32.xlu2 %v3481_v30, %s4242_s25 }
 0x23d   : > { %v779_v31 = vpop.f32.mrf.mxu1 }
 0x23e   : > { %v3485_v32 = vadd.f32 %v3020_v28, %v779_v31 }
 0x240   : > { %794 = vrot.lane.b32.xlu1 %v3485_v32, %s4242_s25 }
 0x245   : > { %v782_v33 = vpop.f32.mrf.mxu1 }
 0x246   : > { %v3489_v34 = vadd.f32 %v3020_v28, %v782_v33 }
 0x248   : > { %796 = vrot.lane.b32.xlu0 %v3489_v34, %s4242_s25  ;;  %v3514_v51 = vpack.i.bf16 %v3485_v32, %v3489_v34  ;;  %s4271_s25 = smov 72  }
 0x292   : > { %v793_v37 = vpop.permute.xlu2 %792 }
 0x2b2   : > { %v795_v36 = vpop.permute.xlu1 %794 }
 0x2ba   : > { %v797_v35 = vpop.permute.xlu0 %796 }
 0x2bb   : > { %2781 = vmatpush.xpose.msk.msra.mxu2 %vm798_vm12, %v797_v35 }
 0x2bf   : > { %2782 = vmatpush.xpose.msk.msra.mxu2 %vm798_vm12, %v795_v36 }
 0x2c3   : > { %2783 = vmatpush.xpose.msk.msra.mxu2 %vm798_vm12, %v793_v37 }
 0x2c6   : > { %2784 = vmatmul.msk.f32.vlgmr.msra.gmra.mxu2 %vm798_vm12, %v3481_v30 }
 0x2ce   : > { %2785 = vmatmul.msk.f32.gmra.mxu2 %vm798_vm12, %v3485_v32 }
 0x2d6   : > { %2786 = vmatmul.msk.f32.gmra.mxu2 %vm798_vm12, %v3489_v34 }
 0x349   : > { %v828_v42 = vpop.f32.mrf.mxu2 }
 0x34a   : > { %v829_v43 = vadd.f32 %v828_v42, %v3502_v41 }
 0x34c   : > { %v838_v44 = vsel %vm837_vm14, %v829_v43, -inf }
 0x34d   : > { %839 = vmax.xlane.f32.xlu0 %v838_v44 }
 0x351   : > { %v831_v45 = vpop.f32.mrf.mxu2 }
 0x352   : > { %v832_v46 = vadd.f32 %v831_v45, %v3502_v41 }
 0x354   : > { %v841_v47 = vsel %vm837_vm14, %v832_v46, -inf }
 0x355   : > { %842 = vmax.xlane.f32.xlu2 %v841_v47 }
 0x359   : > { %v834_v48 = vpop.f32.mrf.mxu2 }
 0x35a   : > { %v835_v49 = vadd.f32 %v834_v48, %v3502_v41 }
 0x35c   : > { %v844_v50 = vsel %vm837_vm14, %v835_v49, -inf }
 0x35d   : > { %845 = vmax.xlane.f32.xlu1 %v844_v50 }
 0x361   : > { %871 = vrot.lane.b32.xlu0 %v3481_v30, %s4240_s2 }
 0x36d   : > { %2979 = vrot.lane.b32.xlu2 %v3514_v51, %s4240_s2  ;;  %s4272_s2 = smov 80  }
 0x375   : > { %923 = vrot.lane.b32.xlu2 %v3485_v32, %s4238_s26 }
 0x37d   : > { %915 = vrot.lane.b32.xlu2 %v3481_v30, %s4236_s0 }
 0x385   : > { %919 = vrot.lane.b32.xlu2 %v3489_v34, %s4236_s0 }
 0x3c0   : > { %v840_v52 = vpop.xlane.xlu0 %839 }
 0x3c1   : > { %v847_v53 = vsub.f32 %v829_v43, %v840_v52 }
 0x3c3   : > { %v850_v54 = vmul.f32 1.442695, %v847_v53 }
 0x3c5   : > { %3042 = vpow2.f32 %v850_v54 }
 0x3c8   : > { %v843_v55 = vpop.xlane.xlu2 %842 }
 0x3c9   : > { %v848_v56 = vsub.f32 %v832_v46, %v843_v55 }
 0x3cb   : > { %v3043_v57 = vpop.eup %3042  ;;  %v852_v58 = vmul.f32 1.442695, %v848_v56 }
 0x3cc   : > { %v856_v59 = vsel %vm837_vm14, %v3043_v57, 0.0 }
 0x3cd   : > { %3044 = vpow2.f32 %v852_v58  ;;  %857 = vadd.xlane.f32.xlu0 %v856_v59 }
 0x3d0   : > { %v846_v60 = vpop.xlane.xlu1 %845  ;;  %v2980_v61 = vpop.permute.xlu2 %2979 }
 0x3d1   : > { %v849_v62 = vsub.f32 %v835_v49, %v846_v60  ;;  %v2981_v63 = vunpack.i.l.bf16 %v2980_v61  ;;  %v2982_v2 = vunpack.i.h.bf16 %v2980_v61 }
 0x3d3   : > { %v3045_v0 = vpop.eup %3044  ;;  %v854_v1 = vmul.f32 1.442695, %v849_v62  ;;  %902 = vmatpush.msra.mxu3 %v2981_v63  ;;  %v872_v4 = vpop.permute.xlu0 %871 }
 0x3d4   : > { %v859_v3 = vsel %vm837_vm14, %v3045_v0, 0.0 }
 0x3d5   : > { %3046 = vpow2.f32 %v854_v1  ;;  %860 = vadd.xlane.f32.xlu1 %v859_v3  ;;  %903 = vmatpush.msra.mxu3 %v2982_v2 }
 0x3d7   : > { %904 = vmatpush.msra.mxu3 %v872_v4 }
 0x3d8   : > { %v924_v20 = vpop.permute.xlu2 %923 }
 0x3db   : > { %v3047_v5 = vpop.eup %3046 }
 0x3dc   : > { %v862_v6 = vsel %vm837_vm14, %v3047_v5, 0.0 }
 0x3dd   : > { %863 = vadd.xlane.f32.xlu1 %v862_v6 }
 0x3e0   : > { %v916_v22 = vpop.permute.xlu2 %915 }
 0x3e1   : > { %921 = vrot.lane.b32.xlu0 %v3481_v30, %s4238_s26 }
 0x3e8   : > { %v920_v24 = vpop.permute.xlu2 %919 }
 0x3e9   : > { %917 = vrot.lane.b32.xlu0 %v3485_v32, %s4236_s0  ;;  %s4270_s0 = smov 120  }
 0x3f6   : > { %925 = vrot.lane.b32.xlu1 %v3489_v34, %s4238_s26  ;;  %s4269_s26 = smov 88  }
 0x440   : > { %v858_v7 = vpop.xlane.xlu0 %857 }
 0x441   : > { %3048 = vrcp.f32 %v858_v7 }
 0x447   : > { %v3049_v8 = vpop.eup %3048 }
 0x448   : > { %v861_v9 = vpop.xlane.xlu1 %860  ;;  %v868_v10 = vmul.f32 %v3049_v8, %v3043_v57 }
 0x449   : > { %3050 = vrcp.f32 %v861_v9 }
 0x44a   : > { %2787 = vmatmul.msk.f32.vlgmr.msra.gmra.mxu3 %vm837_vm14, %v868_v10 }
 0x44f   : > { %v3051_v12 = vpop.eup %3050 }
 0x450   : > { %v864_v13 = vpop.xlane.xlu1 %863  ;;  %v869_v14 = vmul.f32 %v3051_v12, %v3045_v0 }
 0x451   : > { %3052 = vrcp.f32 %v864_v13 }
 0x452   : > { %2788 = vmatmul.msk.f32.gmra.mxu3 %vm837_vm14, %v869_v14 }
 0x453   : > { %v922_v21 = vpop.permute.xlu0 %921 }
 0x457   : > { %v3053_v16 = vpop.eup %3052 }
 0x458   : > { %v870_v17 = vmul.f32 %v3053_v16, %v3047_v5 }
 0x45a   : > { %2789 = vmatmul.msk.f32.gmra.mxu3 %vm837_vm14, %v870_v17 }
 0x45b   : > { %v918_v23 = vpop.permute.xlu0 %917 }
 0x468   : > { %v926_v18 = vpop.permute.xlu1 %925 }
 0x469   : > { %2790 = vmatpush.xpose.msk.msrb.mxu3 %vm798_vm12, %v926_v18  ;;  %v786_v18 = vld [vmem:[%s4200_s7 + $0x8] sm:$0xff] }
 0x46a   : > { %1066 = vmatpush.msrb.mxu0 %v786_v18  ;;  %2925 = vmatpush.msrb.mxu2 %v786_v18 }
 0x46d   : > { %2791 = vmatpush.xpose.msk.msrb.mxu3 %vm798_vm12, %v924_v20  ;;  %v785_v20 = vld [vmem:[%s4200_s7] sm:$0xff] }
 0x46e   : > { %1101 = vmatpush.msra.mxu2 %v785_v20 }
 0x471   : > { %2792 = vmatpush.xpose.msk.msrb.mxu3 %vm798_vm12, %v922_v21 }
 0x474   : > { %2793 = vmatmul.msk.f32.vlgmr.msrb.gmra.mxu3 %vm798_vm12, %v916_v22 }
 0x47c   : > { %2794 = vmatmul.msk.f32.gmra.mxu3 %vm798_vm12, %v918_v23 }
 0x484   : > { %2795 = vmatmul.msk.f32.gmra.mxu3 %vm798_vm12, %v920_v24 }
 0x4cd   : > { %v3542_v25 = vpop.f32.mrf.mxu3 }
 0x4d5   : > { %v3544_v26 = vpop.f32.mrf.mxu3 }
 0x4dd   : > { %v3546_v28 = vpop.f32.mrf.mxu3 }
 0x4f7   : > { %v956_v29 = vpop.f32.mrf.mxu3 }
 0x4f8   : > { %v957_v31 = vadd.f32 %v956_v29, %v3502_v41 }
 0x4fa   : > { %v965_v33 = vsel %vm837_vm14, %v957_v31, -inf }
 0x4fb   : > { %966 = vmax.xlane.f32.xlu0 %v965_v33 }
 0x4ff   : > { %v959_v35 = vpop.f32.mrf.mxu3 }
 0x500   : > { %v960_v36 = vadd.f32 %v959_v35, %v3502_v41 }
 0x502   : > { %v968_v37 = vsel %vm837_vm14, %v960_v36, -inf }
 0x503   : > { %969 = vmax.xlane.f32.xlu1 %v968_v37 }
 0x507   : > { %v962_v38 = vpop.f32.mrf.mxu3 }
 0x508   : > { %v963_v39 = vadd.f32 %v962_v38, %v3502_v41 }
 0x50a   : > { %v971_v40 = vsel %vm837_vm14, %v963_v39, -inf }
 0x50b   : > { %972 = vmax.xlane.f32.xlu2 %v971_v40 }
 0x51c   : > { %2984 = vrot.lane.b32.xlu1 %v3514_v51, %s4222_s21 }
 0x524   : > { %1122 = vrot.lane.b32.xlu1 %v3489_v34, %s4232_s18 }
 0x52c   : > { %1120 = vrot.lane.b32.xlu1 %v3485_v32, %s4232_s18 }
 0x534   : > { %1277 = vrot.lane.b32.xlu1 %v3481_v30, %s4224_s28 }
 0x53c   : > { %1279 = vrot.lane.b32.xlu1 %v3485_v32, %s4224_s28 }
 0x544   : > { %1116 = vrot.lane.b32.xlu1 %v3489_v34, %s4226_s22 }
 0x56e   : > { %v967_v42 = vpop.xlane.xlu0 %966 }
 0x56f   : > { %v974_v43 = vsub.f32 %v957_v31, %v967_v42 }
 0x571   : > { %v977_v44 = vmul.f32 1.442695, %v974_v43 }
 0x573   : > { %3054 = vpow2.f32 %v977_v44 }
 0x576   : > { %v970_v45 = vpop.xlane.xlu1 %969 }
 0x577   : > { %v975_v46 = vsub.f32 %v960_v36, %v970_v45 }
 0x579   : > { %v3055_v47 = vpop.eup %3054  ;;  %v979_v48 = vmul.f32 1.442695, %v975_v46 }
 0x57a   : > { %v983_v49 = vsel %vm837_vm14, %v3055_v47, 0.0 }
 0x57b   : > { %3056 = vpow2.f32 %v979_v48  ;;  %984 = vadd.xlane.f32.xlu0 %v983_v49 }
 0x57e   : > { %v973_v50 = vpop.xlane.xlu2 %972 }
 0x57f   : > { %v976_v52 = vsub.f32 %v963_v39, %v973_v50 }
 0x581   : > { %v3057_v53 = vpop.eup %3056  ;;  %v981_v54 = vmul.f32 1.442695, %v976_v52 }
 0x582   : > { %v986_v55 = vsel %vm837_vm14, %v3057_v53, 0.0 }
 0x583   : > { %3058 = vpow2.f32 %v981_v54  ;;  %987 = vadd.xlane.f32.xlu2 %v986_v55 }
 0x589   : > { %v3059_v56 = vpop.eup %3058 }
 0x58a   : > { %v989_v57 = vsel %vm837_vm14, %v3059_v56, 0.0 }
 0x58b   : > { %990 = vadd.xlane.f32.xlu2 %v989_v57 }
 0x58e   : > { %v2985_v58 = vpop.permute.xlu1 %2984 }
 0x58f   : > { %998 = vrot.lane.b32.xlu0 %v3481_v30, %s4222_s21  ;;  %v2986_v59 = vunpack.i.l.bf16 %v2985_v58  ;;  %v2987_v60 = vunpack.i.h.bf16 %v2985_v58  ;;  %s4228_s21 = smov 48  }
 0x591   : > { %1029 = vmatpush.msrb.mxu1 %v2986_v59 }
 0x593   : > { %1030 = vmatpush.msrb.mxu1 %v2987_v60 }
 0x596   : > { %v1123_v61 = vpop.permute.xlu1 %1122 }
 0x597   : > { %2805 = vmatpush.xpose.msk.msra.mxu3 %vm798_vm12, %v1123_v61  ;;  %1285 = vrot.lane.b32.xlu0 %v3485_v32, %s4234_s23 }
 0x59e   : > { %v1121_v62 = vpop.permute.xlu1 %1120 }
 0x59f   : > { %2806 = vmatpush.xpose.msk.msra.mxu3 %vm798_vm12, %v1121_v62  ;;  %1283 = vrot.lane.b32.xlu0 %v3481_v30, %s4234_s23 }
 0x5a3   : > { %1287 = vrot.lane.b32.xlu2 %v3489_v34, %s4234_s23  ;;  %s4274_s23 = smov 104  }
 0x5a6   : > { %v1278_v10 = vpop.permute.xlu1 %1277 }
 0x5a7   : > { %1118 = vrot.lane.b32.xlu0 %v3481_v30, %s4232_s18  ;;  %s4273_s18 = smov 112  }
 0x5ab   : > { %1112 = vrot.lane.b32.xlu2 %v3481_v30, %s4226_s22 }
 0x5ae   : > { %v1280_v14 = vpop.permute.xlu1 %1279 }
 0x5af   : > { %1114 = vrot.lane.b32.xlu0 %v3485_v32, %s4226_s22 }
 0x5b3   : > { %1281 = vrot.lane.b32.xlu2 %v3489_v34, %s4224_s28  ;;  %s4230_s28 = smov 40  }
 0x5b6   : > { %v1117_v17 = vpop.permute.xlu1 %1116 }
 0x5ee   : > { %v985_v63 = vpop.xlane.xlu0 %984 }
 0x5ef   : > { %3060 = vrcp.f32 %v985_v63 }
 0x5f5   : > { %v3061_v1 = vpop.eup %3060 }
 0x5f6   : > { %v988_v0 = vpop.xlane.xlu2 %987  ;;  %v995_v3 = vmul.f32 %v3061_v1, %v3055_v47 }
 0x5f7   : > { %3062 = vrcp.f32 %v988_v0 }
 0x5fd   : > { %v3063_v5 = vpop.eup %3062 }
 0x5fe   : > { %v991_v4 = vpop.xlane.xlu2 %990  ;;  %v996_v7 = vmul.f32 %v3063_v5, %v3057_v53 }
 0x5ff   : > { %3064 = vrcp.f32 %v991_v4 }
 0x601   : > { %v999_v2 = vpop.permute.xlu0 %998 }
 0x602   : > { %1031 = vmatpush.msrb.mxu1 %v999_v2 }
 0x603   : > { %2796 = vmatmul.msk.f32.vlgmr.msrb.gmra.mxu1 %vm837_vm14, %v995_v3 }
 0x605   : > { %v3065_v32 = vpop.eup %3064 }
 0x606   : > { %v997_v34 = vmul.f32 %v3065_v32, %v3059_v56  ;;  %v1288_v9 = vpop.permute.xlu2 %1287 }
 0x609   : > { %v1286_v6 = vpop.permute.xlu0 %1285 }
 0x60b   : > { %2797 = vmatmul.msk.f32.gmra.mxu1 %vm837_vm14, %v996_v7 }
 0x60e   : > { %v1113_v13 = vpop.permute.xlu2 %1112 }
 0x611   : > { %v1284_v8 = vpop.permute.xlu0 %1283 }
 0x613   : > { %2798 = vmatmul.msk.f32.gmra.mxu1 %vm837_vm14, %v997_v34 }
 0x619   : > { %v1119_v12 = vpop.permute.xlu0 %1118 }
 0x61a   : > { %2807 = vmatpush.xpose.msk.msra.mxu3 %vm798_vm12, %v1119_v12 }
 0x61d   : > { %2808 = vmatmul.msk.f32.vlgmr.msra.gmra.mxu3 %vm798_vm12, %v1113_v13 }
 0x621   : > { %v1115_v16 = vpop.permute.xlu0 %1114 }
 0x625   : > { %2809 = vmatmul.msk.f32.gmra.mxu3 %vm798_vm12, %v1115_v16 }
 0x62d   : > { %2810 = vmatmul.msk.f32.gmra.mxu3 %vm798_vm12, %v1117_v17 }
 0x680   : > { %v1033_v21 = vpop.f32.mrf.mxu1 }
 0x681   : > { %2799 = vmatmul.msk.f32.vlgmr.msrb.gmra.mxu0 %vm798_vm12, %v1033_v21 }
 0x688   : > { %v1036_v22 = vpop.f32.mrf.mxu1 }
 0x689   : > { %2800 = vmatmul.msk.f32.gmra.mxu0 %vm798_vm12, %v1036_v22 }
 0x690   : > { %v1039_v23 = vpop.f32.mrf.mxu1 }
 0x691   : > { %2801 = vmatmul.msk.f32.vlgmr.msrb.gmra.mxu2 %vm798_vm12, %v1039_v23 }
 0x692   : > { %2817 = vmatpush.xpose.msk.msrb.mxu2 %vm798_vm12, %v1288_v9 }
 0x696   : > { %2818 = vmatpush.xpose.msk.msrb.mxu2 %vm798_vm12, %v1286_v6 }
 0x699   : > { %2802 = vmatmul.msk.f32.vlgmr.msra.gmra.mxu2 %vm798_vm12, %v3542_v25 }
 0x69a   : > { %2819 = vmatpush.xpose.msk.msrb.mxu2 %vm798_vm12, %v1284_v8 }
 0x6a0   : > { %v1153_v24 = vpop.f32.mrf.mxu3 }
 0x6a1   : > { %v1154_v29 = vadd.f32 %v1153_v24, %v3502_v41  ;;  %2803 = vmatmul.msk.f32.gmra.mxu2 %vm798_vm12, %v3544_v26  ;;  %v1282_v26 = vpop.permute.xlu2 %1281 }
 0x6a3   : > { %v1162_v31 = vsel %vm837_vm14, %v1154_v29, -inf }
 0x6a4   : > { %1163 = vmax.xlane.f32.xlu2 %v1162_v31 }
 0x6a8   : > { %v1156_v33 = vpop.f32.mrf.mxu3 }
 0x6a9   : > { %v1157_v35 = vadd.f32 %v1156_v33, %v3502_v41  ;;  %2804 = vmatmul.msk.f32.gmra.mxu2 %vm798_vm12, %v3546_v28 }
 0x6ab   : > { %v1165_v36 = vsel %vm837_vm14, %v1157_v35, -inf }
 0x6ac   : > { %1166 = vmax.xlane.f32.xlu0 %v1165_v36 }
 0x6b0   : > { %v1159_v25 = vpop.f32.mrf.mxu3 }
 0x6b1   : > { %v1160_v37 = vadd.f32 %v1159_v25, %v3502_v41  ;;  %2820 = vmatmul.msk.f32.vlgmr.msrb.gmra.mxu2 %vm798_vm12, %v1278_v10 }
 0x6b3   : > { %v1168_v38 = vsel %vm837_vm14, %v1160_v37, -inf }
 0x6b4   : > { %1169 = vmax.xlane.f32.xlu1 %v1168_v38 }
 0x6b9   : > { %2821 = vmatmul.msk.f32.gmra.mxu2 %vm798_vm12, %v1280_v14 }
 0x6c1   : > { %2822 = vmatmul.msk.f32.gmra.mxu2 %vm798_vm12, %v1282_v26 }
 0x714   : > { %v1074_v39 = vpop.f32.mrf.mxu2 }
 0x717   : > { %v1164_v40 = vpop.xlane.xlu2 %1163 }
 0x718   : > { %v1171_v42 = vsub.f32 %v1154_v29, %v1164_v40 }
 0x71a   : > { %v1174_v28 = vmul.f32 1.442695, %v1171_v42 }
 0x71c   : > { %3066 = vpow2.f32 %v1174_v28  ;;  %v3621_v43 = vpop.f32.mrf.mxu2 }
 0x71f   : > { %v1167_v59 = vpop.xlane.xlu0 %1166 }
 0x720   : > { %v1172_v60 = vsub.f32 %v1157_v35, %v1167_v59 }
 0x722   : > { %v3623_v44 = vpop.eup %3066  ;;  %v1176_v61 = vmul.f32 1.442695, %v1172_v60 }
 0x723   : > { %v1180_v45 = vsel %vm837_vm14, %v3623_v44, 0.0 }
 0x724   : > { %v3627_v46 = vpop.f32.mrf.mxu2  ;;  %1181 = vadd.xlane.f32.xlu2 %v1180_v45  ;;  %3068 = vpow2.f32 %v1176_v61 }
 0x727   : > { %v1170_v0 = vpop.xlane.xlu1 %1169 }
 0x728   : > { %v1173_v1 = vsub.f32 %v1160_v37, %v1170_v0 }
 0x72a   : > { %v3069_v62 = vpop.eup %3068  ;;  %v1178_v2 = vmul.f32 1.442695, %v1173_v1 }
 0x72b   : > { %v1183_v63 = vsel %vm837_vm14, %v3069_v62, 0.0 }
 0x72c   : > { %v1109_v47 = vpop.f32.mrf.mxu2  ;;  %3070 = vpow2.f32 %v1178_v2 }
 0x72d   : > { %v3629_v48 = vadd.f32 %v1109_v47, %v1074_v39 }
 0x732   : > { %v3071_v5 = vpop.eup %3070 }
 0x733   : > { %v1186_v7 = vsel %vm837_vm14, %v3071_v5, 0.0 }
 0x734   : > { %v1318_v49 = vpop.f32.mrf.mxu2 }
 0x735   : > { %v1319_v50 = vadd.f32 %v1318_v49, %v3502_v41 }
 0x737   : > { %v1327_v52 = vsel %vm837_vm14, %v1319_v50, -inf }
 0x738   : > { %1328 = vmax.xlane.f32.xlu0 %v1327_v52 }
 0x73c   : > { %v1321_v53 = vpop.f32.mrf.mxu2  ;;  %2994 = vrot.lane.b32.xlu2 %v3514_v51, %s4228_s21 }
 0x73d   : > { %v1322_v54 = vadd.f32 %v1321_v53, %v3502_v41 }
 0x73f   : > { %v1330_v55 = vsel %vm837_vm14, %v1322_v54, -inf }
 0x740   : > { %1331 = vmax.xlane.f32.xlu1 %v1330_v55 }
 0x744   : > { %v1324_v56 = vpop.f32.mrf.mxu2 }
 0x745   : > { %v1325_v57 = vadd.f32 %v1324_v56, %v3502_v41 }
 0x747   : > { %v1333_v58 = vsel %vm837_vm14, %v1325_v57, -inf }
 0x74c   : > { %1360 = vrot.lane.b32.xlu0 %v3481_v30, %s4230_s28 }
 0x759   : > { %2989 = vrot.lane.b32.xlu1 %v3514_v51, %s4230_s28  ;;  %s4268_s28 = smov 64  }
 0x765   : > { %1334 = vmax.xlane.f32.xlu2 %v1333_v58 }
 0x77d   : > { %1195 = vrot.lane.b32.xlu2 %v3481_v30, %s4228_s21  ;;  %s4267_s21 = smov 96  }
 0x783   : > { %1184 = vadd.xlane.f32.xlu1 %v1183_v63 }
 0x797   : > { %v1182_v51 = vpop.xlane.xlu2 %1181 }
 0x79f   : > { %v2995_v3 = vpop.permute.xlu2 %2994 }
 0x7a0   : > { %v2996_v4 = vunpack.i.l.bf16 %v2995_v3  ;;  %v2997_v6 = vunpack.i.h.bf16 %v2995_v3 }
 0x7a2   : > { %1226 = vmatpush.msra.mxu1 %v2996_v4  ;;  %v3021_v4 = vld [vmem:[%s4201_s8] ss:$0 sm:$0xff] }
 0x7a4   : > { %1227 = vmatpush.msra.mxu1 %v2997_v6 }
 0x7a6   : > { %1187 = vadd.xlane.f32.xlu2 %v1186_v7 }
 0x7ab   : > { %v1329_v32 = vpop.xlane.xlu0 %1328 }
 0x7ac   : > { %v1336_v30 = vsub.f32 %v1319_v50, %v1329_v32  ;;  %v787_v50 = vld [vmem:[%s4200_s7 + $0x10] sm:$0xff] }
 0x7ad   : > { %1263 = vmatpush.msra.mxu0 %v787_v50 }
 0x7ae   : > { %v1339_v8 = vmul.f32 1.442695, %v1336_v30 }
 0x7b0   : > { %3072 = vpow2.f32 %v1339_v8 }
 0x7b3   : > { %v1332_v34 = vpop.xlane.xlu1 %1331 }
 0x7b4   : > { %v1337_v9 = vsub.f32 %v1322_v54, %v1332_v34 }
 0x7b6   : > { %v3073_v10 = vpop.eup %3072  ;;  %v1341_v12 = vmul.f32 1.442695, %v1337_v9 }
 0x7b7   : > { %v1345_v13 = vsel %vm837_vm14, %v3073_v10, 0.0 }
 0x7b8   : > { %3074 = vpow2.f32 %v1341_v12  ;;  %1346 = vadd.xlane.f32.xlu0 %v1345_v13 }
 0x7b9   : > { %3076 = vrcp.f32 %v1182_v51 }
 0x7be   : > { %v3075_v14 = vpop.eup %3074  ;;  %v1361_v21 = vpop.permute.xlu0 %1360 }
 0x7bf   : > { %v1348_v16 = vsel %vm837_vm14, %v3075_v14, 0.0  ;;  %v3077_v29 = vpop.eup %3076 }
 0x7c0   : > { %1349 = vadd.xlane.f32.xlu0 %v1348_v16  ;;  %v1192_v31 = vmul.f32 %v3077_v29, %v3623_v44 }
 0x7cb   : > { %v2990_v17 = vpop.permute.xlu1 %2989 }
 0x7cc   : > { %v2991_v18 = vunpack.i.l.bf16 %v2990_v17  ;;  %v2992_v20 = vunpack.i.h.bf16 %v2990_v17 }
 0x7ce   : > { %1391 = vmatpush.msrb.mxu3 %v2991_v18 }
 0x7d0   : > { %1392 = vmatpush.msrb.mxu3 %v2992_v20 }
 0x7d2   : > { %1393 = vmatpush.msrb.mxu3 %v1361_v21 }
 0x7d8   : > { %v1335_v22 = vpop.xlane.xlu2 %1334 }
 0x7d9   : > { %v1338_v23 = vsub.f32 %v1325_v57, %v1335_v22  ;;  %v788_v57 = vld [vmem:[%s4200_s7 + $0x18] sm:$0xff] }
 0x7db   : > { %v1343_v24 = vmul.f32 1.442695, %v1338_v23 }
 0x7dd   : > { %3078 = vpow2.f32 %v1343_v24 }
 0x7e0   : > { %v1196_v33 = vpop.permute.xlu2 %1195 }
 0x7e1   : > { %1228 = vmatpush.msra.mxu1 %v1196_v33 }
 0x7e2   : > { %2811 = vmatmul.msk.f32.vlgmr.msra.gmra.mxu1 %vm837_vm14, %v1192_v31 }
 0x7e3   : > { %v3079_v35 = vpop.eup %3078  ;;  %1428 = vmatpush.msrb.mxu1 %v788_v57 }
 0x7e4   : > { %v1351_v36 = vsel %vm837_vm14, %v3079_v35, 0.0 }
 0x7e5   : > { %1352 = vadd.xlane.f32.xlu0 %v1351_v36 }
 0x7f6   : > { %v1185_v25 = vpop.xlane.xlu1 %1184 }
 0x7f7   : > { %3080 = vrcp.f32 %v1185_v25 }
 0x7fd   : > { %v3081_v37 = vpop.eup %3080 }
 0x7fe   : > { %v1193_v38 = vmul.f32 %v3081_v37, %v3069_v62  ;;  %v1068_v62 = vpop.f32.mrf.mxu0 }
 0x7ff   : > { %v1104_v1 = vadd.f32 %v3621_v43, %v1068_v62 }
 0x800   : > { %2812 = vmatmul.msk.f32.gmra.mxu1 %vm837_vm14, %v1193_v38  ;;  %v1535_v38 = vld [vmem:[%s4204_s11 + $0x18] sm:$0xff] }
 0x801   : > { %1561 = vmatpush.msrb.mxu0 %v1535_v38  ;;  %v1603_v38 = vld [vmem:[%s4206_s13 + $0x8] sm:$0xff] }
 0x806   : > { %v1071_v63 = vpop.f32.mrf.mxu0 }
 0x807   : > { %v1107_v7 = vadd.f32 %v3627_v46, %v1071_v63  ;;  %v3023_v63 = vld [vmem:[%s4203_s10] ss:$0 sm:$0xff] }
 0x819   : > { %v1188_v26 = vpop.xlane.xlu2 %1187 }
 0x81a   : > { %3082 = vrcp.f32 %v1188_v26  ;;  %v1534_v26 = vld [vmem:[%s4204_s11 + $0x10] sm:$0xff] }
 0x81b   : > { %1562 = vmatpush.msrb.mxu0 %v1534_v26  ;;  %v1602_v26 = vld [vmem:[%s4206_s13] sm:$0xff] }
 0x820   : > { %v3083_v39 = vpop.eup %3082 }
 0x821   : > { %v1194_v40 = vmul.f32 %v3083_v39, %v3071_v5  ;;  %v1533_v39 = vld [vmem:[%s4204_s11 + $0x8] sm:$0xff] }
 0x822   : > { %1563 = vmatpush.msrb.mxu0 %v1533_v39  ;;  %v3024_v39 = vld [vmem:[%s4205_s12] ss:$0 sm:$0xff] }
 0x823   : > { %2813 = vmatmul.msk.f32.gmra.mxu1 %vm837_vm14, %v1194_v40  ;;  %v1532_v40 = vld [vmem:[%s4204_s11] sm:$0xff] }
 0x824   : > { %1564 = vmatpush.msrb.mxu0 %v1532_v40 }
 0x82b   : > { %v1347_v42 = vpop.xlane.xlu0 %1346 }
 0x82c   : > { %3084 = vrcp.f32 %v1347_v42 }
 0x832   : > { %v3085_v28 = vpop.eup %3084 }
 0x833   : > { %v1357_v44 = vmul.f32 %v3085_v28, %v3073_v10  ;;  %v1350_v45 = vpop.xlane.xlu0 %1349 }
 0x834   : > { %3086 = vrcp.f32 %v1350_v45 }
 0x835   : > { %2823 = vmatmul.msk.f32.vlgmr.msrb.gmra.mxu3 %vm837_vm14, %v1357_v44 }
 0x83a   : > { %v3087_v47 = vpop.eup %3086 }
 0x83b   : > { %v1358_v49 = vmul.f32 %v3087_v47, %v3075_v14 }
 0x83d   : > { %2824 = vmatmul.msk.f32.gmra.mxu3 %vm837_vm14, %v1358_v49 }
 0x858   : > { %v1353_v52 = vpop.xlane.xlu0 %1352 }
 0x859   : > { %3088 = vrcp.f32 %v1353_v52 }
 0x85f   : > { %v3089_v53 = vpop.eup %3088  ;;  %v1230_v54 = vpop.f32.mrf.mxu1 }
 0x860   : > { %2814 = vmatmul.msk.f32.vlgmr.msra.gmra.mxu0 %vm798_vm12, %v1230_v54  ;;  %v1359_v55 = vmul.f32 %v3089_v53, %v3079_v35 }
 0x862   : > { %2825 = vmatmul.msk.f32.gmra.mxu3 %vm837_vm14, %v1359_v55 }
 0x87d   : > { %v1233_v56 = vpop.f32.mrf.mxu1 }
 0x87e   : > { %2815 = vmatmul.msk.f32.gmra.mxu0 %vm798_vm12, %v1233_v56 }
 0x8a0   : > { %v1236_v58 = vpop.f32.mrf.mxu1 }
 0x8a1   : > { %2816 = vmatmul.msk.f32.gmra.mxu0 %vm798_vm12, %v1236_v58 }
 0x8b8   : > { %v1395_v59 = vpop.f32.mrf.mxu3 }
 0x8b9   : > { %2826 = vmatmul.msk.f32.vlgmr.msrb.gmra.mxu1 %vm798_vm12, %v1395_v59  ;;  %v3022_v59 = vld [vmem:[%s4202_s9] ss:$0 sm:$0xff] }
 0x8c0   : > { %v1398_v60 = vpop.f32.mrf.mxu3 }
 0x8c1   : > { %2827 = vmatmul.msk.f32.gmra.mxu1 %vm798_vm12, %v1398_v60 }
 0x8dd   : > { %v1265_v0 = vpop.f32.mrf.mxu0 }
 0x8de   : > { %v1274_v51 = vadd.f32 %v1265_v0, %v1104_v1 }
 0x8e5   : > { %v1401_v61 = vpop.f32.mrf.mxu3 }
 0x8e6   : > { %2828 = vmatmul.msk.f32.gmra.mxu1 %vm798_vm12, %v1401_v61 }
 0x8fb   : > { %v1268_v6 = vpop.f32.mrf.mxu0 }
 0x8fc   : > { %v1275_v30 = vadd.f32 %v1268_v6, %v1107_v7 }
 0x936   : > { %v1430_v2 = vpop.f32.mrf.mxu1 }
 0x937   : > { %v1439_v3 = vadd.f32 %v1430_v2, %v1274_v51 }
 0x939   : > { %v1442_v5 = vadd.f32 %v1439_v3, %v3420_v11  ;;  %v1271_v11 = vpop.f32.mrf.mxu0 }
 0x93a   : > { %v1276_v46 = vadd.f32 %v1271_v11, %v3629_v48 }
 0x93b   : > { %v3675_v32 = vadd.f32 %v3021_v4, %v1442_v5 }
 0x93d   : > { %v1454_v8 = vsel %vm656_vm1, %v3675_v32, 0.0 }
 0x93e   : > { %1455 = vadd.xlane.f32.xlu1 %v1454_v8  ;;  %v1433_v43 = vpop.f32.mrf.mxu1  ;;  %v1616_v8 = vld [vmem:[%s4206_s13 + $0x70] sm:$0xff] }
 0x93f   : > { %v1440_v34 = vadd.f32 %v1433_v43, %v1275_v30  ;;  %v1617_v30 = vld [vmem:[%s4206_s13 + $0x78] sm:$0xff]  ;;  %v1615_v43 = vld [vmem:[%s4206_s13 + $0x68] sm:$0xff] }
 0x940   : > { %1622 = vmatpush.msra.mxu2 %v1617_v30 }
 0x941   : > { %v1443_v9 = vadd.f32 %v1440_v34, %v3427_v15 }
 0x942   : > { %1623 = vmatpush.msra.mxu2 %v1616_v8 }
 0x943   : > { %v3680_v10 = vadd.f32 %v3021_v4, %v1443_v9 }
 0x944   : > { %1624 = vmatpush.msra.mxu2 %v1615_v43 }
 0x945   : > { %v1457_v12 = vsel %vm656_vm1, %v3680_v10, 0.0 }
 0x946   : > { %1458 = vadd.xlane.f32.xlu0 %v1457_v12 }
 0x963   : > { %v1436_v13 = vpop.f32.mrf.mxu1 }
 0x964   : > { %v1441_v14 = vadd.f32 %v1436_v13, %v1276_v46 }
 0x966   : > { %v1444_v16 = vadd.f32 %v1441_v14, %v3434_v19 }
 0x968   : > { %v3686_v17 = vadd.f32 %v3021_v4, %v1444_v16 }
 0x96a   : > { %v1460_v18 = vsel %vm656_vm1, %v3686_v17, 0.0 }
 0x96b   : > { %1461 = vadd.xlane.f32.xlu1 %v1460_v18 }
 0x9b1   : > { %v1456_v15 = vpop.xlane.xlu1 %1455 }
 0x9b2   : > { %v1463_v20 = vmul.f32 %v1456_v15, %v3438_v27 }
 0x9b4   : > { %v1466_v21 = vsub.f32 %v3675_v32, %v1463_v20 }
 0x9b6   : > { %v1469_v22 = vmul.f32 %v1466_v21, %v1466_v21 }
 0x9b8   : > { %v1472_v23 = vsel %vm656_vm1, %v1469_v22, 0.0 }
 0x9b9   : > { %1473 = vadd.xlane.f32.xlu2 %v1472_v23  ;;  %v1459_v48 = vpop.xlane.xlu0 %1458  ;;  %v1614_v23 = vld [vmem:[%s4206_s13 + $0x60] sm:$0xff] }
 0x9ba   : > { %v1464_v24 = vmul.f32 %v1459_v48, %v3438_v27  ;;  %1625 = vmatpush.msra.mxu2 %v1614_v23  ;;  %v1613_v48 = vld [vmem:[%s4206_s13 + $0x58] sm:$0xff] }
 0x9bc   : > { %v1467_v19 = vsub.f32 %v3680_v10, %v1464_v24  ;;  %1626 = vmatpush.msra.mxu2 %v1613_v48  ;;  %v1612_v24 = vld [vmem:[%s4206_s13 + $0x50] sm:$0xff] }
 0x9be   : > { %v1470_v29 = vmul.f32 %v1467_v19, %v1467_v19  ;;  %1627 = vmatpush.msra.mxu2 %v1612_v24 }
 0x9c0   : > { %v1475_v31 = vsel %vm656_vm1, %v1470_v29, 0.0  ;;  %v1610_v29 = vld [vmem:[%s4206_s13 + $0x40] sm:$0xff] }
 0x9c1   : > { %1476 = vadd.xlane.f32.xlu0 %v1475_v31  ;;  %v1609_v31 = vld [vmem:[%s4206_s13 + $0x38] sm:$0xff] }
 0x9de   : > { %v1462_v33 = vpop.xlane.xlu1 %1461 }
 0x9df   : > { %v1465_v35 = vmul.f32 %v1462_v33, %v3438_v27  ;;  %v1608_v33 = vld [vmem:[%s4206_s13 + $0x30] sm:$0xff] }
 0x9e1   : > { %v3698_v36 = vsub.f32 %v3686_v17, %v1465_v35  ;;  %v1607_v35 = vld [vmem:[%s4206_s13 + $0x28] sm:$0xff] }
 0x9e3   : > { %v1471_v25 = vmul.f32 %v3698_v36, %v3698_v36 }
 0x9e5   : > { %v1478_v37 = vsel %vm656_vm1, %v1471_v25, 0.0  ;;  %v1605_v25 = vld [vmem:[%s4206_s13 + $0x18] sm:$0xff] }
 0x9e6   : > { %1479 = vadd.xlane.f32.xlu1 %v1478_v37  ;;  %v1604_v37 = vld [vmem:[%s4206_s13 + $0x10] sm:$0xff] }
 0xa2c   : > { %v1474_v42 = vpop.xlane.xlu2 %1473 }
 0xa2d   : > { %v1481_v28 = vmul.f32 %v1474_v42, %v3438_v27 }
 0xa2f   : > { %v1484_v44 = vadd.f32 1e-05, %v1481_v28 }
 0xa31   : > { %3090 = vrsqrt.f32 %v1484_v44  ;;  %vm1493_vm0 = vweird.f32 %v1484_v44 }
 0xa34   : > { %v1477_v45 = vpop.xlane.xlu0 %1476 }
 0xa35   : > { %v1482_v47 = vmul.f32 %v1477_v45, %v3438_v27 }
 0xa37   : > { %v3091_v49 = vpop.eup %3090  ;;  %v1485_v50 = vadd.f32 1e-05, %v1482_v47 }
 0xa38   : > { %v1488_v52 = vmul.f32 %v3091_v49, %v1484_v44  ;;  %vm1494_vm15 = vweird.f32 %v3091_v49 }
 0xa39   : > { %3092 = vrsqrt.f32 %v1485_v50  ;;  %vm1495_vm2 = vmor %vm1493_vm0, %vm1494_vm15  ;;  %vm1503_vm4 = vweird.f32 %v1485_v50 }
 0xa3a   : > { %v1489_v53 = vmul.f32 %v3091_v49, %v1488_v52 }
 0xa3c   : > { %v1490_v54 = vmul.f32 0.5, %v1489_v53 }
 0xa3e   : > { %v1491_v55 = vsub.f32 1.5, %v1490_v54 }
 0xa3f   : > { %v3093_v56 = vpop.eup %3092 }
 0xa40   : > { %v1492_v57 = vmul.f32 %v3091_v49, %v1491_v55  ;;  %v1498_v58 = vmul.f32 %v3093_v56, %v1485_v50  ;;  %vm1504_vm3 = vweird.f32 %v3093_v56 }
 0xa41   : > { %vm1505_vm5 = vmor %vm1503_vm4, %vm1504_vm3 }
 0xa42   : > { %v1496_v60 = vsel %vm1495_vm2, %v3091_v49, %v1492_v57  ;;  %v1499_v61 = vmul.f32 %v3093_v56, %v1498_v58 }
 0xa43   : > { %v1517_v62 = vmul.f32 %v1496_v60, %v1466_v21 }
 0xa44   : > { %v1500_v0 = vmul.f32 0.5, %v1499_v61 }
 0xa45   : > { %v1523_v1 = vmul.f32 %v3022_v59, %v1517_v62 }
 0xa46   : > { %v1501_v51 = vsub.f32 1.5, %v1500_v0 }
 0xa47   : > { %v1529_v2 = vadd.f32 %v3023_v63, %v1523_v1 }
 0xa48   : > { %v1502_v3 = vmul.f32 %v3093_v56, %v1501_v51 }
 0xa49   : > { %2829 = vmatmul.msk.f32.vlgmr.msrb.gmra.mxu0 %vm656_vm1, %v1529_v2 }
 0xa4a   : > { %v1506_v4 = vsel %vm1505_vm5, %v3093_v56, %v1502_v3 }
 0xa4b   : > { %v1518_v5 = vmul.f32 %v1506_v4, %v1467_v19  ;;  %v1611_v19 = vld [vmem:[%s4206_s13 + $0x48] sm:$0xff] }
 0xa4c   : > { %1628 = vmatpush.msra.mxu2 %v1611_v19 }
 0xa4d   : > { %v1524_v6 = vmul.f32 %v3022_v59, %v1518_v5 }
 0xa4e   : > { %1629 = vmatpush.msra.mxu2 %v1610_v29 }
 0xa4f   : > { %v1530_v7 = vadd.f32 %v3023_v63, %v1524_v6 }
 0xa50   : > { %1630 = vmatpush.msra.mxu2 %v1609_v31 }
 0xa51   : > { %2830 = vmatmul.msk.f32.gmra.mxu0 %vm656_vm1, %v1530_v7 }
 0xa52   : > { %1631 = vmatpush.msra.mxu2 %v1608_v33 }
 0xa54   : > { %1632 = vmatpush.msra.mxu2 %v1607_v35 }
 0xa59   : > { %v1480_v34 = vpop.xlane.xlu1 %1479 }
 0xa5a   : > { %v1483_v9 = vmul.f32 %v1480_v34, %v3438_v27 }
 0xa5c   : > { %v1486_v12 = vadd.f32 1e-05, %v1483_v9  ;;  %v3025_v9 = vld [vmem:[%s4207_s14] ss:$0 sm:$0xff] }
 0xa5e   : > { %3094 = vrsqrt.f32 %v1486_v12  ;;  %vm1513_vm7 = vweird.f32 %v1486_v12 }
 0xa64   : > { %v3095_v11 = vpop.eup %3094 }
 0xa65   : > { %v1508_v46 = vmul.f32 %v3095_v11, %v1486_v12  ;;  %vm1514_vm6 = vweird.f32 %v3095_v11 }
 0xa66   : > { %vm1515_vm8 = vmor %vm1513_vm7, %vm1514_vm6 }
 0xa67   : > { %v1509_v13 = vmul.f32 %v3095_v11, %v1508_v46 }
 0xa69   : > { %v1510_v14 = vmul.f32 0.5, %v1509_v13 }
 0xa6b   : > { %v1511_v16 = vsub.f32 1.5, %v1510_v14 }
 0xa6d   : > { %v1512_v18 = vmul.f32 %v3095_v11, %v1511_v16 }
 0xa6f   : > { %v1516_v15 = vsel %vm1515_vm8, %v3095_v11, %v1512_v18 }
 0xa70   : > { %v1519_v20 = vmul.f32 %v1516_v15, %v3698_v36  ;;  %v1606_v36 = vld [vmem:[%s4206_s13 + $0x20] sm:$0xff] }
 0xa71   : > { %1633 = vmatpush.msra.mxu2 %v1606_v36 }
 0xa72   : > { %v1525_v21 = vmul.f32 %v3022_v59, %v1519_v20 }
 0xa73   : > { %1634 = vmatpush.msra.mxu2 %v1605_v25 }
 0xa74   : > { %v1531_v22 = vadd.f32 %v3023_v63, %v1525_v21 }
 0xa75   : > { %1635 = vmatpush.msra.mxu2 %v1604_v37 }
 0xa76   : > { %2831 = vmatmul.msk.f32.gmra.mxu0 %vm656_vm1, %v1531_v22 }
 0xa77   : > { %1636 = vmatpush.msra.mxu2 %v1603_v38 }
 0xa79   : > { %1637 = vmatpush.msra.mxu2 %v1602_v26 }
 0xac6   : > { %v1566_v40 = vpop.f32.mrf.mxu0 }
 0xac7   : > { %v1567_v42 = vadd.f32 %v3024_v39, %v1566_v40  ;;  %v2836_v40 = vld [vmem:[%s4263_s5 + $0x30] sm:$0xff] }
 0xac9   : > { %v1575_v28 = vmul.f32 %v1567_v42, %v1567_v42 }
 0xacb   : > { %v1578_v44 = vmul.f32 %v1575_v28, %v1567_v42  ;;  %v2834_v28 = vld [vmem:[%s4263_s5 + $0x20] sm:$0xff] }
 0xacd   : > { %v1581_v45 = vmul.f32 0.044715, %v1578_v44 }
 0xace   : > { %v1569_v47 = vpop.f32.mrf.mxu0 }
 0xacf   : > { %v1584_v49 = vadd.f32 %v1581_v45, %v1567_v42  ;;  %v1570_v50 = vadd.f32 %v3024_v39, %v1569_v47 }
 0xad1   : > { %v1587_v52 = vmul.f32 0.7978846, %v1584_v49  ;;  %v1576_v53 = vmul.f32 %v1570_v50, %v1570_v50 }
 0xad3   : > { %3096 = vtanh.f32 %v1587_v52  ;;  %v1579_v54 = vmul.f32 %v1576_v53, %v1570_v50 }
 0xad5   : > { %v1582_v55 = vmul.f32 0.044715, %v1579_v54 }
 0xad7   : > { %v1585_v56 = vadd.f32 %v1582_v55, %v1570_v50 }
 0xad9   : > { %v3097_v57 = vpop.eup %3096  ;;  %v1588_v58 = vmul.f32 0.7978846, %v1585_v56 }
 0xada   : > { %v1593_v59 = vadd.f32 1.0, %v3097_v57 }
 0xadb   : > { %3098 = vtanh.f32 %v1588_v58 }
 0xadc   : > { %v1596_v60 = vmul.f32 0.5, %v1593_v59 }
 0xade   : > { %v1599_v61 = vmul.f32 %v1596_v60, %v1567_v42  ;;  %v2835_v42 = vld [vmem:[%s4263_s5 + $0x28] sm:$0xff] }
 0xae0   : > { %1638 = vmatmul.f32.vlgmr.msra.gmra.mxu2 %v1599_v61  ;;  %v3026_v61 = vld [vmem:[%s4264_s27 + $0x1] ss:$0 sm:$0xff] }
 0xae1   : > { %v3099_v62 = vpop.eup %3098 }
 0xae2   : > { %v1594_v63 = vadd.f32 1.0, %v3099_v62 }
 0xae4   : > { %v1597_v0 = vmul.f32 0.5, %v1594_v63 }
 0xae6   : > { %v1600_v1 = vmul.f32 %v1597_v0, %v1570_v50 }
 0xae8   : > { %1641 = vmatmul.f32.gmra.mxu2 %v1600_v1  ;;  %v3027_v1 = vld [vmem:[%s4265_s4 + $0x1] ss:$0 sm:$0xff] }
 0xaf3   : > { %v1572_v51 = vpop.f32.mrf.mxu0 }
 0xaf4   : > { %v1573_v2 = vadd.f32 %v3024_v39, %v1572_v51  ;;  %v2837_v39 = vld [vmem:[%s4263_s5 + $0x38] sm:$0xff] }
 0xaf5   : > { %1764 = vmatpush.msra.mxu3 %v2837_v39 }
 0xaf6   : > { %v1577_v3 = vmul.f32 %v1573_v2, %v1573_v2 }
 0xaf7   : > { %1765 = vmatpush.msra.mxu3 %v2836_v40 }
 0xaf8   : > { %v1580_v4 = vmul.f32 %v1577_v3, %v1573_v2 }
 0xaf9   : > { %1766 = vmatpush.msra.mxu3 %v2835_v42 }
 0xafa   : > { %v1583_v5 = vmul.f32 0.044715, %v1580_v4 }
 0xafb   : > { %1767 = vmatpush.msra.mxu3 %v2834_v28 }
 0xafc   : > { %v1586_v6 = vadd.f32 %v1583_v5, %v1573_v2 }
 0xafe   : > { %v1589_v7 = vmul.f32 0.7978846, %v1586_v6 }
 0xb00   : > { %3100 = vtanh.f32 %v1589_v7 }
 0xb06   : > { %v3101_v30 = vpop.eup %3100 }
 0xb07   : > { %v1595_v8 = vadd.f32 1.0, %v3101_v30 }
 0xb09   : > { %v1598_v43 = vmul.f32 0.5, %v1595_v8 }
 0xb0b   : > { %v1601_v34 = vmul.f32 %v1598_v43, %v1573_v2 }
 0xb0d   : > { %1644 = vmatmul.f32.gmra.mxu2 %v1601_v34 }
 0xb63   : > { %v1639_v12 = vpop.f32.mrf.mxu2 }
 0xb64   : > { %v1640_v11 = vadd.f32 %v3025_v9, %v1639_v12 }
 0xb66   : > { %v3783_v46 = vadd.f32 %v1640_v11, %v3675_v32 }
 0xb68   : > { %v1655_v13 = vsel %vm656_vm1, %v3783_v46, 0.0 }
 0xb69   : > { %1656 = vadd.xlane.f32.xlu2 %v1655_v13 }
 0xb6b   : > { %v1642_v14 = vpop.f32.mrf.mxu2 }
 0xb6c   : > { %v1643_v16 = vadd.f32 %v3025_v9, %v1642_v14 }
 0xb6e   : > { %v3788_v18 = vadd.f32 %v1643_v16, %v3680_v10 }
 0xb70   : > { %v1658_v15 = vsel %vm656_vm1, %v3788_v18, 0.0 }
 0xb71   : > { %1659 = vadd.xlane.f32.xlu0 %v1658_v15 }
 0xb90   : > { %v1645_v20 = vpop.f32.mrf.mxu2 }
 0xb91   : > { %v1646_v21 = vadd.f32 %v3025_v9, %v1645_v20 }
 0xb93   : > { %v3793_v22 = vadd.f32 %v1646_v21, %v3686_v17 }
 0xb95   : > { %v1661_v32 = vsel %vm656_vm1, %v3793_v22, 0.0 }
 0xb96   : > { %1662 = vadd.xlane.f32.xlu1 %v1661_v32 }
 0xbdc   : > { %v1657_v23 = vpop.xlane.xlu2 %1656 }
 0xbdd   : > { %v1664_v48 = vmul.f32 %v1657_v23, %v3438_v27 }
 0xbdf   : > { %v1667_v24 = vsub.f32 %v3783_v46, %v1664_v48  ;;  %v3028_v48 = vld [vmem:[%s4266_s6 + $0x1] ss:$0 sm:$0xff] }
 0xbe1   : > { %v1670_v10 = vmul.f32 %v1667_v24, %v1667_v24 }
 0xbe3   : > { %v1673_v19 = vsel %vm656_vm1, %v1670_v10, 0.0 }
 0xbe4   : > { %1674 = vadd.xlane.f32.xlu2 %v1673_v19  ;;  %v1660_v29 = vpop.xlane.xlu0 %1659 }
 0xbe5   : > { %v1665_v31 = vmul.f32 %v1660_v29, %v3438_v27 }
 0xbe7   : > { %v1668_v33 = vsub.f32 %v3788_v18, %v1665_v31 }
 0xbe9   : > { %v1671_v17 = vmul.f32 %v1668_v33, %v1668_v33 }
 0xbeb   : > { %v1676_v35 = vsel %vm656_vm1, %v1671_v17, 0.0 }
 0xbec   : > { %1677 = vadd.xlane.f32.xlu0 %v1676_v35 }
 0xc09   : > { %v1663_v36 = vpop.xlane.xlu1 %1662 }
 0xc0a   : > { %v1666_v25 = vmul.f32 %v1663_v36, %v3438_v27 }
 0xc0c   : > { %v3805_v37 = vsub.f32 %v3793_v22, %v1666_v25 }
 0xc0e   : > { %v1672_v38 = vmul.f32 %v3805_v37, %v3805_v37 }
 0xc10   : > { %v1679_v26 = vsel %vm656_vm1, %v1672_v38, 0.0 }
 0xc11   : > { %1680 = vadd.xlane.f32.xlu1 %v1679_v26 }
 0xc57   : > { %v1675_v44 = vpop.xlane.xlu2 %1674 }
 0xc58   : > { %v1682_v45 = vmul.f32 %v1675_v44, %v3438_v27 }
 0xc5a   : > { %v1685_v47 = vadd.f32 1e-05, %v1682_v45 }
 0xc5c   : > { %3102 = vrsqrt.f32 %v1685_v47  ;;  %vm1694_vm10 = vweird.f32 %v1685_v47 }
 0xc5f   : > { %v1678_v49 = vpop.xlane.xlu0 %1677 }
 0xc60   : > { %v1683_v50 = vmul.f32 %v1678_v49, %v3438_v27 }
 0xc62   : > { %v3103_v52 = vpop.eup %3102  ;;  %v1686_v53 = vadd.f32 1e-05, %v1683_v50 }
 0xc63   : > { %v1689_v54 = vmul.f32 %v3103_v52, %v1685_v47  ;;  %vm1695_vm9 = vweird.f32 %v3103_v52 }
 0xc64   : > { %3104 = vrsqrt.f32 %v1686_v53  ;;  %vm1696_vm11 = vmor %vm1694_vm10, %vm1695_vm9  ;;  %vm1704_vm15 = vweird.f32 %v1686_v53  ;;  %vm2648_vm9 = vcmask 253952  }
 0xc65   : > { %v1690_v55 = vmul.f32 %v3103_v52, %v1689_v54 }
 0xc67   : > { %v1691_v56 = vmul.f32 0.5, %v1690_v55 }
 0xc69   : > { %v1692_v57 = vsub.f32 1.5, %v1691_v56 }
 0xc6a   : > { %v3105_v58 = vpop.eup %3104 }
 0xc6b   : > { %v1693_v59 = vmul.f32 %v3103_v52, %v1692_v57  ;;  %v1699_v60 = vmul.f32 %v3105_v58, %v1686_v53  ;;  %vm1705_vm13 = vweird.f32 %v3105_v58 }
 0xc6c   : > { %vm1706_vm0 = vmor %vm1704_vm15, %vm1705_vm13 }
 0xc6d   : > { %v1697_v62 = vsel %vm1696_vm11, %v3103_v52, %v1693_v59  ;;  %v1700_v63 = vmul.f32 %v3105_v58, %v1699_v60 }
 0xc6e   : > { %v1718_v0 = vmul.f32 %v1697_v62, %v1667_v24 }
 0xc6f   : > { %v1701_v51 = vmul.f32 0.5, %v1700_v63 }
 0xc70   : > { %v1724_v2 = vmul.f32 %v3026_v61, %v1718_v0 }
 0xc71   : > { %v1702_v3 = vsub.f32 1.5, %v1701_v51 }
 0xc72   : > { %v1730_v4 = vadd.f32 %v3027_v1, %v1724_v2 }
 0xc73   : > { %v1703_v5 = vmul.f32 %v3105_v58, %v1702_v3 }
 0xc74   : > { %2839 = vmatmul.msk.f32.vlgmr.msra.gmra.mxu3 %vm656_vm1, %v1730_v4  ;;  %v2842_v4 = vld [vmem:[%s4200_s7 + $0x20] sm:$0xff] }
 0xc75   : > { %v1707_v6 = vsel %vm1706_vm0, %v3105_v58, %v1703_v5 }
 0xc76   : > { %v1719_v7 = vmul.f32 %v1707_v6, %v1668_v33 }
 0xc78   : > { %v1725_v30 = vmul.f32 %v3026_v61, %v1719_v7 }
 0xc7a   : > { %v1731_v8 = vadd.f32 %v3027_v1, %v1725_v30 }
 0xc7c   : > { %2840 = vmatmul.msk.f32.gmra.mxu3 %vm656_vm1, %v1731_v8 }
 0xc84   : > { %v1681_v43 = vpop.xlane.xlu1 %1680 }
 0xc85   : > { %v1684_v34 = vmul.f32 %v1681_v43, %v3438_v27 }
 0xc87   : > { %v1687_v9 = vadd.f32 1e-05, %v1684_v34 }
 0xc89   : > { %3106 = vrsqrt.f32 %v1687_v9  ;;  %vm1714_vm3 = vweird.f32 %v1687_v9 }
 0xc8f   : > { %v3107_v12 = vpop.eup %3106 }
 0xc90   : > { %v1709_v11 = vmul.f32 %v3107_v12, %v1687_v9  ;;  %vm1715_vm2 = vweird.f32 %v3107_v12 }
 0xc91   : > { %vm1716_vm4 = vmor %vm1714_vm3, %vm1715_vm2 }
 0xc92   : > { %v1710_v13 = vmul.f32 %v3107_v12, %v1709_v11 }
 0xc94   : > { %v1711_v14 = vmul.f32 0.5, %v1710_v13 }
 0xc96   : > { %v1712_v16 = vsub.f32 1.5, %v1711_v14 }
 0xc98   : > { %v1713_v15 = vmul.f32 %v3107_v12, %v1712_v16 }
 0xc9a   : > { %v1717_v20 = vsel %vm1716_vm4, %v3107_v12, %v1713_v15 }
 0xc9b   : > { %v1720_v21 = vmul.f32 %v1717_v20, %v3805_v37 }
 0xc9d   : > { %v1726_v32 = vmul.f32 %v3026_v61, %v1720_v21 }
 0xc9f   : > { %v1732_v23 = vadd.f32 %v3027_v1, %v1726_v32 }
 0xca1   : > { %2841 = vmatmul.msk.f32.gmra.mxu3 %vm656_vm1, %v1732_v23 }
 0xcf7   : > { %v1769_v24 = vpop.f32.mrf.mxu3 }
 0xcf8   : > { %v3838_v10 = vadd.f32 %v3028_v48, %v1769_v24 }
 0xcfa   : > { %1786 = vrot.lane.b32.xlu1 %v3838_v10, %s4267_s21 }
 0xcff   : > { %v1772_v19 = vpop.f32.mrf.mxu3 }
 0xd00   : > { %v3842_v29 = vadd.f32 %v3028_v48, %v1772_v19 }
 0xd02   : > { %1788 = vrot.lane.b32.xlu0 %v3842_v29, %s4267_s21 }
 0xd24   : > { %v1775_v31 = vpop.f32.mrf.mxu3 }
 0xd25   : > { %v3846_v33 = vadd.f32 %v3028_v48, %v1775_v31 }
 0xd27   : > { %1790 = vrot.lane.b32.xlu2 %v3846_v33, %s4267_s21  ;;  %v3867_v45 = vpack.i.bf16 %v3842_v29, %v3846_v33  ;;  %s4275_s21 = smov 56  }
 0xd6c   : > { %v1787_v36 = vpop.permute.xlu1 %1786 }
 0xd74   : > { %v1789_v35 = vpop.permute.xlu0 %1788 }
 0xd81   : > { %v1791_v17 = vpop.permute.xlu2 %1790 }
 0xd82   : > { %2846 = vmatpush.xpose.msk.msra.mxu1 %vm798_vm12, %v1791_v17 }
 0xd86   : > { %2847 = vmatpush.xpose.msk.msra.mxu1 %vm798_vm12, %v1789_v35 }
 0xd8a   : > { %2848 = vmatpush.xpose.msk.msra.mxu1 %vm798_vm12, %v1787_v36 }
 0xd8d   : > { %2849 = vmatmul.msk.f32.vlgmr.msra.gmra.mxu1 %vm798_vm12, %v3838_v10 }
 0xd95   : > { %2850 = vmatmul.msk.f32.gmra.mxu1 %vm798_vm12, %v3842_v29 }
 0xd9d   : > { %2851 = vmatmul.msk.f32.gmra.mxu1 %vm798_vm12, %v3846_v33 }
 0xe0a   : > { %v1821_v25 = vpop.f32.mrf.mxu1 }
 0xe0b   : > { %v1822_v37 = vadd.f32 %v1821_v25, %v3502_v41 }
 0xe0d   : > { %v1830_v38 = vsel %vm837_vm14, %v1822_v37, -inf }
 0xe0e   : > { %1831 = vmax.xlane.f32.xlu0 %v1830_v38 }
 0xe12   : > { %v1824_v26 = vpop.f32.mrf.mxu1 }
 0xe13   : > { %v1825_v39 = vadd.f32 %v1824_v26, %v3502_v41 }
 0xe15   : > { %v1833_v40 = vsel %vm837_vm14, %v1825_v39, -inf }
 0xe16   : > { %1834 = vmax.xlane.f32.xlu2 %v1833_v40 }
 0xe1a   : > { %v1827_v42 = vpop.f32.mrf.mxu1 }
 0xe1b   : > { %v1828_v28 = vadd.f32 %v1827_v42, %v3502_v41 }
 0xe1d   : > { %v1836_v44 = vsel %vm837_vm14, %v1828_v28, -inf }
 0xe1e   : > { %1837 = vmax.xlane.f32.xlu1 %v1836_v44 }
 0xe22   : > { %2999 = vrot.lane.b32.xlu0 %v3867_v45, %s4268_s28 }
 0xe2a   : > { %1917 = vrot.lane.b32.xlu0 %v3846_v33, %s4269_s26 }
 0xe32   : > { %1913 = vrot.lane.b32.xlu0 %v3838_v10, %s4269_s26 }
 0xe37   : > { %1863 = vrot.lane.b32.xlu1 %v3838_v10, %s4268_s28  ;;  %s4276_s28 = smov 40  }
 0xe3a   : > { %1909 = vrot.lane.b32.xlu0 %v3842_v29, %s4270_s0 }
 0xe3f   : > { %1907 = vrot.lane.b32.xlu1 %v3838_v10, %s4270_s0 }
 0xe42   : > { %2279 = vrot.lane.b32.xlu0 %v3846_v33, %s4271_s25 }
 0xe47   : > { %2114 = vrot.lane.b32.xlu1 %v3846_v33, %s4272_s2 }
 0xe4a   : > { %2277 = vrot.lane.b32.xlu0 %v3842_v29, %s4271_s25 }
 0xe4f   : > { %2112 = vrot.lane.b32.xlu1 %v3842_v29, %s4272_s2 }
 0xe52   : > { %2104 = vrot.lane.b32.xlu0 %v3838_v10, %s4273_s18 }
 0xe57   : > { %2275 = vrot.lane.b32.xlu1 %v3838_v10, %s4271_s25  ;;  %s2711_s25 = scalar_lea.hbm %s4212_s19, %s3368_s1 }
 0xe58   : > { %s2715_s5 = sshll.u32 %s2711_s25, 4  ;;  %s2716_s5 = int_to_ptr.hbm [resolvable:$true] %s2715_s5 }
 0xe5a   : > { %2108 = vrot.lane.b32.xlu0 %v3846_v33, %s4273_s18 }
 0xe5f   : > { %2106 = vrot.lane.b32.xlu1 %v3842_v29, %s4273_s18 }
 0xe81   : > { %v1832_v47 = vpop.xlane.xlu0 %1831 }
 0xe82   : > { %v1839_v49 = vsub.f32 %v1822_v37, %v1832_v47 }
 0xe84   : > { %v1842_v50 = vmul.f32 1.442695, %v1839_v49 }
 0xe86   : > { %3108 = vpow2.f32 %v1842_v50 }
 0xe89   : > { %v1835_v52 = vpop.xlane.xlu2 %1834 }
 0xe8a   : > { %v1840_v53 = vsub.f32 %v1825_v39, %v1835_v52 }
 0xe8c   : > { %v3109_v54 = vpop.eup %3108  ;;  %v1844_v55 = vmul.f32 1.442695, %v1840_v53 }
 0xe8d   : > { %v1848_v56 = vsel %vm837_vm14, %v3109_v54, 0.0 }
 0xe8e   : > { %3110 = vpow2.f32 %v1844_v55  ;;  %1849 = vadd.xlane.f32.xlu2 %v1848_v56 }
 0xe91   : > { %v1838_v57 = vpop.xlane.xlu1 %1837 }
 0xe92   : > { %v1841_v58 = vsub.f32 %v1828_v28, %v1838_v57 }
 0xe94   : > { %v3111_v59 = vpop.eup %3110  ;;  %v1846_v60 = vmul.f32 1.442695, %v1841_v58  ;;  %v3000_v61 = vpop.permute.xlu0 %2999 }
 0xe95   : > { %v3001_v62 = vunpack.i.l.bf16 %v3000_v61  ;;  %v1851_v63 = vsel %vm837_vm14, %v3111_v59, 0.0  ;;  %v3002_v0 = vunpack.i.h.bf16 %v3000_v61 }
 0xe96   : > { %3112 = vpow2.f32 %v1846_v60  ;;  %1852 = vadd.xlane.f32.xlu2 %v1851_v63 }
 0xe97   : > { %1894 = vmatpush.msra.mxu0 %v3001_v62 }
 0xe99   : > { %1895 = vmatpush.msra.mxu0 %v3002_v0 }
 0xe9c   : > { %v3113_v1 = vpop.eup %3112  ;;  %v1918_v51 = vpop.permute.xlu0 %1917 }
 0xe9d   : > { %2855 = vmatpush.xpose.msk.msrb.mxu2 %vm798_vm12, %v1918_v51  ;;  %v1854_v2 = vsel %vm837_vm14, %v3113_v1, 0.0 }
 0xe9e   : > { %1855 = vadd.xlane.f32.xlu2 %v1854_v2 }
 0xea4   : > { %v1914_v5 = vpop.permute.xlu0 %1913 }
 0xea9   : > { %v1864_v3 = vpop.permute.xlu1 %1863 }
 0xeaa   : > { %1896 = vmatpush.msra.mxu0 %v1864_v3 }
 0xeac   : > { %2093 = vmatpush.msrb.mxu0 %v2842_v4  ;;  %v1910_v7 = vpop.permute.xlu0 %1909 }
 0xeb1   : > { %v1908_v6 = vpop.permute.xlu1 %1907 }
 0xeb4   : > { %v2280_v43 = vpop.permute.xlu0 %2279 }
 0xeb6   : > { %1915 = vrot.lane.b32.xlu2 %v3842_v29, %s4269_s26  ;;  %s4277_s26 = smov 48  }
 0xeb9   : > { %v2115_v30 = vpop.permute.xlu1 %2114 }
 0xebc   : > { %v2278_v13 = vpop.permute.xlu0 %2277 }
 0xebe   : > { %1911 = vrot.lane.b32.xlu2 %v3846_v33, %s4270_s0  ;;  %s3190_s0 = scalar_lea.hbm %s4212_s19, 2 }
 0xec1   : > { %v2113_v9 = vpop.permute.xlu1 %2112 }
 0xec4   : > { %v2105_v19 = vpop.permute.xlu0 %2104 }
 0xec6   : > { %2110 = vrot.lane.b32.xlu2 %v3838_v10, %s4272_s2 }
 0xec9   : > { %v2276_v20 = vpop.permute.xlu1 %2275 }
 0xecc   : > { %v2109_v17 = vpop.permute.xlu0 %2108 }
 0xece   : > { %2269 = vrot.lane.b32.xlu2 %v3838_v10, %s4274_s23 }
 0xed1   : > { %v2107_v31 = vpop.permute.xlu1 %2106 }
 0xf01   : > { %v1850_v8 = vpop.xlane.xlu2 %1849 }
 0xf02   : > { %3114 = vrcp.f32 %v1850_v8 }
 0xf08   : > { %v3115_v34 = vpop.eup %3114 }
 0xf09   : > { %v1860_v12 = vmul.f32 %v3115_v34, %v3109_v54  ;;  %v1853_v11 = vpop.xlane.xlu2 %1852 }
 0xf0a   : > { %3116 = vrcp.f32 %v1853_v11 }
 0xf0b   : > { %2852 = vmatmul.msk.f32.vlgmr.msra.gmra.mxu0 %vm837_vm14, %v1860_v12 }
 0xf0c   : > { %2882 = vmatpush.xpose.msk.msra.mxu0 %vm798_vm12, %v2280_v43 }
 0xf10   : > { %v3117_v14 = vpop.eup %3116  ;;  %2883 = vmatpush.xpose.msk.msra.mxu0 %vm798_vm12, %v2278_v13 }
 0xf11   : > { %v1856_v16 = vpop.xlane.xlu2 %1855  ;;  %v1861_v15 = vmul.f32 %v3117_v14, %v3111_v59 }
 0xf12   : > { %3118 = vrcp.f32 %v1856_v16 }
 0xf13   : > { %2853 = vmatmul.msk.f32.gmra.mxu0 %vm837_vm14, %v1861_v15 }
 0xf14   : > { %2884 = vmatpush.xpose.msk.msra.mxu0 %vm798_vm12, %v2276_v20 }
 0xf18   : > { %v3119_v21 = vpop.eup %3118 }
 0xf19   : > { %v1916_v32 = vpop.permute.xlu2 %1915  ;;  %v1862_v23 = vmul.f32 %v3119_v21, %v3113_v1 }
 0xf1a   : > { %2856 = vmatpush.xpose.msk.msrb.mxu2 %vm798_vm12, %v1916_v32 }
 0xf1b   : > { %2854 = vmatmul.msk.f32.gmra.mxu0 %vm837_vm14, %v1862_v23 }
 0xf1e   : > { %2857 = vmatpush.xpose.msk.msrb.mxu2 %vm798_vm12, %v1914_v5 }
 0xf21   : > { %v1912_v48 = vpop.permute.xlu2 %1911  ;;  %2858 = vmatmul.msk.f32.vlgmr.msrb.gmra.mxu2 %vm798_vm12, %v1908_v6 }
 0xf22   : > { %2870 = vmatpush.xpose.msk.msra.mxu2 %vm798_vm12, %v2115_v30 }
 0xf26   : > { %2871 = vmatpush.xpose.msk.msra.mxu2 %vm798_vm12, %v2113_v9 }
 0xf29   : > { %v2111_v24 = vpop.permute.xlu2 %2110  ;;  %2859 = vmatmul.msk.f32.gmra.mxu2 %vm798_vm12, %v1910_v7 }
 0xf2a   : > { %2872 = vmatpush.xpose.msk.msra.mxu2 %vm798_vm12, %v2111_v24 }
 0xf31   : > { %2860 = vmatmul.msk.f32.gmra.mxu2 %vm798_vm12, %v1912_v48  ;;  %v2270_v37 = vpop.permute.xlu2 %2269 }
 0xf39   : > { %2873 = vmatmul.msk.f32.vlgmr.msra.gmra.mxu2 %vm798_vm12, %v2105_v19 }
 0xf41   : > { %2874 = vmatmul.msk.f32.gmra.mxu2 %vm798_vm12, %v2107_v31 }
 0xf49   : > { %2875 = vmatmul.msk.f32.gmra.mxu2 %vm798_vm12, %v2109_v17 }
 0xf88   : > { %v1898_v35 = vpop.f32.mrf.mxu0 }
 0xf89   : > { %2867 = vmatmul.msk.f32.vlgmr.msrb.gmra.mxu0 %vm798_vm12, %v1898_v35 }
 0xf90   : > { %v1901_v36 = vpop.f32.mrf.mxu0 }
 0xf91   : > { %2868 = vmatmul.msk.f32.gmra.mxu0 %vm798_vm12, %v1901_v36 }
 0xf98   : > { %v1904_v25 = vpop.f32.mrf.mxu0 }
 0xf99   : > { %2869 = vmatmul.msk.f32.gmra.mxu0 %vm798_vm12, %v1904_v25 }
 0xfa1   : > { %2885 = vmatmul.msk.f32.vlgmr.msra.gmra.mxu0 %vm798_vm12, %v2270_v37 }
 0xfa4   : > { %v1948_v38 = vpop.f32.mrf.mxu2 }
 0xfa5   : > { %v1949_v26 = vadd.f32 %v1948_v38, %v3502_v41 }
 0xfa7   : > { %v1957_v39 = vsel %vm837_vm14, %v1949_v26, -inf }
 0xfa8   : > { %1958 = vmax.xlane.f32.xlu2 %v1957_v39 }
 0xfac   : > { %v1951_v40 = vpop.f32.mrf.mxu2 }
 0xfad   : > { %v1952_v42 = vadd.f32 %v1951_v40, %v3502_v41 }
 0xfaf   : > { %v1960_v28 = vsel %vm837_vm14, %v1952_v42, -inf }
 0xfb0   : > { %1961 = vmax.xlane.f32.xlu1 %v1960_v28 }
 0xfb4   : > { %v1954_v44 = vpop.f32.mrf.mxu2 }
 0xfb5   : > { %v1955_v47 = vadd.f32 %v1954_v44, %v3502_v41 }
 0xfb7   : > { %v1963_v49 = vsel %vm837_vm14, %v1955_v47, -inf }
 0xfb8   : > { %1964 = vmax.xlane.f32.xlu0 %v1963_v49 }
 0xfbc   : > { %v2145_v50 = vpop.f32.mrf.mxu2 }
 0xfbd   : > { %v2146_v52 = vadd.f32 %v2145_v50, %v3502_v41 }
 0xfbf   : > { %v2154_v53 = vsel %vm837_vm14, %v2146_v52, -inf }
 0xfc0   : > { %2155 = vmax.xlane.f32.xlu1 %v2154_v53 }
 0xfc4   : > { %v2148_v13 = vpop.f32.mrf.mxu2 }
 0xfc5   : > { %v2149_v14 = vadd.f32 %v2148_v13, %v3502_v41 }
 0xfc7   : > { %v2157_v16 = vsel %vm837_vm14, %v2149_v14, -inf }
0x1006   : > { %v3941_v54 = vpop.f32.mrf.mxu0 }
0x100e   : > { %v3943_v55 = vpop.f32.mrf.mxu0 }
0x1016   : > { %v3945_v56 = vpop.f32.mrf.mxu0 }
0x101b   : > { %v1959_v57 = vpop.xlane.xlu2 %1958 }
0x101c   : > { %v1966_v58 = vsub.f32 %v1949_v26, %v1959_v57  ;;  %v2151_v57 = vpop.f32.mrf.mxu2 }
0x101e   : > { %v1969_v59 = vmul.f32 1.442695, %v1966_v58  ;;  %v2310_v60 = vpop.f32.mrf.mxu0  ;;  %v2152_v58 = vadd.f32 %v2151_v57, %v3502_v41 }
0x101f   : > { %v2311_v61 = vadd.f32 %v2310_v60, %v3502_v41 }
0x1020   : > { %3120 = vpow2.f32 %v1969_v59  ;;  %v2160_v59 = vsel %vm837_vm14, %v2152_v58, -inf }
0x1021   : > { %v2319_v62 = vsel %vm837_vm14, %v2311_v61, -inf }
0x1022   : > { %2320 = vmax.xlane.f32.xlu2 %v2319_v62 }
0x1023   : > { %v1962_v63 = vpop.xlane.xlu1 %1961 }
0x1024   : > { %v1967_v0 = vsub.f32 %v1952_v42, %v1962_v63 }
0x1026   : > { %v3121_v1 = vpop.eup %3120  ;;  %v1971_v51 = vmul.f32 1.442695, %v1967_v0 }
0x1027   : > { %v1975_v2 = vsel %vm837_vm14, %v3121_v1, 0.0 }
0x1028   : > { %3122 = vpow2.f32 %v1971_v51  ;;  %1976 = vadd.xlane.f32.xlu0 %v1975_v2 }
0x102b   : > { %v1965_v3 = vpop.xlane.xlu0 %1964 }
0x102c   : > { %v1968_v4 = vsub.f32 %v1955_v47, %v1965_v3 }
0x102e   : > { %v3123_v5 = vpop.eup %3122  ;;  %v1973_v6 = vmul.f32 1.442695, %v1968_v4 }
0x102f   : > { %v1978_v7 = vsel %vm837_vm14, %v3123_v5, 0.0 }
0x1030   : > { %3124 = vpow2.f32 %v1973_v6  ;;  %1979 = vadd.xlane.f32.xlu1 %v1978_v7 }
0x1033   : > { %v2156_v43 = vpop.xlane.xlu1 %2155 }
0x1034   : > { %v2163_v34 = vsub.f32 %v2146_v52, %v2156_v43 }
0x1036   : > { %v3125_v30 = vpop.eup %3124  ;;  %v2166_v9 = vmul.f32 1.442695, %v2163_v34 }
0x1037   : > { %v1981_v8 = vsel %vm837_vm14, %v3125_v30, 0.0 }
0x1038   : > { %1982 = vadd.xlane.f32.xlu1 %v1981_v8  ;;  %3126 = vpow2.f32 %v2166_v9 }
0x103a   : > { %3004 = vrot.lane.b32.xlu2 %v3867_v45, %s4275_s21 }
0x103c   : > { %1990 = vrot.lane.b32.xlu0 %v3838_v10, %s4275_s21  ;;  %s3184_s21 = sshra.s32 %s2716_s5, 4  ;;  %s3185_s21 = int_to_ptr.hbm [resolvable:$true] %s3184_s21 }
0x103d   : > { %s3186_s6 = scalar_lea.hbm %s3185_s21, 1  ;;  %p3191_p0 = scmp.lt.s32.totalorder %s3185_s21, %s4212_s19 }
0x103e   : > { %v3127_v12 = vpop.eup %3126  ;;  %p3187_p11 = scmp.ne.s32.totalorder %s3185_s21, %s3186_s6  ;;  %p3192_p1 = scmp.lt.s32.totalorder %s3190_s0, %s3186_s6 }
0x103f   : > { %v2172_v11 = vsel %vm837_vm14, %v3127_v12, 0.0 }
0x1040   : > { %p3188_p12 = pnand %p3187_p11, %p3385_p5  ;;  %p3193_p2 = por %p3192_p1, %p3191_p0 }
0x1042   : > { %p3189_p13 = pneg %p3188_p12 }
0x1044   : > { %3009 = vrot.lane.b32.xlu0 %v3867_v45, %s4276_s28  ;;  %p3194_p3 = pnand %p3193_p2, %p3189_p13 }
0x104c   : > { %2352 = vrot.lane.b32.xlu0 %v3838_v10, %s4276_s28  ;;  %s594_s28 = sand.u32 1, %s3224_s30  }
0x104d   : > { %s595_s22 = scalar_lea.vmem [#allocation2], %s594_s28  ;;  %s2703_s20 = scalar_lea.sflag [#allocation3], %s594_s28 }
0x104e   : > { %s2713_s4 = sshll.u32 %s595_s22, 4  ;;  %s2714_s4 = int_to_ptr.vmem [resolvable:$true] %s2713_s4 }
0x1051   : > { %3014 = vrot.lane.b32.xlu1 %v3867_v45, %s4277_s26 }
0x1054   : > { %2187 = vrot.lane.b32.xlu0 %v3838_v10, %s4277_s26 }
0x105c   : > { %2271 = vrot.lane.b32.xlu0 %v3842_v29, %s4274_s23 }
0x1063   : > { %2173 = vadd.xlane.f32.xlu2 %v2172_v11 }
0x1086   : > { %2158 = vmax.xlane.f32.xlu0 %v2157_v16 }
0x1095   : > { %v2321_v15 = vpop.xlane.xlu2 %2320 }
0x1096   : > { %v2328_v45 = vsub.f32 %v2311_v61, %v2321_v15 }
0x1098   : > { %v2331_v20 = vmul.f32 1.442695, %v2328_v45 }
0x109a   : > { %3128 = vpow2.f32 %v2331_v20 }
0x109b   : > { %v1977_v48 = vpop.xlane.xlu0 %1976 }
0x109c   : > { %3130 = vrcp.f32 %v1977_v48 }
0x109d   : > { %v3005_v10 = vpop.permute.xlu2 %3004 }
0x109e   : > { %v3006_v21 = vunpack.i.l.bf16 %v3005_v10  ;;  %v3007_v23 = vunpack.i.h.bf16 %v3005_v10 }
0x10a0   : > { %v3129_v32 = vpop.eup %3128  ;;  %2021 = vmatpush.msrb.mxu3 %v3006_v21 }
0x10a1   : > { %v2337_v29 = vsel %vm837_vm14, %v3129_v32, 0.0 }
0x10a2   : > { %2338 = vadd.xlane.f32.xlu1 %v2337_v29  ;;  %2022 = vmatpush.msrb.mxu3 %v3007_v23  ;;  %v3131_v19 = vpop.eup %3130  ;;  %v2845_v23 = vld [vmem:[%s4200_s7 + $0x38] sm:$0xff] }
0x10a3   : > { %v1980_v24 = vpop.xlane.xlu1 %1979  ;;  %v1987_v31 = vmul.f32 %v3131_v19, %v3121_v1  ;;  %v2843_v1 = vld [vmem:[%s4200_s7 + $0x28] sm:$0xff] }
0x10a4   : > { %3132 = vrcp.f32 %v1980_v24  ;;  %2058 = vmatpush.msrb.mxu1 %v2843_v1 }
0x10aa   : > { %v3133_v36 = vpop.eup %3132 }
0x10ab   : > { %v1983_v35 = vpop.xlane.xlu1 %1982  ;;  %v1988_v37 = vmul.f32 %v3133_v36, %v3123_v5 }
0x10ac   : > { %3134 = vrcp.f32 %v1983_v35 }
0x10ae   : > { %v1991_v17 = vpop.permute.xlu0 %1990 }
0x10af   : > { %2023 = vmatpush.msrb.mxu3 %v1991_v17 }
0x10b0   : > { %2861 = vmatmul.msk.f32.vlgmr.msrb.gmra.mxu3 %vm837_vm14, %v1987_v31 }
0x10b2   : > { %v3135_v39 = vpop.eup %3134 }
0x10b3   : > { %v1989_v42 = vmul.f32 %v3135_v39, %v3125_v30  ;;  %v2844_v30 = vld [vmem:[%s4200_s7 + $0x30] sm:$0xff] }
0x10b4   : > { %2255 = vmatpush.msra.mxu1 %v2844_v30  ;;  %v2899_v30 = vld [vmem:[%s4204_s11 + $0x30] sm:$0xff] }
0x10b6   : > { %v3010_v25 = vpop.permute.xlu0 %3009 }
0x10b7   : > { %v3011_v38 = vunpack.i.l.bf16 %v3010_v25  ;;  %v3012_v26 = vunpack.i.h.bf16 %v3010_v25 }
0x10b8   : > { %2862 = vmatmul.msk.f32.gmra.mxu3 %vm837_vm14, %v1988_v37 }
0x10b9   : > { %2383 = vmatpush.msrb.mxu2 %v3011_v38 }
0x10bb   : > { %2384 = vmatpush.msrb.mxu2 %v3012_v26  ;;  %2273 = vrot.lane.b32.xlu1 %v3846_v33, %s4274_s23  ;;  %s4278_s23 = sld [smem:[#allocation18_spill]] }
0x10be   : > { %v2353_v40 = vpop.permute.xlu0 %2352 }
0x10bf   : > { %2385 = vmatpush.msrb.mxu2 %v2353_v40 }
0x10c0   : > { %2863 = vmatmul.msk.f32.gmra.mxu3 %vm837_vm14, %v1989_v42 }
0x10c3   : > { %v3015_v28 = vpop.permute.xlu1 %3014 }
0x10c4   : > { %v3016_v44 = vunpack.i.l.bf16 %v3015_v28  ;;  %v3017_v47 = vunpack.i.h.bf16 %v3015_v28 }
0x10c6   : > { %v2188_v49 = vpop.permute.xlu0 %2187  ;;  %2218 = vmatpush.msra.mxu3 %v3016_v44 }
0x10c8   : > { %2219 = vmatpush.msra.mxu3 %v3017_v47 }
0x10ca   : > { %2220 = vmatpush.msra.mxu3 %v2188_v49 }
0x10cc   : > { %2420 = vmatpush.msrb.mxu3 %v2845_v23 }
0x10ce   : > { %v2272_v50 = vpop.permute.xlu0 %2271 }
0x10cf   : > { %2886 = vmatmul.msk.f32.gmra.mxu0 %vm798_vm12, %v2272_v50 }
0x10d6   : > { %v2174_v52 = vpop.xlane.xlu2 %2173 }
0x10d7   : > { %3136 = vrcp.f32 %v2174_v52 }
0x10dd   : > { %v3137_v53 = vpop.eup %3136 }
0x10de   : > { %v2184_v33 = vmul.f32 %v3137_v53, %v3127_v12 }
0x10e0   : > { %2876 = vmatmul.msk.f32.vlgmr.msra.gmra.mxu3 %vm837_vm14, %v2184_v33 }
0x10e5   : > { %2161 = vmax.xlane.f32.xlu1 %v2160_v59 }
0x10f9   : > { %v2159_v60 = vpop.xlane.xlu0 %2158 }
0x10fa   : > { %v2164_v61 = vsub.f32 %v2149_v14, %v2159_v60  ;;  %v4014_v60 = vld [vmem:[%s4201_s8 + $0x1] ss:$0 sm:$0xff] }
0x10fc   : > { %v2168_v62 = vmul.f32 1.442695, %v2164_v61 }
0x10fe   : > { %3138 = vpow2.f32 %v2168_v62 }
0x1104   : > { %v3139_v63 = vpop.eup %3138 }
0x1105   : > { %v2175_v0 = vsel %vm837_vm14, %v3139_v63, 0.0 }
0x1106   : > { %2176 = vadd.xlane.f32.xlu2 %v2175_v0 }
0x1115   : > { %v2339_v51 = vpop.xlane.xlu1 %2338 }
0x1116   : > { %3140 = vrcp.f32 %v2339_v51 }
0x111c   : > { %v3141_v2 = vpop.eup %3140 }
0x111d   : > { %v2349_v3 = vmul.f32 %v3141_v2, %v3129_v32 }
0x111f   : > { %2888 = vmatmul.msk.f32.vlgmr.msrb.gmra.mxu2 %vm837_vm14, %v2349_v3 }
0x112d   : > { %v2274_v4 = vpop.permute.xlu1 %2273 }
0x112e   : > { %2887 = vmatmul.msk.f32.gmra.mxu0 %vm798_vm12, %v2274_v4 }
0x1133   : > { %v2025_v5 = vpop.f32.mrf.mxu3 }
0x1134   : > { %2864 = vmatmul.msk.f32.vlgmr.msrb.gmra.mxu1 %vm798_vm12, %v2025_v5 }
0x113b   : > { %v2028_v6 = vpop.f32.mrf.mxu3 }
0x113c   : > { %2865 = vmatmul.msk.f32.gmra.mxu1 %vm798_vm12, %v2028_v6 }
0x1143   : > { %v2031_v7 = vpop.f32.mrf.mxu3 }
0x1144   : > { %2866 = vmatmul.msk.f32.gmra.mxu1 %vm798_vm12, %v2031_v7  ;;  %v2900_v7 = vld [vmem:[%s4204_s11 + $0x38] sm:$0xff] }
0x1145   : > { %2558 = vmatpush.msrb.mxu1 %v2900_v7 }
0x1147   : > { %2559 = vmatpush.msrb.mxu1 %v2899_v30 }
0x114c   : > { %v2313_v13 = vpop.f32.mrf.mxu0 }
0x114d   : > { %v2314_v14 = vadd.f32 %v2313_v13, %v3502_v41 }
0x114f   : > { %v2322_v16 = vsel %vm837_vm14, %v2314_v14, -inf }
0x1158   : > { %v2162_v8 = vpop.xlane.xlu1 %2161 }
0x1159   : > { %v2165_v43 = vsub.f32 %v2152_v58, %v2162_v8  ;;  %v2898_v8 = vld [vmem:[%s4204_s11 + $0x28] sm:$0xff] }
0x115a   : > { %2560 = vmatpush.msrb.mxu1 %v2898_v8 }
0x115b   : > { %v2170_v34 = vmul.f32 1.442695, %v2165_v43  ;;  %v2897_v43 = vld [vmem:[%s4204_s11 + $0x20] sm:$0xff] }
0x115c   : > { %2561 = vmatpush.msrb.mxu1 %v2897_v43 }
0x115d   : > { %3142 = vpow2.f32 %v2170_v34 }
0x1163   : > { %v3143_v9 = vpop.eup %3142  ;;  %v2222_v12 = vpop.f32.mrf.mxu3 }
0x1164   : > { %2879 = vmatmul.msk.f32.vlgmr.msra.gmra.mxu1 %vm798_vm12, %v2222_v12  ;;  %v2178_v11 = vsel %vm837_vm14, %v3143_v9, 0.0 }
0x1165   : > { %2179 = vadd.xlane.f32.xlu2 %v2178_v11 }
0x116d   : > { %2323 = vmax.xlane.f32.xlu2 %v2322_v16 }
0x1179   : > { %v2177_v15 = vpop.xlane.xlu2 %2176 }
0x117a   : > { %3144 = vrcp.f32 %v2177_v15 }
0x1180   : > { %v3145_v45 = vpop.eup %3144 }
0x1181   : > { %v2185_v20 = vmul.f32 %v3145_v45, %v3139_v63 }
0x1183   : > { %2877 = vmatmul.msk.f32.gmra.mxu3 %vm837_vm14, %v2185_v20 }
0x11a2   : > { %v2387_v35 = vpop.f32.mrf.mxu2 }
0x11ab   : > { %v2316_v10 = vpop.f32.mrf.mxu0 }
0x11ac   : > { %v2317_v21 = vadd.f32 %v2316_v10, %v3502_v41 }
0x11ae   : > { %v2325_v32 = vsel %vm837_vm14, %v2317_v21, -inf }
0x11af   : > { %2326 = vmax.xlane.f32.xlu2 %v2325_v32 }
0x11b1   : > { %v2060_v42 = vpop.f32.mrf.mxu1 }
0x11b2   : > { %v2096_v57 = vadd.f32 %v3941_v54, %v2060_v42  ;;  %v2920_v42 = vld [vmem:[%s4206_s13 + $0xf8] sm:$0xff] }
0x11b3   : > { %2621 = vmatpush.msrb.mxu0 %v2920_v42 }
0x11b9   : > { %v2063_v28 = vpop.f32.mrf.mxu1 }
0x11c1   : > { %v4006_v47 = vpop.f32.mrf.mxu1 }
0x11d8   : > { %v2180_v29 = vpop.xlane.xlu2 %2179 }
0x11d9   : > { %3146 = vrcp.f32 %v2180_v29 }
0x11df   : > { %v3147_v48 = vpop.eup %3146 }
0x11e0   : > { %v2324_v24 = vpop.xlane.xlu2 %2323  ;;  %v2186_v19 = vmul.f32 %v3147_v48, %v3143_v9 }
0x11e1   : > { %v2329_v31 = vsub.f32 %v2314_v14, %v2324_v24  ;;  %v2257_v53 = vpop.f32.mrf.mxu1  ;;  %v2099_v14 = vadd.f32 %v3943_v55, %v2063_v28  ;;  %v4047_v24 = vld [vmem:[%s4202_s9 + $0x1] ss:$0 sm:$0xff]  ;;  %v2919_v28 = vld [vmem:[%s4206_s13 + $0xf0] sm:$0xff] }
0x11e2   : > { %2878 = vmatmul.msk.f32.gmra.mxu3 %vm837_vm14, %v2186_v19  ;;  %v2266_v33 = vadd.f32 %v2257_v53, %v2096_v57  ;;  %2622 = vmatpush.msrb.mxu0 %v2919_v28  ;;  %v2911_v53 = vld [vmem:[%s4206_s13 + $0xb0] sm:$0xff]  ;;  %v2910_v57 = vld [vmem:[%s4206_s13 + $0xa8] sm:$0xff] }
0x11e3   : > { %v2333_v17 = vmul.f32 1.442695, %v2329_v31 }
0x11e5   : > { %3148 = vpow2.f32 %v2333_v17 }
0x11ea   : > { %2891 = vmatmul.msk.f32.vlgmr.msrb.gmra.mxu3 %vm798_vm12, %v2387_v35 }
0x11eb   : > { %v3149_v41 = vpop.eup %3148 }
0x11ec   : > { %v2340_v36 = vsel %vm837_vm14, %v3149_v41, 0.0 }
0x11ed   : > { %2341 = vadd.xlane.f32.xlu2 %v2340_v36  ;;  %v2102_v36 = vadd.f32 %v3945_v56, %v4006_v47  ;;  %v2918_v56 = vld [vmem:[%s4206_s13 + $0xe8] sm:$0xff]  ;;  %v2915_v47 = vld [vmem:[%s4206_s13 + $0xd0] sm:$0xff] }
0x11ee   : > { %2623 = vmatpush.msrb.mxu0 %v2918_v56 }
0x1206   : > { %v2225_v25 = vpop.f32.mrf.mxu3 }
0x1207   : > { %2880 = vmatmul.msk.f32.gmra.mxu1 %vm798_vm12, %v2225_v25 }
0x1222   : > { %v2327_v37 = vpop.xlane.xlu2 %2326 }
0x1223   : > { %v2330_v38 = vsub.f32 %v2317_v21, %v2327_v37 }
0x1225   : > { %v2335_v26 = vmul.f32 1.442695, %v2330_v38 }
0x1227   : > { %3150 = vpow2.f32 %v2335_v26 }
0x122d   : > { %v3151_v39 = vpop.eup %3150 }
0x122e   : > { %v2343_v40 = vsel %vm837_vm14, %v3151_v39, 0.0 }
0x122f   : > { %2344 = vadd.xlane.f32.xlu0 %v2343_v40 }
0x1260   : > { %v2342_v44 = vpop.xlane.xlu2 %2341 }
0x1261   : > { %3152 = vrcp.f32 %v2342_v44  ;;  %v2916_v44 = vld [vmem:[%s4206_s13 + $0xd8] sm:$0xff] }
0x1265   : > { %v2228_v49 = vpop.f32.mrf.mxu3 }
0x1266   : > { %2881 = vmatmul.msk.f32.gmra.mxu1 %vm798_vm12, %v2228_v49  ;;  %v2914_v49 = vld [vmem:[%s4206_s13 + $0xc8] sm:$0xff] }
0x1267   : > { %v3153_v50 = vpop.eup %3152 }
0x1268   : > { %v2350_v52 = vmul.f32 %v3153_v50, %v3149_v41  ;;  %v2913_v50 = vld [vmem:[%s4206_s13 + $0xc0] sm:$0xff] }
0x126a   : > { %2889 = vmatmul.msk.f32.gmra.mxu2 %vm837_vm14, %v2350_v52  ;;  %v2912_v52 = vld [vmem:[%s4206_s13 + $0xb8] sm:$0xff] }
0x126d   : > { %v2422_v58 = vpop.f32.mrf.mxu3 }
0x126e   : > { %v2431_v59 = vadd.f32 %v2422_v58, %v2266_v33  ;;  %v2909_v58 = vld [vmem:[%s4206_s13 + $0xa0] sm:$0xff] }
0x1270   : > { %v2434_v61 = vadd.f32 %v2431_v59, %v3783_v46 }
0x1272   : > { %v4018_v62 = vadd.f32 %v4014_v60, %v2434_v61 }
0x1274   : > { %v2449_v63 = vsel %vm656_vm1, %v4018_v62, 0.0 }
0x1275   : > { %2450 = vadd.xlane.f32.xlu1 %v2449_v63  ;;  %v2907_v63 = vld [vmem:[%s4206_s13 + $0x90] sm:$0xff] }
0x1284   : > { %v2260_v11 = vpop.f32.mrf.mxu1 }
0x1285   : > { %v2267_v15 = vadd.f32 %v2260_v11, %v2099_v14 }
0x12a2   : > { %v2345_v54 = vpop.xlane.xlu0 %2344 }
0x12a3   : > { %3154 = vrcp.f32 %v2345_v54 }
0x12a9   : > { %v3155_v0 = vpop.eup %3154 }
0x12aa   : > { %v2351_v1 = vmul.f32 %v3155_v0, %v3151_v39  ;;  %v2906_v0 = vld [vmem:[%s4206_s13 + $0x88] sm:$0xff] }
0x12ac   : > { %2890 = vmatmul.msk.f32.gmra.mxu2 %vm837_vm14, %v2351_v1 }
0x12e3   : > { %v2263_v41 = vpop.f32.mrf.mxu1 }
0x12e4   : > { %v2268_v25 = vadd.f32 %v2263_v41, %v2102_v36 }
0x12e8   : > { %v2451_v51 = vpop.xlane.xlu1 %2450 }
0x12e9   : > { %v2458_v2 = vmul.f32 %v2451_v51, %v3438_v27  ;;  %v2905_v51 = vld [vmem:[%s4206_s13 + $0x80] sm:$0xff] }
0x12eb   : > { %v2461_v3 = vsub.f32 %v4018_v62, %v2458_v2  ;;  %v4116_v2 = vld [vmem:[%s4205_s12 + $0x1] ss:$0 sm:$0xff] }
0x12ed   : > { %v2390_v4 = vpop.f32.mrf.mxu2  ;;  %v2464_v46 = vmul.f32 %v2461_v3, %v2461_v3 }
0x12ee   : > { %2892 = vmatmul.msk.f32.gmra.mxu3 %vm798_vm12, %v2390_v4 }
0x12ef   : > { %v2467_v5 = vsel %vm656_vm1, %v2464_v46, 0.0 }
0x12f0   : > { %2468 = vadd.xlane.f32.xlu2 %v2467_v5 }
0x132f   : > { %v2393_v6 = vpop.f32.mrf.mxu2 }
0x1330   : > { %2893 = vmatmul.msk.f32.gmra.mxu3 %vm798_vm12, %v2393_v6 }
0x1363   : > { %v2469_v34 = vpop.xlane.xlu2 %2468 }
0x1364   : > { %v2476_v9 = vmul.f32 %v2469_v34, %v3438_v27 }
0x1366   : > { %v2479_v12 = vadd.f32 1e-05, %v2476_v9 }
0x1368   : > { %3156 = vrsqrt.f32 %v2479_v12  ;;  %vm2488_vm14 = vweird.f32 %v2479_v12 }
0x136e   : > { %v3157_v13 = vpop.eup %3156 }
0x136f   : > { %v2483_v16 = vmul.f32 %v3157_v13, %v2479_v12  ;;  %vm2489_vm12 = vweird.f32 %v3157_v13 }
0x1370   : > { %vm2490_vm5 = vmor %vm2488_vm14, %vm2489_vm12 }
0x1371   : > { %v2484_v45 = vmul.f32 %v3157_v13, %v2483_v16  ;;  %v2425_v20 = vpop.f32.mrf.mxu3 }
0x1372   : > { %v2432_v10 = vadd.f32 %v2425_v20, %v2267_v15 }
0x1373   : > { %v2485_v21 = vmul.f32 0.5, %v2484_v45 }
0x1374   : > { %v2435_v32 = vadd.f32 %v2432_v10, %v3788_v18  ;;  %v4053_v18 = vld [vmem:[%s4203_s10 + $0x1] ss:$0 sm:$0xff] }
0x1375   : > { %v2486_v23 = vsub.f32 1.5, %v2485_v21 }
0x1376   : > { %v2443_v29 = vadd.f32 %v4014_v60, %v2435_v32 }
0x1377   : > { %v2487_v48 = vmul.f32 %v3157_v13, %v2486_v23 }
0x1378   : > { %v2452_v55 = vsel %vm656_vm1, %v2443_v29, 0.0 }
0x1379   : > { %v2491_v19 = vsel %vm2490_vm5, %v3157_v13, %v2487_v48  ;;  %2453 = vadd.xlane.f32.xlu0 %v2452_v55 }
0x137a   : > { %v2512_v31 = vmul.f32 %v2491_v19, %v2461_v3 }
0x137c   : > { %v2518_v17 = vmul.f32 %v4047_v24, %v2512_v31 }
0x137e   : > { %v2524_v35 = vadd.f32 %v4053_v18, %v2518_v17 }
0x1380   : > { %2902 = vmatmul.msk.f32.vlgmr.msrb.gmra.mxu1 %vm656_vm1, %v2524_v35  ;;  %v3033_v35 = vld [vmem:[%s4207_s14 + $0x1] ss:$0 sm:$0xff] }
0x13b3   : > { %v2428_v37 = vpop.f32.mrf.mxu3 }
0x13b4   : > { %v2433_v38 = vadd.f32 %v2428_v37, %v2268_v25 }
0x13b6   : > { %v2436_v26 = vadd.f32 %v2433_v38, %v3793_v22  ;;  %v2917_v22 = vld [vmem:[%s4206_s13 + $0xe0] sm:$0xff] }
0x13b7   : > { %2624 = vmatpush.msrb.mxu0 %v2917_v22 }
0x13b8   : > { %v2444_v39 = vadd.f32 %v4014_v60, %v2436_v26  ;;  %v2908_v60 = vld [vmem:[%s4206_s13 + $0x98] sm:$0xff] }
0x13b9   : > { %2625 = vmatpush.msrb.mxu0 %v2916_v44 }
0x13ba   : > { %v2455_v40 = vsel %vm656_vm1, %v2444_v39, 0.0 }
0x13bb   : > { %2456 = vadd.xlane.f32.xlu1 %v2455_v40  ;;  %2626 = vmatpush.msrb.mxu0 %v2915_v47 }
0x13bd   : > { %2627 = vmatpush.msrb.mxu0 %v2914_v49 }
0x13bf   : > { %2628 = vmatpush.msrb.mxu0 %v2913_v50 }
0x13c1   : > { %2629 = vmatpush.msrb.mxu0 %v2912_v52 }
0x13c3   : > { %2630 = vmatpush.msrb.mxu0 %v2911_v53 }
0x13c5   : > { %2631 = vmatpush.msrb.mxu0 %v2910_v57 }
0x13c7   : > { %2632 = vmatpush.msrb.mxu0 %v2909_v58 }
0x13c9   : > { %2633 = vmatpush.msrb.mxu0 %v2908_v60 }
0x13cb   : > { %2634 = vmatpush.msrb.mxu0 %v2907_v63 }
0x13cd   : > { %2635 = vmatpush.msrb.mxu0 %v2906_v0 }
0x13cf   : > { %2636 = vmatpush.msrb.mxu0 %v2905_v51 }
0x13ec   : > { %v2454_v33 = vpop.xlane.xlu0 %2453 }
0x13ed   : > { %v2459_v59 = vmul.f32 %v2454_v33, %v3438_v27 }
0x13ef   : > { %v2462_v61 = vsub.f32 %v2443_v29, %v2459_v59 }
0x13f1   : > { %v2465_v54 = vmul.f32 %v2462_v61, %v2462_v61 }
0x13f3   : > { %v2470_v1 = vsel %vm656_vm1, %v2465_v54, 0.0 }
0x13f4   : > { %2471 = vadd.xlane.f32.xlu2 %v2470_v1 }
0x13fd   : > { %v2563_v3 = vpop.f32.mrf.mxu1 }
0x13fe   : > { %v2564_v4 = vadd.f32 %v4116_v2, %v2563_v3 }
0x1400   : > { %v2572_v46 = vmul.f32 %v2564_v4, %v2564_v4 }
0x1402   : > { %v2575_v5 = vmul.f32 %v2572_v46, %v2564_v4 }
0x1404   : > { %v2578_v6 = vmul.f32 0.044715, %v2575_v5 }
0x1406   : > { %v2581_v7 = vadd.f32 %v2578_v6, %v2564_v4 }
0x1408   : > { %v2584_v30 = vmul.f32 0.7978846, %v2581_v7 }
0x140a   : > { %3158 = vtanh.f32 %v2584_v30 }
0x1410   : > { %v3159_v8 = vpop.eup %3158 }
0x1411   : > { %v2590_v43 = vadd.f32 1.0, %v3159_v8 }
0x1413   : > { %v2593_v34 = vmul.f32 0.5, %v2590_v43 }
0x1415   : > { %v2596_v9 = vmul.f32 %v2593_v34, %v2564_v4 }
0x1417   : > { %2637 = vmatmul.f32.vlgmr.msrb.gmra.mxu0 %v2596_v9 }
0x142e   : > { %v2457_v12 = vpop.xlane.xlu1 %2456 }
0x142f   : > { %v2460_v11 = vmul.f32 %v2457_v12, %v3438_v27 }
0x1431   : > { %v2463_v13 = vsub.f32 %v2444_v39, %v2460_v11  ;;  %v2676_v11 = vld [vmem:[%s4210_s17 + $0x18] sm:$0xff] }
0x1432   : > { %2693 = vmatpush.msra.mxu2 %v2676_v11 }
0x1433   : > { %v2466_v14 = vmul.f32 %v2463_v13, %v2463_v13 }
0x1435   : > { %v2473_v16 = vsel %vm656_vm1, %v2466_v14, 0.0  ;;  %v2673_v14 = vld [vmem:[%s4210_s17] sm:$0xff] }
0x1436   : > { %2474 = vadd.xlane.f32.xlu0 %v2473_v16 }
0x1467   : > { %v2472_v15 = vpop.xlane.xlu2 %2471 }
0x1468   : > { %v2477_v45 = vmul.f32 %v2472_v15, %v3438_v27 }
0x146a   : > { %v2480_v20 = vadd.f32 1e-05, %v2477_v45 }
0x146c   : > { %3160 = vrsqrt.f32 %v2480_v20  ;;  %vm2498_vm7 = vweird.f32 %v2480_v20 }
0x1472   : > { %v3161_v10 = vpop.eup %3160 }
0x1473   : > { %v2493_v21 = vmul.f32 %v3161_v10, %v2480_v20  ;;  %vm2499_vm6 = vweird.f32 %v3161_v10 }
0x1474   : > { %vm2500_vm8 = vmor %vm2498_vm7, %vm2499_vm6 }
0x1475   : > { %v2494_v32 = vmul.f32 %v3161_v10, %v2493_v21 }
0x1477   : > { %v2495_v23 = vmul.f32 0.5, %v2494_v32 }
0x1479   : > { %v2496_v29 = vsub.f32 1.5, %v2495_v23 }
0x147b   : > { %v2497_v48 = vmul.f32 %v3161_v10, %v2496_v29 }
0x147d   : > { %v2501_v55 = vsel %vm2500_vm8, %v3161_v10, %v2497_v48 }
0x147e   : > { %v2513_v19 = vmul.f32 %v2501_v55, %v2462_v61  ;;  %v2646_v55 = vld [vmem:[%s4208_s15] sm:$0x1] }
0x1480   : > { %v2519_v31 = vmul.f32 %v4047_v24, %v2513_v19 }
0x1482   : > { %v2525_v17 = vadd.f32 %v4053_v18, %v2519_v31  ;;  %v2647_v31 = vld [vmem:[%s4209_s16] sm:$0x1] }
0x1484   : > { %2903 = vmatmul.msk.f32.gmra.mxu1 %vm656_vm1, %v2525_v17 }
0x1494   : > { %v2638_v41 = vpop.f32.mrf.mxu0 }
0x1495   : > { %v2639_v36 = vadd.f32 %v3033_v35, %v2638_v41 }
0x1497   : > { %v2645_v25 = vadd.f32 %v2639_v36, %v4018_v62  ;;  %v2677_v36 = vld [vmem:[%s4278_s23] sm:$0x1] }
0x1499   : > { %v2649_v37 = vsel %vm2648_vm9, %v2645_v25, 0.0 }
0x149a   : > { %2650 = vadd.xlane.f32.xlu1 %v2649_v37 }
0x14a9   : > { %v2475_v38 = vpop.xlane.xlu0 %2474 }
0x14aa   : > { %v2478_v26 = vmul.f32 %v2475_v38, %v3438_v27 }
0x14ac   : > { %v2481_v39 = vadd.f32 1e-05, %v2478_v26 }
0x14ae   : > { %3162 = vrsqrt.f32 %v2481_v39  ;;  %vm2508_vm11 = vweird.f32 %v2481_v39 }
0x14b4   : > { %v3163_v40 = vpop.eup %3162 }
0x14b5   : > { %v2503_v42 = vmul.f32 %v3163_v40, %v2481_v39  ;;  %vm2509_vm10 = vweird.f32 %v3163_v40 }
0x14b6   : > { %vm2510_vm13 = vmor %vm2508_vm11, %vm2509_vm10 }
0x14b7   : > { %v2504_v28 = vmul.f32 %v3163_v40, %v2503_v42 }
0x14b9   : > { %v2505_v56 = vmul.f32 0.5, %v2504_v28 }
0x14bb   : > { %v2506_v22 = vsub.f32 1.5, %v2505_v56 }
0x14bd   : > { %v2507_v44 = vmul.f32 %v3163_v40, %v2506_v22 }
0x14bf   : > { %v2511_v47 = vsel %vm2510_vm13, %v3163_v40, %v2507_v44 }
0x14c0   : > { %v2514_v49 = vmul.f32 %v2511_v47, %v2463_v13  ;;  %v2674_v13 = vld [vmem:[%s4210_s17 + $0x8] sm:$0xff] }
0x14c2   : > { %v2520_v62 = vmul.f32 %v4047_v24, %v2514_v49 }
0x14c4   : > { %v2526_v50 = vadd.f32 %v4053_v18, %v2520_v62 }
0x14c6   : > { %2904 = vmatmul.msk.f32.gmra.mxu1 %vm656_vm1, %v2526_v50 }
0x1501   : > { %v2566_v52 = vpop.f32.mrf.mxu1 }
0x1502   : > { %v2567_v53 = vadd.f32 %v4116_v2, %v2566_v52 }
0x1504   : > { %v2573_v57 = vmul.f32 %v2567_v53, %v2567_v53 }
0x1506   : > { %v2576_v33 = vmul.f32 %v2573_v57, %v2567_v53 }
0x1508   : > { %v2579_v58 = vmul.f32 0.044715, %v2576_v33 }
0x150a   : > { %v2582_v59 = vadd.f32 %v2579_v58, %v2567_v53 }
0x150c   : > { %v2585_v60 = vmul.f32 0.7978846, %v2582_v59 }
0x150d   : > { %v2651_v61 = vpop.xlane.xlu1 %2650 }
0x150e   : > { %v2652_v63 = vmul.f32 %v2651_v61, %v3438_v27  ;;  %3164 = vtanh.f32 %v2585_v60 }
0x1510   : > { %v2653_v54 = vsub.f32 %v2645_v25, %v2652_v63 }
0x1512   : > { %v2654_v0 = vmul.f32 %v2653_v54, %v2653_v54 }
0x1514   : > { %v3165_v1 = vpop.eup %3164  ;;  %v2655_v24 = vsel %vm2648_vm9, %v2654_v0, 0.0 }
0x1515   : > { %2656 = vadd.xlane.f32.xlu2 %v2655_v24  ;;  %v2591_v18 = vadd.f32 1.0, %v3165_v1 }
0x1517   : > { %v2594_v51 = vmul.f32 0.5, %v2591_v18 }
0x1519   : > { %v2597_v3 = vmul.f32 %v2594_v51, %v2567_v53 }
0x151b   : > { %2640 = vmatmul.f32.gmra.mxu0 %v2597_v3 }
0x1543   : > { %v2569_v4 = vpop.f32.mrf.mxu1 }
0x1544   : > { %v2570_v46 = vadd.f32 %v4116_v2, %v2569_v4  ;;  %v2675_v2 = vld [vmem:[%s4210_s17 + $0x10] sm:$0xff] }
0x1545   : > { %2694 = vmatpush.msra.mxu2 %v2675_v2 }
0x1546   : > { %v2574_v5 = vmul.f32 %v2570_v46, %v2570_v46 }
0x1547   : > { %2695 = vmatpush.msra.mxu2 %v2674_v13 }
0x1548   : > { %v2577_v6 = vmul.f32 %v2574_v5, %v2570_v46 }
0x1549   : > { %2696 = vmatpush.msra.mxu2 %v2673_v14 }
0x154a   : > { %v2580_v7 = vmul.f32 0.044715, %v2577_v6 }
0x154c   : > { %v2583_v30 = vadd.f32 %v2580_v7, %v2570_v46 }
0x154e   : > { %v2586_v8 = vmul.f32 0.7978846, %v2583_v30 }
0x1550   : > { %3166 = vtanh.f32 %v2586_v8 }
0x1556   : > { %v3167_v43 = vpop.eup %3166 }
0x1557   : > { %v2592_v34 = vadd.f32 1.0, %v3167_v43 }
0x1559   : > { %v2595_v9 = vmul.f32 0.5, %v2592_v34 }
0x155b   : > { %v2598_v12 = vmul.f32 %v2595_v9, %v2570_v46 }
0x155d   : > { %2642 = vmatmul.f32.gmra.mxu0 %v2598_v12 }
0x1588   : > { %v2657_v16 = vpop.xlane.xlu2 %2656 }
0x1589   : > { %v2658_v15 = vmul.f32 %v2657_v16, %v3438_v27 }
0x158b   : > { %v2659_v45 = vadd.f32 1e-05, %v2658_v15 }
0x158d   : > { %3168 = vrsqrt.f32 %v2659_v45  ;;  %vm2666_vm0 = vweird.f32 %v2659_v45 }
0x1593   : > { %v3169_v20 = vpop.eup %3168 }
0x1594   : > { %v2661_v10 = vmul.f32 %v3169_v20, %v2659_v45  ;;  %vm2667_vm15 = vweird.f32 %v3169_v20 }
0x1595   : > { %vm2668_vm2 = vmor %vm2666_vm0, %vm2667_vm15 }
0x1596   : > { %v2662_v21 = vmul.f32 %v3169_v20, %v2661_v10 }
0x1598   : > { %v2663_v32 = vmul.f32 0.5, %v2662_v21  ;;  %v2641_v23 = vpop.f32.mrf.mxu0 }
0x159a   : > { %v2664_v29 = vsub.f32 1.5, %v2663_v32 }
0x159c   : > { %v2665_v48 = vmul.f32 %v3169_v20, %v2664_v29 }
0x159e   : > { %v2669_v19 = vsel %vm2668_vm2, %v3169_v20, %v2665_v48 }
0x159f   : > { %v2670_v27 = vmul.f32 %v2669_v19, %v2653_v54 }
0x15a1   : > { %v2671_v17 = vmul.f32 %v2670_v27, %v2646_v55 }
0x15a3   : > { %v2672_v35 = vadd.f32 %v2671_v17, %v2647_v31 }
0x15a5   : > { %2922 = vmatmul.msk.f32.vlgmr.msra.gmra.mxu2 %vm656_vm1, %v2672_v35 }
0x15da   : > { %v2643_v41 = vpop.f32.mrf.mxu0 }
0x1628   : > { %v2698_v25 = vpop.f32.mrf.mxu2 }
0x1629   : > { %v2699_v37 = vadd.f32 %v2698_v25, %v2677_v36 }
0x162b   : > { %2701 = vst [vmem:[%s595_s22] sm:$0x1] %v2699_v37 }
0x162c   : > { %3197 = shalt.err (!%p3194_p3)
}
0x162d   : > { %2926 = dma.vmem_to_hbm [thread:$0]  (%p3385_p5), %s2714_s4, 16, %s2716_s5, %s2703_s20  }
0x162e PF: > { %s4279_s28 = sld [smem:[#allocation7_spill]] }
0x162f   : > { %s4280_s25 = sld [smem:[#allocation5_spill]] }
0x1634   : > { %p2932_p4 = scmp.ge.s32.totalorder %s4279_s28, 2 }
0x1635   : > { %s2727_s22 = sand.u32 1, %s4280_s25  }
0x1636   : > { %p2929_p7 = pnand %p2932_p4, %p3389_p6  ;;  %s2728_s1 = scalar_lea.sflag [#allocation3], %s2727_s22 }
0x1638   : > { %p2930_p8 = pneg %p2929_p7 }
0x163a   : > { %3215 = dma.done.wait (%p2930_p8), %s2728_s1, 16  }
0x163b   : > { %3217 = vsyncadd (%p2930_p8), %s2728_s1, 4294967280  ;;  %s4282_s21 = sld [smem:[#allocation8_spill]]  ;;  %s4285_s0 = smov %s3224_s30 }
0x163c   : > { %s4283_s6 = sld [smem:[#allocation6_spill]] }
0x163d   : > { %s4284_s20 = sld [smem:[#allocation9_spill]] }
0x1641   : > { %p29_p9 = scmp.ge.s32.totalorder %s4282_s21, 4  }
0x1642   : > { %s4286_s30 = smov %s4283_s6 }
0x1643   :  { %31 = sbr.rel (!%p29_p9) target bundleno = 12 (0xc), region = 143 }
0x1648   :  { %2733 = vsyncpa [#allocation3], 1 }
0x1649   :  { %2735 = vsyncpa [#allocation3 + $0x1], 1 }

</bundles_post_ra>
